<compile_context>
chip_gen: v7x
topology: tpu7x:2x2x1
jax: 0.10.0
libtpu: 0.0.40
codegen_flags: <defaults>
</compile_context>

<pallas_src>
import functools

import jax
import jax.numpy as jnp
from jax.experimental import pallas as pl
from jax.experimental.pallas import tpu as pltpu


# ----------------------------------------------------------------------------
# small helpers
# ----------------------------------------------------------------------------
def _full_spec(shape):
    """BlockSpec covering the whole (small) array as a single VMEM block."""
    zeros = (0,) * len(shape)
    return pl.BlockSpec(shape, lambda i, _z=zeros: _z)


def _mm(a, b):
    """a[M,K] @ b[K,N] on the MXU, f32 accumulate."""
    return jnp.dot(a, b, preferred_element_type=jnp.float32)


def _mm_t(a, b):
    """Contract the leading dim of both operands: a[K,M]^T @ b[K,N] -> [M,N]."""
    return jax.lax.dot_general(a, b, (((0,), (0,)), ((), ())),
                               preferred_element_type=jnp.float32)


# ----------------------------------------------------------------------------
# The fused forward kernel
# ----------------------------------------------------------------------------
def _allosteric_kernel(
    # data
    nf_ref, src_ref, dst_ref, plddt_ref, eattr_ref, pae_ref,
    # head / embedding parameters
    ne_w, ne_b, sp_w1, sp_b1, sp_w2, sp_b2,
    pl_w, pl_b, pae_w, pae_b,
    fu_w1, fu_b1, fu_w2, fu_b2, pr_w1, pr_b1, pr_w2, pr_b2,
    # stacked per-layer GAT parameters
    lin_w, lin_b, att_src, att_dst, ep_w1, ep_b1, ep_w2, ep_b2,
    # output
    out_ref,
    *, heads, has_edge_attr, has_pae):
    f32 = jnp.float32
    n = nf_ref.shape[0]
    e = src_ref.shape[0]
    num_layers = lin_w.shape[0]
    hf = lin_w.shape[2]            # heads * out_features
    f = hf // heads                # out_features (== hidden_dim)

    # ---- edge-structure constants (built once, reused by every layer) ------
    src = jnp.minimum(src_ref[...], n - 1)                       # [E,1] clamp OOB idx
    dst = jnp.minimum(dst_ref[...], n - 1)                       # [E,1]
    node_iota = jax.lax.broadcasted_iota(jnp.int32, (e, n), 1)
    s_src_b = node_iota == src                                   # [E,N] bool one-hot
    s_dst_b = node_iota == dst
    s_src = s_src_b.astype(f32)
    s_dst = s_dst_b.astype(f32)

    # softmax_by_src "last write wins" selector: for each node, its last edge.
    e_idx = jax.lax.broadcasted_iota(jnp.int32, (e, n), 0).astype(f32)
    last_edge = jnp.max(jnp.where(s_src_b, e_idx, -1.0), axis=0, keepdims=True)   # [1,N]
    is_last = jnp.logical_and(s_src_b, e_idx == last_edge).astype(f32)            # [E,N]
    deg = _mm_t(s_src, jnp.ones((e, 1), f32))                     # [N,1] out-degree
    # -inf additive mask (node has no out-edge) precomputed at [N,H]: the
    # per-layer softmax becomes a plain add (broadcast hoisted out of the loop).
    softmax_mask = jnp.where(deg > 0.0, jnp.zeros((n, heads), f32), -jnp.inf)     # [N,H]

    # head-slab helper matrices (no integer division: range compares only)
    c_t = jax.lax.broadcasted_iota(jnp.int32, (hf, heads), 0)
    h_t = jax.lax.broadcasted_iota(jnp.int32, (hf, heads), 1)
    sel_T = jnp.logical_and(c_t >= h_t * f, c_t < (h_t + 1) * f).astype(f32)  # [HF,H]
    h_s = jax.lax.broadcasted_iota(jnp.int32, (heads, hf), 0)
    c_s = jax.lax.broadcasted_iota(jnp.int32, (heads, hf), 1)
    sel = jnp.logical_and(c_s >= h_s * f, c_s < (h_s + 1) * f).astype(f32)    # [H,HF]
    c_r = jax.lax.broadcasted_iota(jnp.int32, (hf, f), 0)
    f_r = jax.lax.broadcasted_iota(jnp.int32, (hf, f), 1)
    hm = jnp.zeros((hf, f), f32)
    for h in range(heads):
        hm = hm + ((c_r - h * f) == f_r).astype(f32)
    head_mean = hm / float(heads)                                 # [HF,F]

    # ---- node + spatial embedding ------------------------------------------
    nf = nf_ref[...]                                              # [N, node_features]
    base = _mm(nf, ne_w[...]) + ne_b[...]                         # [N,F]
    sp_h = jnp.maximum(_mm(nf, sp_w1[...]) + sp_b1[...], 0.0)     # sp_w1 zero-padded -> coords only
    x = base + _mm(sp_h, sp_w2[...]) + sp_b2[...]                 # [N,F]

    # ---- GAT conv stack ------------------------------------------------------
    eattr = eattr_ref[...]
    for l in range(num_layers):
        xh = _mm(x, lin_w[l]) + lin_b[l]                          # [N,HF]
        a_src_node = _mm(xh * att_src[l], sel_T)                  # [N,H] per-head dot with att_src
        a_dst_node = _mm(xh * att_dst[l], sel_T)                  # [N,H]
        alpha = _mm(s_src, a_src_node) + _mm(s_dst, a_dst_node)   # [E,H] gather per edge
        if has_edge_attr:
            e_hid = jnp.maximum(_mm(eattr, ep_w1[l]) + ep_b1[l], 0.0)
            alpha = alpha + _mm(e_hid, ep_w2[l]) + ep_b2[l]
        alpha = jnp.where(alpha >= 0.0, alpha, 0.2 * alpha)       # leaky_relu(0.2)

        # softmax_by_src: last-write-wins scatter to [N,H], softmax over the
        # node dimension, gather back per edge (matches the reference exactly).
        buf = _mm_t(is_last, alpha) + softmax_mask                 # [N,H]; -inf where deg==0
        mx = jnp.max(buf, axis=0, keepdims=True)
        ex = jnp.exp(buf - mx)
        soft = ex * pl.reciprocal(jnp.sum(ex, axis=0, keepdims=True), approx=True)
        alpha_e = _mm(s_src, soft)                                # [E,H]
        # TODO(synk): F.dropout(alpha) skipped (eval mode).

        # message passing, batched over heads in one 256-lane slab
        msg = _mm(s_dst, xh)                                      # [E,HF] = x[dst], all heads
        scale = _mm(alpha_e, sel)                                 # [E,HF] alpha repeated per head slab
        agg = _mm_t(s_src, msg * scale)                           # [N,HF] scatter-add by src
        conv = _mm(agg, head_mean)                                # [N,F]  mean over heads
        x = jnp.maximum(conv + x, 0.0)                            # residual + ReLU

    # ---- confidence features + prediction head -------------------------------
    plddt_feat = jnp.maximum(plddt_ref[...] * pl_w[...] + pl_b[...], 0.0)       # [N,F] (K=1 -> VPU)
    if has_pae:
        mean_pae = jnp.mean(pae_ref[...], axis=1, keepdims=True)                # [N,1]
        pae_feat = jnp.maximum(mean_pae * pae_w[...] + pae_b[...], 0.0)         # [N,F]
    else:
        pae_feat = jnp.zeros_like(plddt_feat)

    # fusion first linear == concat([x, plddt, pae]) @ W : split W into 3 chunks
    f1 = jnp.maximum(_mm(x, fu_w1[0]) + _mm(plddt_feat, fu_w1[1])
                     + _mm(pae_feat, fu_w1[2]) + fu_b1[...], 0.0)
    fused = jnp.maximum(_mm(f1, fu_w2[...]) + fu_b2[...], 0.0)
    p1 = jnp.maximum(_mm(fused, pr_w1[...]) + pr_b1[...], 0.0)
    logits = _mm(p1, pr_w2[...]) + pr_b2[...]
    out_ref[...] = 1.0 / (1.0 + jnp.exp(-logits))                 # sigmoid


_PARAM_ORDER = (
    "ne_w", "ne_b", "sp_w1", "sp_b1", "sp_w2", "sp_b2",
    "pl_w", "pl_b", "pae_w", "pae_b",
    "fu_w1", "fu_b1", "fu_w2", "fu_b2", "pr_w1", "pr_b1", "pr_w2", "pr_b2",
    "lin_w", "lin_b", "att_src", "att_dst", "ep_w1", "ep_b1", "ep_w2", "ep_b2",
)


# ----------------------------------------------------------------------------
# AllostericHead forward (single pallas_call)
# ----------------------------------------------------------------------------
def allosteric_head_forward(prepared, node_features, edge_index, plddt,
                            edge_attr=None, pae=None, heads=4):
    n = node_features.shape[0]
    num_edges = edge_index.shape[1]
    if n == 0 or num_edges == 0:
        if plddt is not None and plddt.size > 0:
            return jnp.zeros((plddt.shape[0],), jnp.float32)
        return jnp.zeros((1,), jnp.float32)

    ef = prepared["ep_w1"].shape[1]

    src_col = edge_index[0].astype(jnp.int32).reshape(num_edges, 1)
    dst_col = edge_index[1].astype(jnp.int32).reshape(num_edges, 1)
    plddt2 = (plddt[:, None] if plddt.ndim == 1 else plddt).astype(jnp.float32)

    has_edge_attr = edge_attr is not None
    eattr = (edge_attr.astype(jnp.float32) if has_edge_attr
             else jnp.zeros((num_edges, ef), jnp.float32))
    has_pae = pae is not None
    pae_in = (pae.astype(jnp.float32) if has_pae
              else jnp.zeros((n, 1), jnp.float32))

    inputs = (node_features.astype(jnp.float32), src_col, dst_col,
              plddt2, eattr, pae_in) + tuple(prepared[k] for k in _PARAM_ORDER)

    out = pl.pallas_call(
        functools.partial(_allosteric_kernel, heads=heads,
                          has_edge_attr=has_edge_attr, has_pae=has_pae),
        grid=(1,),
        in_specs=[_full_spec(a.shape) for a in inputs],
        out_specs=_full_spec((n, 1)),
        out_shape=jax.ShapeDtypeStruct((n, 1), jnp.float32),
        compiler_params=pltpu.CompilerParams(dimension_semantics=("arbitrary",)),
    )(*inputs)
    return out[:, 0]


# ----------------------------------------------------------------------------
# Parameters: raw (torch-like, transposed to [in,out]) + one-time preprocessing
# ----------------------------------------------------------------------------
def init_params(key, node_features=25, hidden_dim=64, edge_features=4,
                num_layers=3, heads=4):
    keys = iter(jax.random.split(key, 64))

    def w(shape, scale=0.1):
        return scale * jax.random.normal(next(keys), shape, dtype=jnp.float32)

    params = {
        "ne_w": w((node_features, hidden_dim)), "ne_b": w((hidden_dim,)),
        "sp_w1": w((3, hidden_dim // 2)), "sp_b1": w((hidden_dim // 2,)),
        "sp_w2": w((hidden_dim // 2, hidden_dim)), "sp_b2": w((hidden_dim,)),
        "pl_w": w((1, hidden_dim)), "pl_b": w((hidden_dim,)),
        "pae_w": w((1, hidden_dim)), "pae_b": w((hidden_dim,)),
        "fu_w1": w((hidden_dim * 3, hidden_dim)), "fu_b1": w((hidden_dim,)),
        "fu_w2": w((hidden_dim, hidden_dim)), "fu_b2": w((hidden_dim,)),
        "pr_w1": w((hidden_dim, hidden_dim // 2)), "pr_b1": w((hidden_dim // 2,)),
        "pr_w2": w((hidden_dim // 2, 1)), "pr_b2": w((1,)),
        "convs": [],
    }
    for _ in range(num_layers):
        params["convs"].append({
            "lin_w": w((hidden_dim, heads * hidden_dim)),
            "lin_b": w((heads * hidden_dim,)),
            "ep_w1": w((edge_features, 32)), "ep_b1": w((32,)),
            "ep_w2": w((32, heads)), "ep_b2": w((heads,)),
            "att_src": w((1, heads, hidden_dim)),
            "att_dst": w((1, heads, hidden_dim)),
        })
    return params


def prepare_params(raw, node_features_dim, hidden_dim):
    """One-time preprocessing: cast, reshape biases to [1,out], zero-pad the
    spatial first linear to act on the full node-feature vector, split the
    fusion weight per concat source, and stack per-layer GAT params."""
    def f(v):
        return v.astype(jnp.float32)

    def b(v):
        return v.reshape(1, -1).astype(jnp.float32)

    sp_w1_pad = jnp.zeros((node_features_dim, raw["sp_w1"].shape[1]), jnp.float32)
    sp_w1_pad = sp_w1_pad.at[node_features_dim - 3:].set(f(raw["sp_w1"]))
    convs = raw["convs"]
    return {
        "ne_w": f(raw["ne_w"]), "ne_b": b(raw["ne_b"]),
        "sp_w1": sp_w1_pad, "sp_b1": b(raw["sp_b1"]),
        "sp_w2": f(raw["sp_w2"]), "sp_b2": b(raw["sp_b2"]),
        "pl_w": f(raw["pl_w"]).reshape(1, hidden_dim), "pl_b": b(raw["pl_b"]),
        "pae_w": f(raw["pae_w"]).reshape(1, hidden_dim), "pae_b": b(raw["pae_b"]),
        "fu_w1": f(raw["fu_w1"]).reshape(3, hidden_dim, hidden_dim),
        "fu_b1": b(raw["fu_b1"]),
        "fu_w2": f(raw["fu_w2"]), "fu_b2": b(raw["fu_b2"]),
        "pr_w1": f(raw["pr_w1"]), "pr_b1": b(raw["pr_b1"]),
        "pr_w2": f(raw["pr_w2"]), "pr_b2": b(raw["pr_b2"]),
        "lin_w": jnp.stack([f(c["lin_w"]) for c in convs]),
        "lin_b": jnp.stack([b(c["lin_b"]) for c in convs]),
        "att_src": jnp.stack([f(c["att_src"]).reshape(1, -1) for c in convs]),
        "att_dst": jnp.stack([f(c["att_dst"]).reshape(1, -1) for c in convs]),
        "ep_w1": jnp.stack([f(c["ep_w1"]) for c in convs]),
        "ep_b1": jnp.stack([b(c["ep_b1"]) for c in convs]),
        "ep_w2": jnp.stack([f(c["ep_w2"]) for c in convs]),
        "ep_b2": jnp.stack([b(c["ep_b2"]) for c in convs]),
    }


# ----------------------------------------------------------------------------
# Pure-JAX reference (mirrors the PyTorch module) for a correctness check
# ----------------------------------------------------------------------------
def reference_forward(raw, node_features, edge_index, plddt, edge_attr, pae, heads):
    n = node_features.shape[0]
    edge_index = jnp.minimum(edge_index, n - 1)
    src, dst = edge_index[0], edge_index[1]
    if plddt.ndim == 1:
        plddt = plddt[:, None]
    coords = node_features[:, -3:]
    sp = jnp.maximum(coords @ raw["sp_w1"] + raw["sp_b1"], 0.0) @ raw["sp_w2"] + raw["sp_b2"]
    x = node_features @ raw["ne_w"] + raw["ne_b"] + sp
    hidden = x.shape[1]
    num_edges = src.shape[0]
    for c in raw["convs"]:
        x_res = x
        xh = (x @ c["lin_w"] + c["lin_b"]).reshape(n, heads, hidden)
        a_src = jnp.sum(xh * c["att_src"], axis=-1)
        a_dst = jnp.sum(xh * c["att_dst"], axis=-1)
        alpha = a_src[src] + a_dst[dst]
        if edge_attr is not None:
            eh = jnp.maximum(edge_attr @ c["ep_w1"] + c["ep_b1"], 0.0)
            alpha = alpha + eh @ c["ep_w2"] + c["ep_b2"]
        alpha = jnp.where(alpha >= 0, alpha, 0.2 * alpha)
        edge_order = jnp.arange(num_edges)
        last_edge = jnp.full((n,), -1).at[src].max(edge_order)
        buf = jnp.where((last_edge >= 0)[:, None],
                        alpha[jnp.clip(last_edge, 0)], -jnp.inf)
        soft = jax.nn.softmax(buf, axis=0)
        alpha_soft = soft[src]
        msg = xh[dst] * alpha_soft[:, :, None]
        out = jnp.zeros((n, heads, hidden), jnp.float32).at[src].add(msg)
        x = jnp.maximum(out.mean(axis=1) + x_res, 0.0)
    plddt_feat = jnp.maximum(plddt @ raw["pl_w"] + raw["pl_b"], 0.0)
    if pae is not None:
        pae_feat = jnp.maximum(jnp.mean(pae, axis=1, keepdims=True) @ raw["pae_w"]
                               + raw["pae_b"], 0.0)
    else:
        pae_feat = jnp.zeros_like(plddt_feat)
    combined = jnp.concatenate([x, plddt_feat, pae_feat], axis=1)
    f1 = jnp.maximum(combined @ raw["fu_w1"] + raw["fu_b1"], 0.0)
    fused = jnp.maximum(f1 @ raw["fu_w2"] + raw["fu_b2"], 0.0)
    p1 = jnp.maximum(fused @ raw["pr_w1"] + raw["pr_b1"], 0.0)
    return jax.nn.sigmoid(p1 @ raw["pr_w2"] + raw["pr_b2"])[:, 0]


if __name__ == "__main__":
    key = jax.random.PRNGKey(0)
    k_nf, k_src, k_dst, k_plddt, k_ea, k_pae, k_params = jax.random.split(key, 7)

    N, E = 16, 48
    NODE_FEATURES, HIDDEN, EDGE_FEATURES, HEADS, LAYERS = 25, 64, 4, 4, 3

    node_feats = jax.random.normal(k_nf, (N, NODE_FEATURES), dtype=jnp.float32)
    src = jax.random.randint(k_src, (E,), 0, N, dtype=jnp.int32)
    dst = jax.random.randint(k_dst, (E,), 0, N, dtype=jnp.int32)
    edge_index = jnp.stack([src, dst], axis=0)                     # [2, E]
    plddt = jax.random.uniform(k_plddt, (N,), dtype=jnp.float32)
    edge_attr = jax.random.normal(k_ea, (E, EDGE_FEATURES), dtype=jnp.float32)
    pae = jax.random.uniform(k_pae, (N, N), dtype=jnp.float32) * 30.0

    raw = init_params(k_params, node_features=NODE_FEATURES, hidden_dim=HIDDEN,
                      edge_features=EDGE_FEATURES, num_layers=LAYERS, heads=HEADS)
    prepared = prepare_params(raw, NODE_FEATURES, HIDDEN)

    scores = allosteric_head_forward(prepared, node_feats, edge_index, plddt,
                                     edge_attr=edge_attr, pae=pae, heads=HEADS)
    scores = jax.block_until_ready(scores)

    ref = jax.block_until_ready(
        reference_forward(raw, node_feats, edge_index, plddt, edge_attr, pae, HEADS))

    assert scores.shape == (N,)
    assert bool(jnp.all(jnp.isfinite(scores)))
    assert bool(jnp.all((scores >= 0.0) & (scores <= 1.0)))
    assert float(jnp.max(jnp.abs(scores - ref))) < 2e-2
    print("KERNEL_OK")
</pallas_src>

<mosaic_0001>
module attributes {stable_mosaic.version = 11 : i64} {
  func.func @_allosteric_kernel(%arg0: i32, %arg1: memref<16x25xf32, #tpu.memory_space<vmem>>, %arg2: memref<48x1xi32, #tpu.memory_space<vmem>>, %arg3: memref<48x1xi32, #tpu.memory_space<vmem>>, %arg4: memref<16x1xf32, #tpu.memory_space<vmem>>, %arg5: memref<48x4xf32, #tpu.memory_space<vmem>>, %arg6: memref<16x16xf32, #tpu.memory_space<vmem>>, %arg7: memref<25x64xf32, #tpu.memory_space<vmem>>, %arg8: memref<1x64xf32, #tpu.memory_space<vmem>>, %arg9: memref<25x32xf32, #tpu.memory_space<vmem>>, %arg10: memref<1x32xf32, #tpu.memory_space<vmem>>, %arg11: memref<32x64xf32, #tpu.memory_space<vmem>>, %arg12: memref<1x64xf32, #tpu.memory_space<vmem>>, %arg13: memref<1x64xf32, #tpu.memory_space<vmem>>, %arg14: memref<1x64xf32, #tpu.memory_space<vmem>>, %arg15: memref<1x64xf32, #tpu.memory_space<vmem>>, %arg16: memref<1x64xf32, #tpu.memory_space<vmem>>, %arg17: memref<3x64x64xf32, #tpu.memory_space<vmem>>, %arg18: memref<1x64xf32, #tpu.memory_space<vmem>>, %arg19: memref<64x64xf32, #tpu.memory_space<vmem>>, %arg20: memref<1x64xf32, #tpu.memory_space<vmem>>, %arg21: memref<64x32xf32, #tpu.memory_space<vmem>>, %arg22: memref<1x32xf32, #tpu.memory_space<vmem>>, %arg23: memref<32x1xf32, #tpu.memory_space<vmem>>, %arg24: memref<1x1xf32, #tpu.memory_space<vmem>>, %arg25: memref<3x64x256xf32, #tpu.memory_space<vmem>>, %arg26: memref<3x1x256xf32, #tpu.memory_space<vmem>>, %arg27: memref<3x1x256xf32, #tpu.memory_space<vmem>>, %arg28: memref<3x1x256xf32, #tpu.memory_space<vmem>>, %arg29: memref<3x4x32xf32, #tpu.memory_space<vmem>>, %arg30: memref<3x1x32xf32, #tpu.memory_space<vmem>>, %arg31: memref<3x32x4xf32, #tpu.memory_space<vmem>>, %arg32: memref<3x1x4xf32, #tpu.memory_space<vmem>>, %arg33: memref<16x1xf32, #tpu.memory_space<vmem>>) attributes {dimension_semantics = [#tpu.dimension_semantics<arbitrary>], iteration_bounds = array<i64: 1>, scalar_prefetch = 0 : i64, scratch_operands = 0 : i64, tpu.core_type = #tpu.core_type<tc>, window_params = [{pipeline_mode = #tpu.pipeline_mode<synchronous>, transform_indices = @transform_0, window_bounds = array<i64: 16, 25>}, {pipeline_mode = #tpu.pipeline_mode<synchronous>, transform_indices = @transform_1, window_bounds = array<i64: 48, 1>}, {pipeline_mode = #tpu.pipeline_mode<synchronous>, transform_indices = @transform_2, window_bounds = array<i64: 48, 1>}, {pipeline_mode = #tpu.pipeline_mode<synchronous>, transform_indices = @transform_3, window_bounds = array<i64: 16, 1>}, {pipeline_mode = #tpu.pipeline_mode<synchronous>, transform_indices = @transform_4, window_bounds = array<i64: 48, 4>}, {pipeline_mode = #tpu.pipeline_mode<synchronous>, transform_indices = @transform_5, window_bounds = array<i64: 16, 16>}, {pipeline_mode = #tpu.pipeline_mode<synchronous>, transform_indices = @transform_6, window_bounds = array<i64: 25, 64>}, {pipeline_mode = #tpu.pipeline_mode<synchronous>, transform_indices = @transform_7, window_bounds = array<i64: 1, 64>}, {pipeline_mode = #tpu.pipeline_mode<synchronous>, transform_indices = @transform_8, window_bounds = array<i64: 25, 32>}, {pipeline_mode = #tpu.pipeline_mode<synchronous>, transform_indices = @transform_9, window_bounds = array<i64: 1, 32>}, {pipeline_mode = #tpu.pipeline_mode<synchronous>, transform_indices = @transform_10, window_bounds = array<i64: 32, 64>}, {pipeline_mode = #tpu.pipeline_mode<synchronous>, transform_indices = @transform_11, window_bounds = array<i64: 1, 64>}, {pipeline_mode = #tpu.pipeline_mode<synchronous>, transform_indices = @transform_12, window_bounds = array<i64: 1, 64>}, {pipeline_mode = #tpu.pipeline_mode<synchronous>, transform_indices = @transform_13, window_bounds = array<i64: 1, 64>}, {pipeline_mode = #tpu.pipeline_mode<synchronous>, transform_indices = @transform_14, window_bounds = array<i64: 1, 64>}, {pipeline_mode = #tpu.pipeline_mode<synchronous>, transform_indices = @transform_15, window_bounds = array<i64: 1, 64>}, {pipeline_mode = #tpu.pipeline_mode<synchronous>, transform_indices = @transform_16, window_bounds = array<i64: 3, 64, 64>}, {pipeline_mode = #tpu.pipeline_mode<synchronous>, transform_indices = @transform_17, window_bounds = array<i64: 1, 64>}, {pipeline_mode = #tpu.pipeline_mode<synchronous>, transform_indices = @transform_18, window_bounds = array<i64: 64, 64>}, {pipeline_mode = #tpu.pipeline_mode<synchronous>, transform_indices = @transform_19, window_bounds = array<i64: 1, 64>}, {pipeline_mode = #tpu.pipeline_mode<synchronous>, transform_indices = @transform_20, window_bounds = array<i64: 64, 32>}, {pipeline_mode = #tpu.pipeline_mode<synchronous>, transform_indices = @transform_21, window_bounds = array<i64: 1, 32>}, {pipeline_mode = #tpu.pipeline_mode<synchronous>, transform_indices = @transform_22, window_bounds = array<i64: 32, 1>}, {pipeline_mode = #tpu.pipeline_mode<synchronous>, transform_indices = @transform_23, window_bounds = array<i64: 1, 1>}, {pipeline_mode = #tpu.pipeline_mode<synchronous>, transform_indices = @transform_24, window_bounds = array<i64: 3, 64, 256>}, {pipeline_mode = #tpu.pipeline_mode<synchronous>, transform_indices = @transform_25, window_bounds = array<i64: 3, 1, 256>}, {pipeline_mode = #tpu.pipeline_mode<synchronous>, transform_indices = @transform_26, window_bounds = array<i64: 3, 1, 256>}, {pipeline_mode = #tpu.pipeline_mode<synchronous>, transform_indices = @transform_27, window_bounds = array<i64: 3, 1, 256>}, {pipeline_mode = #tpu.pipeline_mode<synchronous>, transform_indices = @transform_28, window_bounds = array<i64: 3, 4, 32>}, {pipeline_mode = #tpu.pipeline_mode<synchronous>, transform_indices = @transform_29, window_bounds = array<i64: 3, 1, 32>}, {pipeline_mode = #tpu.pipeline_mode<synchronous>, transform_indices = @transform_30, window_bounds = array<i64: 3, 32, 4>}, {pipeline_mode = #tpu.pipeline_mode<synchronous>, transform_indices = @transform_31, window_bounds = array<i64: 3, 1, 4>}, {pipeline_mode = #tpu.pipeline_mode<synchronous>, transform_indices = @transform_32, window_bounds = array<i64: 16, 1>}]} {
    %c0 = arith.constant 0 : index
    %c0_0 = arith.constant 0 : index
    %0 = vector.load %arg2[%c0, %c0_0] : memref<48x1xi32, #tpu.memory_space<vmem>>, vector<48x1xi32>
    %c15_i32 = arith.constant 15 : i32
    %1 = vector.broadcast %c15_i32 : i32 to vector<48x1xi32>
    %2 = arith.minsi %0, %1 : vector<48x1xi32>
    %c0_1 = arith.constant 0 : index
    %c0_2 = arith.constant 0 : index
    %3 = vector.load %arg3[%c0_1, %c0_2] : memref<48x1xi32, #tpu.memory_space<vmem>>, vector<48x1xi32>
    %c15_i32_3 = arith.constant 15 : i32
    %4 = vector.broadcast %c15_i32_3 : i32 to vector<48x1xi32>
    %5 = arith.minsi %3, %4 : vector<48x1xi32>
    %6 = tpu.iota {dimensions = array<i32: 1>} : vector<48x16xi32>
    %7 = vector.broadcast %2 : vector<48x1xi32> to vector<48x16xi32>
    %8 = arith.cmpi eq, %6, %7 : vector<48x16xi32>
    %9 = vector.broadcast %5 : vector<48x1xi32> to vector<48x16xi32>
    %10 = arith.cmpi eq, %6, %9 : vector<48x16xi32>
    %11 = arith.extui %8 : vector<48x16xi1> to vector<48x16xi32>
    %12 = arith.sitofp %11 : vector<48x16xi32> to vector<48x16xf32>
    %13 = arith.extui %10 : vector<48x16xi1> to vector<48x16xi32>
    %14 = arith.sitofp %13 : vector<48x16xi32> to vector<48x16xf32>
    %15 = tpu.iota {dimensions = array<i32: 0>} : vector<48x16xi32>
    %16 = arith.sitofp %15 : vector<48x16xi32> to vector<48x16xf32>
    %cst = arith.constant -1.000000e+00 : f32
    %17 = vector.broadcast %cst : f32 to vector<48x16xf32>
    %18 = arith.select %8, %16, %17 : vector<48x16xi1>, vector<48x16xf32>
    %cst_4 = arith.constant dense<0xFF800000> : vector<16xf32>
    %19 = vector.multi_reduction <maximumf>, %18, %cst_4 [0] : vector<48x16xf32> to vector<16xf32>
    %20 = vector.shape_cast %19 : vector<16xf32> to vector<1x16xf32>
    %21 = vector.broadcast %20 : vector<1x16xf32> to vector<48x16xf32>
    %22 = arith.cmpf oeq, %16, %21 : vector<48x16xf32>
    %23 = arith.andi %8, %22 : vector<48x16xi1>
    %24 = arith.extui %23 : vector<48x16xi1> to vector<48x16xi32>
    %25 = arith.sitofp %24 : vector<48x16xi32> to vector<48x16xf32>
    %cst_5 = arith.constant 1.000000e+00 : f32
    %26 = vector.broadcast %cst_5 : f32 to vector<48x1xf32>
    %cst_6 = arith.constant dense<0.000000e+00> : vector<16x1xf32>
    %27 = tpu.matmul %12, %26, %cst_6 {dimension_numbers = #tpu.dot_dimension_numbers<[0], [0], [1], [1], [0, 1, 1, 1], [], []>} : vector<48x16xf32>, vector<48x1xf32>, vector<16x1xf32> -> vector<16x1xf32>
    %cst_7 = arith.constant 0.000000e+00 : f32
    %28 = vector.broadcast %cst_7 : f32 to vector<16x1xf32>
    %29 = arith.cmpf ogt, %27, %28 : vector<16x1xf32>
    %cst_8 = arith.constant 0.000000e+00 : f32
    %30 = vector.broadcast %cst_8 : f32 to vector<16x4xf32>
    %cst_9 = arith.constant 0xFF800000 : f32
    %31 = vector.shape_cast %29 : vector<16x1xi1> to vector<16x1xi1>
    %32 = vector.broadcast %31 : vector<16x1xi1> to vector<16x4xi1>
    %33 = vector.broadcast %cst_9 : f32 to vector<16x4xf32>
    %34 = arith.select %32, %30, %33 : vector<16x4xi1>, vector<16x4xf32>
    %35 = tpu.iota {dimensions = array<i32: 0>} : vector<256x4xi32>
    %36 = tpu.iota {dimensions = array<i32: 1>} : vector<256x4xi32>
    %c64_i32 = arith.constant 64 : i32
    %37 = vector.broadcast %c64_i32 : i32 to vector<256x4xi32>
    %38 = arith.muli %36, %37 : vector<256x4xi32>
    %39 = arith.cmpi sge, %35, %38 : vector<256x4xi32>
    %c1_i32 = arith.constant 1 : i32
    %40 = vector.broadcast %c1_i32 : i32 to vector<256x4xi32>
    %41 = arith.addi %36, %40 : vector<256x4xi32>
    %c64_i32_10 = arith.constant 64 : i32
    %42 = vector.broadcast %c64_i32_10 : i32 to vector<256x4xi32>
    %43 = arith.muli %41, %42 : vector<256x4xi32>
    %44 = arith.cmpi slt, %35, %43 : vector<256x4xi32>
    %45 = arith.andi %39, %44 : vector<256x4xi1>
    %46 = arith.extui %45 : vector<256x4xi1> to vector<256x4xi32>
    %47 = arith.sitofp %46 : vector<256x4xi32> to vector<256x4xf32>
    %48 = tpu.iota {dimensions = array<i32: 0>} : vector<4x256xi32>
    %49 = tpu.iota {dimensions = array<i32: 1>} : vector<4x256xi32>
    %c64_i32_11 = arith.constant 64 : i32
    %50 = vector.broadcast %c64_i32_11 : i32 to vector<4x256xi32>
    %51 = arith.muli %48, %50 : vector<4x256xi32>
    %52 = arith.cmpi sge, %49, %51 : vector<4x256xi32>
    %c1_i32_12 = arith.constant 1 : i32
    %53 = vector.broadcast %c1_i32_12 : i32 to vector<4x256xi32>
    %54 = arith.addi %48, %53 : vector<4x256xi32>
    %c64_i32_13 = arith.constant 64 : i32
    %55 = vector.broadcast %c64_i32_13 : i32 to vector<4x256xi32>
    %56 = arith.muli %54, %55 : vector<4x256xi32>
    %57 = arith.cmpi slt, %49, %56 : vector<4x256xi32>
    %58 = arith.andi %52, %57 : vector<4x256xi1>
    %59 = arith.extui %58 : vector<4x256xi1> to vector<4x256xi32>
    %60 = arith.sitofp %59 : vector<4x256xi32> to vector<4x256xf32>
    %61 = tpu.iota {dimensions = array<i32: 0>} : vector<256x64xi32>
    %62 = tpu.iota {dimensions = array<i32: 1>} : vector<256x64xi32>
    %cst_14 = arith.constant 0.000000e+00 : f32
    %63 = vector.broadcast %cst_14 : f32 to vector<256x64xf32>
    %c0_i32 = arith.constant 0 : i32
    %64 = vector.broadcast %c0_i32 : i32 to vector<256x64xi32>
    %65 = arith.subi %61, %64 : vector<256x64xi32>
    %66 = arith.cmpi eq, %65, %62 : vector<256x64xi32>
    %67 = arith.extui %66 : vector<256x64xi1> to vector<256x64xi32>
    %68 = arith.sitofp %67 : vector<256x64xi32> to vector<256x64xf32>
    %69 = arith.addf %63, %68 : vector<256x64xf32>
    %c64_i32_15 = arith.constant 64 : i32
    %70 = vector.broadcast %c64_i32_15 : i32 to vector<256x64xi32>
    %71 = arith.subi %61, %70 : vector<256x64xi32>
    %72 = arith.cmpi eq, %71, %62 : vector<256x64xi32>
    %73 = arith.extui %72 : vector<256x64xi1> to vector<256x64xi32>
    %74 = arith.sitofp %73 : vector<256x64xi32> to vector<256x64xf32>
    %75 = arith.addf %69, %74 : vector<256x64xf32>
    %c128_i32 = arith.constant 128 : i32
    %76 = vector.broadcast %c128_i32 : i32 to vector<256x64xi32>
    %77 = arith.subi %61, %76 : vector<256x64xi32>
    %78 = arith.cmpi eq, %77, %62 : vector<256x64xi32>
    %79 = arith.extui %78 : vector<256x64xi1> to vector<256x64xi32>
    %80 = arith.sitofp %79 : vector<256x64xi32> to vector<256x64xf32>
    %81 = arith.addf %75, %80 : vector<256x64xf32>
    %c192_i32 = arith.constant 192 : i32
    %82 = vector.broadcast %c192_i32 : i32 to vector<256x64xi32>
    %83 = arith.subi %61, %82 : vector<256x64xi32>
    %84 = arith.cmpi eq, %83, %62 : vector<256x64xi32>
    %85 = arith.extui %84 : vector<256x64xi1> to vector<256x64xi32>
    %86 = arith.sitofp %85 : vector<256x64xi32> to vector<256x64xf32>
    %87 = arith.addf %81, %86 : vector<256x64xf32>
    %cst_16 = arith.constant 4.000000e+00 : f32
    %88 = vector.broadcast %cst_16 : f32 to vector<256x64xf32>
    %89 = arith.divf %87, %88 : vector<256x64xf32>
    %c0_17 = arith.constant 0 : index
    %c0_18 = arith.constant 0 : index
    %90 = vector.load %arg1[%c0_17, %c0_18] : memref<16x25xf32, #tpu.memory_space<vmem>>, vector<16x25xf32>
    %c0_19 = arith.constant 0 : index
    %c0_20 = arith.constant 0 : index
    %91 = vector.load %arg7[%c0_19, %c0_20] : memref<25x64xf32, #tpu.memory_space<vmem>>, vector<25x64xf32>
    %cst_21 = arith.constant dense<0.000000e+00> : vector<16x64xf32>
    %92 = tpu.matmul %90, %91, %cst_21 {dimension_numbers = #tpu.dot_dimension_numbers<[1], [0], [0], [1], [0, 0, 1, 1], [], []>} : vector<16x25xf32>, vector<25x64xf32>, vector<16x64xf32> -> vector<16x64xf32>
    %c0_22 = arith.constant 0 : index
    %c0_23 = arith.constant 0 : index
    %93 = vector.load %arg8[%c0_22, %c0_23] : memref<1x64xf32, #tpu.memory_space<vmem>>, vector<1x64xf32>
    %94 = vector.broadcast %93 : vector<1x64xf32> to vector<16x64xf32>
    %95 = arith.addf %92, %94 : vector<16x64xf32>
    %c0_24 = arith.constant 0 : index
    %c0_25 = arith.constant 0 : index
    %96 = vector.load %arg9[%c0_24, %c0_25] : memref<25x32xf32, #tpu.memory_space<vmem>>, vector<25x32xf32>
    %cst_26 = arith.constant dense<0.000000e+00> : vector<16x32xf32>
    %97 = tpu.matmul %90, %96, %cst_26 {dimension_numbers = #tpu.dot_dimension_numbers<[1], [0], [0], [1], [0, 0, 1, 1], [], []>} : vector<16x25xf32>, vector<25x32xf32>, vector<16x32xf32> -> vector<16x32xf32>
    %c0_27 = arith.constant 0 : index
    %c0_28 = arith.constant 0 : index
    %98 = vector.load %arg10[%c0_27, %c0_28] : memref<1x32xf32, #tpu.memory_space<vmem>>, vector<1x32xf32>
    %99 = vector.broadcast %98 : vector<1x32xf32> to vector<16x32xf32>
    %100 = arith.addf %97, %99 : vector<16x32xf32>
    %cst_29 = arith.constant 0.000000e+00 : f32
    %101 = vector.broadcast %cst_29 : f32 to vector<16x32xf32>
    %102 = arith.maximumf %100, %101 : vector<16x32xf32>
    %c0_30 = arith.constant 0 : index
    %c0_31 = arith.constant 0 : index
    %103 = vector.load %arg11[%c0_30, %c0_31] : memref<32x64xf32, #tpu.memory_space<vmem>>, vector<32x64xf32>
    %cst_32 = arith.constant dense<0.000000e+00> : vector<16x64xf32>
    %104 = tpu.matmul %102, %103, %cst_32 {dimension_numbers = #tpu.dot_dimension_numbers<[1], [0], [0], [1], [0, 0, 1, 1], [], []>} : vector<16x32xf32>, vector<32x64xf32>, vector<16x64xf32> -> vector<16x64xf32>
    %105 = arith.addf %95, %104 : vector<16x64xf32>
    %c0_33 = arith.constant 0 : index
    %c0_34 = arith.constant 0 : index
    %106 = vector.load %arg12[%c0_33, %c0_34] : memref<1x64xf32, #tpu.memory_space<vmem>>, vector<1x64xf32>
    %107 = vector.broadcast %106 : vector<1x64xf32> to vector<16x64xf32>
    %108 = arith.addf %105, %107 : vector<16x64xf32>
    %c0_35 = arith.constant 0 : index
    %c0_36 = arith.constant 0 : index
    %109 = vector.load %arg5[%c0_35, %c0_36] : memref<48x4xf32, #tpu.memory_space<vmem>>, vector<48x4xf32>
    %c0_37 = arith.constant 0 : index
    %c0_38 = arith.constant 0 : index
    %c0_39 = arith.constant 0 : index
    %110 = vector.load %arg25[%c0_37, %c0_38, %c0_39] : memref<3x64x256xf32, #tpu.memory_space<vmem>>, vector<1x64x256xf32>
    %111 = vector.shape_cast %110 : vector<1x64x256xf32> to vector<64x256xf32>
    %cst_40 = arith.constant dense<0.000000e+00> : vector<16x256xf32>
    %112 = tpu.matmul %108, %111, %cst_40 {dimension_numbers = #tpu.dot_dimension_numbers<[1], [0], [0], [1], [0, 0, 1, 1], [], []>} : vector<16x64xf32>, vector<64x256xf32>, vector<16x256xf32> -> vector<16x256xf32>
    %c0_41 = arith.constant 0 : index
    %c0_42 = arith.constant 0 : index
    %c0_43 = arith.constant 0 : index
    %113 = vector.load %arg26[%c0_41, %c0_42, %c0_43] : memref<3x1x256xf32, #tpu.memory_space<vmem>>, vector<1x1x256xf32>
    %114 = vector.shape_cast %113 : vector<1x1x256xf32> to vector<1x256xf32>
    %115 = vector.broadcast %114 : vector<1x256xf32> to vector<16x256xf32>
    %116 = arith.addf %112, %115 : vector<16x256xf32>
    %c0_44 = arith.constant 0 : index
    %c0_45 = arith.constant 0 : index
    %c0_46 = arith.constant 0 : index
    %117 = vector.load %arg27[%c0_44, %c0_45, %c0_46] : memref<3x1x256xf32, #tpu.memory_space<vmem>>, vector<1x1x256xf32>
    %118 = vector.shape_cast %117 : vector<1x1x256xf32> to vector<1x256xf32>
    %119 = vector.broadcast %118 : vector<1x256xf32> to vector<16x256xf32>
    %120 = arith.mulf %116, %119 : vector<16x256xf32>
    %cst_47 = arith.constant dense<0.000000e+00> : vector<16x4xf32>
    %121 = tpu.matmul %120, %47, %cst_47 {dimension_numbers = #tpu.dot_dimension_numbers<[1], [0], [0], [1], [0, 0, 1, 1], [], []>} : vector<16x256xf32>, vector<256x4xf32>, vector<16x4xf32> -> vector<16x4xf32>
    %c0_48 = arith.constant 0 : index
    %c0_49 = arith.constant 0 : index
    %c0_50 = arith.constant 0 : index
    %122 = vector.load %arg28[%c0_48, %c0_49, %c0_50] : memref<3x1x256xf32, #tpu.memory_space<vmem>>, vector<1x1x256xf32>
    %123 = vector.shape_cast %122 : vector<1x1x256xf32> to vector<1x256xf32>
    %124 = vector.broadcast %123 : vector<1x256xf32> to vector<16x256xf32>
    %125 = arith.mulf %116, %124 : vector<16x256xf32>
    %cst_51 = arith.constant dense<0.000000e+00> : vector<16x4xf32>
    %126 = tpu.matmul %125, %47, %cst_51 {dimension_numbers = #tpu.dot_dimension_numbers<[1], [0], [0], [1], [0, 0, 1, 1], [], []>} : vector<16x256xf32>, vector<256x4xf32>, vector<16x4xf32> -> vector<16x4xf32>
    %cst_52 = arith.constant dense<0.000000e+00> : vector<48x4xf32>
    %127 = tpu.matmul %12, %121, %cst_52 {dimension_numbers = #tpu.dot_dimension_numbers<[1], [0], [0], [1], [0, 0, 1, 1], [], []>} : vector<48x16xf32>, vector<16x4xf32>, vector<48x4xf32> -> vector<48x4xf32>
    %cst_53 = arith.constant dense<0.000000e+00> : vector<48x4xf32>
    %128 = tpu.matmul %14, %126, %cst_53 {dimension_numbers = #tpu.dot_dimension_numbers<[1], [0], [0], [1], [0, 0, 1, 1], [], []>} : vector<48x16xf32>, vector<16x4xf32>, vector<48x4xf32> -> vector<48x4xf32>
    %129 = arith.addf %127, %128 : vector<48x4xf32>
    %c0_54 = arith.constant 0 : index
    %c0_55 = arith.constant 0 : index
    %c0_56 = arith.constant 0 : index
    %130 = vector.load %arg29[%c0_54, %c0_55, %c0_56] : memref<3x4x32xf32, #tpu.memory_space<vmem>>, vector<1x4x32xf32>
    %131 = vector.shape_cast %130 : vector<1x4x32xf32> to vector<4x32xf32>
    %cst_57 = arith.constant dense<0.000000e+00> : vector<48x32xf32>
    %132 = tpu.matmul %109, %131, %cst_57 {dimension_numbers = #tpu.dot_dimension_numbers<[1], [0], [0], [1], [0, 0, 1, 1], [], []>} : vector<48x4xf32>, vector<4x32xf32>, vector<48x32xf32> -> vector<48x32xf32>
    %c0_58 = arith.constant 0 : index
    %c0_59 = arith.constant 0 : index
    %c0_60 = arith.constant 0 : index
    %133 = vector.load %arg30[%c0_58, %c0_59, %c0_60] : memref<3x1x32xf32, #tpu.memory_space<vmem>>, vector<1x1x32xf32>
    %134 = vector.shape_cast %133 : vector<1x1x32xf32> to vector<1x32xf32>
    %135 = vector.broadcast %134 : vector<1x32xf32> to vector<48x32xf32>
    %136 = arith.addf %132, %135 : vector<48x32xf32>
    %cst_61 = arith.constant 0.000000e+00 : f32
    %137 = vector.broadcast %cst_61 : f32 to vector<48x32xf32>
    %138 = arith.maximumf %136, %137 : vector<48x32xf32>
    %c0_62 = arith.constant 0 : index
    %c0_63 = arith.constant 0 : index
    %c0_64 = arith.constant 0 : index
    %139 = vector.load %arg31[%c0_62, %c0_63, %c0_64] : memref<3x32x4xf32, #tpu.memory_space<vmem>>, vector<1x32x4xf32>
    %140 = vector.shape_cast %139 : vector<1x32x4xf32> to vector<32x4xf32>
    %cst_65 = arith.constant dense<0.000000e+00> : vector<48x4xf32>
    %141 = tpu.matmul %138, %140, %cst_65 {dimension_numbers = #tpu.dot_dimension_numbers<[1], [0], [0], [1], [0, 0, 1, 1], [], []>} : vector<48x32xf32>, vector<32x4xf32>, vector<48x4xf32> -> vector<48x4xf32>
    %142 = arith.addf %129, %141 : vector<48x4xf32>
    %c0_66 = arith.constant 0 : index
    %c0_67 = arith.constant 0 : index
    %c0_68 = arith.constant 0 : index
    %143 = vector.load %arg32[%c0_66, %c0_67, %c0_68] : memref<3x1x4xf32, #tpu.memory_space<vmem>>, vector<1x1x4xf32>
    %144 = vector.shape_cast %143 : vector<1x1x4xf32> to vector<1x4xf32>
    %145 = vector.broadcast %144 : vector<1x4xf32> to vector<48x4xf32>
    %146 = arith.addf %142, %145 : vector<48x4xf32>
    %cst_69 = arith.constant 0.000000e+00 : f32
    %147 = vector.broadcast %cst_69 : f32 to vector<48x4xf32>
    %148 = arith.cmpf oge, %146, %147 : vector<48x4xf32>
    %cst_70 = arith.constant 2.000000e-01 : f32
    %149 = vector.broadcast %cst_70 : f32 to vector<48x4xf32>
    %150 = arith.mulf %149, %146 : vector<48x4xf32>
    %151 = arith.select %148, %146, %150 : vector<48x4xi1>, vector<48x4xf32>
    %cst_71 = arith.constant dense<0.000000e+00> : vector<16x4xf32>
    %152 = tpu.matmul %25, %151, %cst_71 {dimension_numbers = #tpu.dot_dimension_numbers<[0], [0], [1], [1], [0, 1, 1, 1], [], []>} : vector<48x16xf32>, vector<48x4xf32>, vector<16x4xf32> -> vector<16x4xf32>
    %153 = arith.addf %152, %34 : vector<16x4xf32>
    %cst_72 = arith.constant dense<0xFF800000> : vector<4xf32>
    %154 = vector.multi_reduction <maximumf>, %153, %cst_72 [0] : vector<16x4xf32> to vector<4xf32>
    %155 = vector.shape_cast %154 : vector<4xf32> to vector<1x4xf32>
    %156 = vector.broadcast %155 : vector<1x4xf32> to vector<16x4xf32>
    %157 = arith.subf %153, %156 : vector<16x4xf32>
    %158 = math.exp %157 : vector<16x4xf32>
    %cst_73 = arith.constant dense<0.000000e+00> : vector<4xf32>
    %159 = vector.multi_reduction <add>, %158, %cst_73 [0] : vector<16x4xf32> to vector<4xf32>
    %160 = vector.shape_cast %159 : vector<4xf32> to vector<1x4xf32>
    %161 = tpu.reciprocal %160 {approx = true} : vector<1x4xf32> -> vector<1x4xf32>
    %162 = vector.broadcast %161 : vector<1x4xf32> to vector<16x4xf32>
    %163 = arith.mulf %158, %162 : vector<16x4xf32>
    %cst_74 = arith.constant dense<0.000000e+00> : vector<48x4xf32>
    %164 = tpu.matmul %12, %163, %cst_74 {dimension_numbers = #tpu.dot_dimension_numbers<[1], [0], [0], [1], [0, 0, 1, 1], [], []>} : vector<48x16xf32>, vector<16x4xf32>, vector<48x4xf32> -> vector<48x4xf32>
    %cst_75 = arith.constant dense<0.000000e+00> : vector<48x256xf32>
    %165 = tpu.matmul %14, %116, %cst_75 {dimension_numbers = #tpu.dot_dimension_numbers<[1], [0], [0], [1], [0, 0, 1, 1], [], []>} : vector<48x16xf32>, vector<16x256xf32>, vector<48x256xf32> -> vector<48x256xf32>
    %cst_76 = arith.constant dense<0.000000e+00> : vector<48x256xf32>
    %166 = tpu.matmul %164, %60, %cst_76 {dimension_numbers = #tpu.dot_dimension_numbers<[1], [0], [0], [1], [0, 0, 1, 1], [], []>} : vector<48x4xf32>, vector<4x256xf32>, vector<48x256xf32> -> vector<48x256xf32>
    %167 = arith.mulf %165, %166 : vector<48x256xf32>
    %cst_77 = arith.constant dense<0.000000e+00> : vector<16x256xf32>
    %168 = tpu.matmul %12, %167, %cst_77 {dimension_numbers = #tpu.dot_dimension_numbers<[0], [0], [1], [1], [0, 1, 1, 1], [], []>} : vector<48x16xf32>, vector<48x256xf32>, vector<16x256xf32> -> vector<16x256xf32>
    %cst_78 = arith.constant dense<0.000000e+00> : vector<16x64xf32>
    %169 = tpu.matmul %168, %89, %cst_78 {dimension_numbers = #tpu.dot_dimension_numbers<[1], [0], [0], [1], [0, 0, 1, 1], [], []>} : vector<16x256xf32>, vector<256x64xf32>, vector<16x64xf32> -> vector<16x64xf32>
    %170 = arith.addf %169, %108 : vector<16x64xf32>
    %cst_79 = arith.constant 0.000000e+00 : f32
    %171 = vector.broadcast %cst_79 : f32 to vector<16x64xf32>
    %172 = arith.maximumf %170, %171 : vector<16x64xf32>
    %c1 = arith.constant 1 : index
    %c0_80 = arith.constant 0 : index
    %c0_81 = arith.constant 0 : index
    %173 = vector.load %arg25[%c1, %c0_80, %c0_81] : memref<3x64x256xf32, #tpu.memory_space<vmem>>, vector<1x64x256xf32>
    %174 = vector.shape_cast %173 : vector<1x64x256xf32> to vector<64x256xf32>
    %cst_82 = arith.constant dense<0.000000e+00> : vector<16x256xf32>
    %175 = tpu.matmul %172, %174, %cst_82 {dimension_numbers = #tpu.dot_dimension_numbers<[1], [0], [0], [1], [0, 0, 1, 1], [], []>} : vector<16x64xf32>, vector<64x256xf32>, vector<16x256xf32> -> vector<16x256xf32>
    %c1_83 = arith.constant 1 : index
    %c0_84 = arith.constant 0 : index
    %c0_85 = arith.constant 0 : index
    %176 = vector.load %arg26[%c1_83, %c0_84, %c0_85] : memref<3x1x256xf32, #tpu.memory_space<vmem>>, vector<1x1x256xf32>
    %177 = vector.shape_cast %176 : vector<1x1x256xf32> to vector<1x256xf32>
    %178 = vector.broadcast %177 : vector<1x256xf32> to vector<16x256xf32>
    %179 = arith.addf %175, %178 : vector<16x256xf32>
    %c1_86 = arith.constant 1 : index
    %c0_87 = arith.constant 0 : index
    %c0_88 = arith.constant 0 : index
    %180 = vector.load %arg27[%c1_86, %c0_87, %c0_88] : memref<3x1x256xf32, #tpu.memory_space<vmem>>, vector<1x1x256xf32>
    %181 = vector.shape_cast %180 : vector<1x1x256xf32> to vector<1x256xf32>
    %182 = vector.broadcast %181 : vector<1x256xf32> to vector<16x256xf32>
    %183 = arith.mulf %179, %182 : vector<16x256xf32>
    %cst_89 = arith.constant dense<0.000000e+00> : vector<16x4xf32>
    %184 = tpu.matmul %183, %47, %cst_89 {dimension_numbers = #tpu.dot_dimension_numbers<[1], [0], [0], [1], [0, 0, 1, 1], [], []>} : vector<16x256xf32>, vector<256x4xf32>, vector<16x4xf32> -> vector<16x4xf32>
    %c1_90 = arith.constant 1 : index
    %c0_91 = arith.constant 0 : index
    %c0_92 = arith.constant 0 : index
    %185 = vector.load %arg28[%c1_90, %c0_91, %c0_92] : memref<3x1x256xf32, #tpu.memory_space<vmem>>, vector<1x1x256xf32>
    %186 = vector.shape_cast %185 : vector<1x1x256xf32> to vector<1x256xf32>
    %187 = vector.broadcast %186 : vector<1x256xf32> to vector<16x256xf32>
    %188 = arith.mulf %179, %187 : vector<16x256xf32>
    %cst_93 = arith.constant dense<0.000000e+00> : vector<16x4xf32>
    %189 = tpu.matmul %188, %47, %cst_93 {dimension_numbers = #tpu.dot_dimension_numbers<[1], [0], [0], [1], [0, 0, 1, 1], [], []>} : vector<16x256xf32>, vector<256x4xf32>, vector<16x4xf32> -> vector<16x4xf32>
    %cst_94 = arith.constant dense<0.000000e+00> : vector<48x4xf32>
    %190 = tpu.matmul %12, %184, %cst_94 {dimension_numbers = #tpu.dot_dimension_numbers<[1], [0], [0], [1], [0, 0, 1, 1], [], []>} : vector<48x16xf32>, vector<16x4xf32>, vector<48x4xf32> -> vector<48x4xf32>
    %cst_95 = arith.constant dense<0.000000e+00> : vector<48x4xf32>
    %191 = tpu.matmul %14, %189, %cst_95 {dimension_numbers = #tpu.dot_dimension_numbers<[1], [0], [0], [1], [0, 0, 1, 1], [], []>} : vector<48x16xf32>, vector<16x4xf32>, vector<48x4xf32> -> vector<48x4xf32>
    %192 = arith.addf %190, %191 : vector<48x4xf32>
    %c1_96 = arith.constant 1 : index
    %c0_97 = arith.constant 0 : index
    %c0_98 = arith.constant 0 : index
    %193 = vector.load %arg29[%c1_96, %c0_97, %c0_98] : memref<3x4x32xf32, #tpu.memory_space<vmem>>, vector<1x4x32xf32>
    %194 = vector.shape_cast %193 : vector<1x4x32xf32> to vector<4x32xf32>
    %cst_99 = arith.constant dense<0.000000e+00> : vector<48x32xf32>
    %195 = tpu.matmul %109, %194, %cst_99 {dimension_numbers = #tpu.dot_dimension_numbers<[1], [0], [0], [1], [0, 0, 1, 1], [], []>} : vector<48x4xf32>, vector<4x32xf32>, vector<48x32xf32> -> vector<48x32xf32>
    %c1_100 = arith.constant 1 : index
    %c0_101 = arith.constant 0 : index
    %c0_102 = arith.constant 0 : index
    %196 = vector.load %arg30[%c1_100, %c0_101, %c0_102] : memref<3x1x32xf32, #tpu.memory_space<vmem>>, vector<1x1x32xf32>
    %197 = vector.shape_cast %196 : vector<1x1x32xf32> to vector<1x32xf32>
    %198 = vector.broadcast %197 : vector<1x32xf32> to vector<48x32xf32>
    %199 = arith.addf %195, %198 : vector<48x32xf32>
    %cst_103 = arith.constant 0.000000e+00 : f32
    %200 = vector.broadcast %cst_103 : f32 to vector<48x32xf32>
    %201 = arith.maximumf %199, %200 : vector<48x32xf32>
    %c1_104 = arith.constant 1 : index
    %c0_105 = arith.constant 0 : index
    %c0_106 = arith.constant 0 : index
    %202 = vector.load %arg31[%c1_104, %c0_105, %c0_106] : memref<3x32x4xf32, #tpu.memory_space<vmem>>, vector<1x32x4xf32>
    %203 = vector.shape_cast %202 : vector<1x32x4xf32> to vector<32x4xf32>
    %cst_107 = arith.constant dense<0.000000e+00> : vector<48x4xf32>
    %204 = tpu.matmul %201, %203, %cst_107 {dimension_numbers = #tpu.dot_dimension_numbers<[1], [0], [0], [1], [0, 0, 1, 1], [], []>} : vector<48x32xf32>, vector<32x4xf32>, vector<48x4xf32> -> vector<48x4xf32>
    %205 = arith.addf %192, %204 : vector<48x4xf32>
    %c1_108 = arith.constant 1 : index
    %c0_109 = arith.constant 0 : index
    %c0_110 = arith.constant 0 : index
    %206 = vector.load %arg32[%c1_108, %c0_109, %c0_110] : memref<3x1x4xf32, #tpu.memory_space<vmem>>, vector<1x1x4xf32>
    %207 = vector.shape_cast %206 : vector<1x1x4xf32> to vector<1x4xf32>
    %208 = vector.broadcast %207 : vector<1x4xf32> to vector<48x4xf32>
    %209 = arith.addf %205, %208 : vector<48x4xf32>
    %cst_111 = arith.constant 0.000000e+00 : f32
    %210 = vector.broadcast %cst_111 : f32 to vector<48x4xf32>
    %211 = arith.cmpf oge, %209, %210 : vector<48x4xf32>
    %cst_112 = arith.constant 2.000000e-01 : f32
    %212 = vector.broadcast %cst_112 : f32 to vector<48x4xf32>
    %213 = arith.mulf %212, %209 : vector<48x4xf32>
    %214 = arith.select %211, %209, %213 : vector<48x4xi1>, vector<48x4xf32>
    %cst_113 = arith.constant dense<0.000000e+00> : vector<16x4xf32>
    %215 = tpu.matmul %25, %214, %cst_113 {dimension_numbers = #tpu.dot_dimension_numbers<[0], [0], [1], [1], [0, 1, 1, 1], [], []>} : vector<48x16xf32>, vector<48x4xf32>, vector<16x4xf32> -> vector<16x4xf32>
    %216 = arith.addf %215, %34 : vector<16x4xf32>
    %cst_114 = arith.constant dense<0xFF800000> : vector<4xf32>
    %217 = vector.multi_reduction <maximumf>, %216, %cst_114 [0] : vector<16x4xf32> to vector<4xf32>
    %218 = vector.shape_cast %217 : vector<4xf32> to vector<1x4xf32>
    %219 = vector.broadcast %218 : vector<1x4xf32> to vector<16x4xf32>
    %220 = arith.subf %216, %219 : vector<16x4xf32>
    %221 = math.exp %220 : vector<16x4xf32>
    %cst_115 = arith.constant dense<0.000000e+00> : vector<4xf32>
    %222 = vector.multi_reduction <add>, %221, %cst_115 [0] : vector<16x4xf32> to vector<4xf32>
    %223 = vector.shape_cast %222 : vector<4xf32> to vector<1x4xf32>
    %224 = tpu.reciprocal %223 {approx = true} : vector<1x4xf32> -> vector<1x4xf32>
    %225 = vector.broadcast %224 : vector<1x4xf32> to vector<16x4xf32>
    %226 = arith.mulf %221, %225 : vector<16x4xf32>
    %cst_116 = arith.constant dense<0.000000e+00> : vector<48x4xf32>
    %227 = tpu.matmul %12, %226, %cst_116 {dimension_numbers = #tpu.dot_dimension_numbers<[1], [0], [0], [1], [0, 0, 1, 1], [], []>} : vector<48x16xf32>, vector<16x4xf32>, vector<48x4xf32> -> vector<48x4xf32>
    %cst_117 = arith.constant dense<0.000000e+00> : vector<48x256xf32>
    %228 = tpu.matmul %14, %179, %cst_117 {dimension_numbers = #tpu.dot_dimension_numbers<[1], [0], [0], [1], [0, 0, 1, 1], [], []>} : vector<48x16xf32>, vector<16x256xf32>, vector<48x256xf32> -> vector<48x256xf32>
    %cst_118 = arith.constant dense<0.000000e+00> : vector<48x256xf32>
    %229 = tpu.matmul %227, %60, %cst_118 {dimension_numbers = #tpu.dot_dimension_numbers<[1], [0], [0], [1], [0, 0, 1, 1], [], []>} : vector<48x4xf32>, vector<4x256xf32>, vector<48x256xf32> -> vector<48x256xf32>
    %230 = arith.mulf %228, %229 : vector<48x256xf32>
    %cst_119 = arith.constant dense<0.000000e+00> : vector<16x256xf32>
    %231 = tpu.matmul %12, %230, %cst_119 {dimension_numbers = #tpu.dot_dimension_numbers<[0], [0], [1], [1], [0, 1, 1, 1], [], []>} : vector<48x16xf32>, vector<48x256xf32>, vector<16x256xf32> -> vector<16x256xf32>
    %cst_120 = arith.constant dense<0.000000e+00> : vector<16x64xf32>
    %232 = tpu.matmul %231, %89, %cst_120 {dimension_numbers = #tpu.dot_dimension_numbers<[1], [0], [0], [1], [0, 0, 1, 1], [], []>} : vector<16x256xf32>, vector<256x64xf32>, vector<16x64xf32> -> vector<16x64xf32>
    %233 = arith.addf %232, %172 : vector<16x64xf32>
    %cst_121 = arith.constant 0.000000e+00 : f32
    %234 = vector.broadcast %cst_121 : f32 to vector<16x64xf32>
    %235 = arith.maximumf %233, %234 : vector<16x64xf32>
    %c2 = arith.constant 2 : index
    %c0_122 = arith.constant 0 : index
    %c0_123 = arith.constant 0 : index
    %236 = vector.load %arg25[%c2, %c0_122, %c0_123] : memref<3x64x256xf32, #tpu.memory_space<vmem>>, vector<1x64x256xf32>
    %237 = vector.shape_cast %236 : vector<1x64x256xf32> to vector<64x256xf32>
    %cst_124 = arith.constant dense<0.000000e+00> : vector<16x256xf32>
    %238 = tpu.matmul %235, %237, %cst_124 {dimension_numbers = #tpu.dot_dimension_numbers<[1], [0], [0], [1], [0, 0, 1, 1], [], []>} : vector<16x64xf32>, vector<64x256xf32>, vector<16x256xf32> -> vector<16x256xf32>
    %c2_125 = arith.constant 2 : index
    %c0_126 = arith.constant 0 : index
    %c0_127 = arith.constant 0 : index
    %239 = vector.load %arg26[%c2_125, %c0_126, %c0_127] : memref<3x1x256xf32, #tpu.memory_space<vmem>>, vector<1x1x256xf32>
    %240 = vector.shape_cast %239 : vector<1x1x256xf32> to vector<1x256xf32>
    %241 = vector.broadcast %240 : vector<1x256xf32> to vector<16x256xf32>
    %242 = arith.addf %238, %241 : vector<16x256xf32>
    %c2_128 = arith.constant 2 : index
    %c0_129 = arith.constant 0 : index
    %c0_130 = arith.constant 0 : index
    %243 = vector.load %arg27[%c2_128, %c0_129, %c0_130] : memref<3x1x256xf32, #tpu.memory_space<vmem>>, vector<1x1x256xf32>
    %244 = vector.shape_cast %243 : vector<1x1x256xf32> to vector<1x256xf32>
    %245 = vector.broadcast %244 : vector<1x256xf32> to vector<16x256xf32>
    %246 = arith.mulf %242, %245 : vector<16x256xf32>
    %cst_131 = arith.constant dense<0.000000e+00> : vector<16x4xf32>
    %247 = tpu.matmul %246, %47, %cst_131 {dimension_numbers = #tpu.dot_dimension_numbers<[1], [0], [0], [1], [0, 0, 1, 1], [], []>} : vector<16x256xf32>, vector<256x4xf32>, vector<16x4xf32> -> vector<16x4xf32>
    %c2_132 = arith.constant 2 : index
    %c0_133 = arith.constant 0 : index
    %c0_134 = arith.constant 0 : index
    %248 = vector.load %arg28[%c2_132, %c0_133, %c0_134] : memref<3x1x256xf32, #tpu.memory_space<vmem>>, vector<1x1x256xf32>
    %249 = vector.shape_cast %248 : vector<1x1x256xf32> to vector<1x256xf32>
    %250 = vector.broadcast %249 : vector<1x256xf32> to vector<16x256xf32>
    %251 = arith.mulf %242, %250 : vector<16x256xf32>
    %cst_135 = arith.constant dense<0.000000e+00> : vector<16x4xf32>
    %252 = tpu.matmul %251, %47, %cst_135 {dimension_numbers = #tpu.dot_dimension_numbers<[1], [0], [0], [1], [0, 0, 1, 1], [], []>} : vector<16x256xf32>, vector<256x4xf32>, vector<16x4xf32> -> vector<16x4xf32>
    %cst_136 = arith.constant dense<0.000000e+00> : vector<48x4xf32>
    %253 = tpu.matmul %12, %247, %cst_136 {dimension_numbers = #tpu.dot_dimension_numbers<[1], [0], [0], [1], [0, 0, 1, 1], [], []>} : vector<48x16xf32>, vector<16x4xf32>, vector<48x4xf32> -> vector<48x4xf32>
    %cst_137 = arith.constant dense<0.000000e+00> : vector<48x4xf32>
    %254 = tpu.matmul %14, %252, %cst_137 {dimension_numbers = #tpu.dot_dimension_numbers<[1], [0], [0], [1], [0, 0, 1, 1], [], []>} : vector<48x16xf32>, vector<16x4xf32>, vector<48x4xf32> -> vector<48x4xf32>
    %255 = arith.addf %253, %254 : vector<48x4xf32>
    %c2_138 = arith.constant 2 : index
    %c0_139 = arith.constant 0 : index
    %c0_140 = arith.constant 0 : index
    %256 = vector.load %arg29[%c2_138, %c0_139, %c0_140] : memref<3x4x32xf32, #tpu.memory_space<vmem>>, vector<1x4x32xf32>
    %257 = vector.shape_cast %256 : vector<1x4x32xf32> to vector<4x32xf32>
    %cst_141 = arith.constant dense<0.000000e+00> : vector<48x32xf32>
    %258 = tpu.matmul %109, %257, %cst_141 {dimension_numbers = #tpu.dot_dimension_numbers<[1], [0], [0], [1], [0, 0, 1, 1], [], []>} : vector<48x4xf32>, vector<4x32xf32>, vector<48x32xf32> -> vector<48x32xf32>
    %c2_142 = arith.constant 2 : index
    %c0_143 = arith.constant 0 : index
    %c0_144 = arith.constant 0 : index
    %259 = vector.load %arg30[%c2_142, %c0_143, %c0_144] : memref<3x1x32xf32, #tpu.memory_space<vmem>>, vector<1x1x32xf32>
    %260 = vector.shape_cast %259 : vector<1x1x32xf32> to vector<1x32xf32>
    %261 = vector.broadcast %260 : vector<1x32xf32> to vector<48x32xf32>
    %262 = arith.addf %258, %261 : vector<48x32xf32>
    %cst_145 = arith.constant 0.000000e+00 : f32
    %263 = vector.broadcast %cst_145 : f32 to vector<48x32xf32>
    %264 = arith.maximumf %262, %263 : vector<48x32xf32>
    %c2_146 = arith.constant 2 : index
    %c0_147 = arith.constant 0 : index
    %c0_148 = arith.constant 0 : index
    %265 = vector.load %arg31[%c2_146, %c0_147, %c0_148] : memref<3x32x4xf32, #tpu.memory_space<vmem>>, vector<1x32x4xf32>
    %266 = vector.shape_cast %265 : vector<1x32x4xf32> to vector<32x4xf32>
    %cst_149 = arith.constant dense<0.000000e+00> : vector<48x4xf32>
    %267 = tpu.matmul %264, %266, %cst_149 {dimension_numbers = #tpu.dot_dimension_numbers<[1], [0], [0], [1], [0, 0, 1, 1], [], []>} : vector<48x32xf32>, vector<32x4xf32>, vector<48x4xf32> -> vector<48x4xf32>
    %268 = arith.addf %255, %267 : vector<48x4xf32>
    %c2_150 = arith.constant 2 : index
    %c0_151 = arith.constant 0 : index
    %c0_152 = arith.constant 0 : index
    %269 = vector.load %arg32[%c2_150, %c0_151, %c0_152] : memref<3x1x4xf32, #tpu.memory_space<vmem>>, vector<1x1x4xf32>
    %270 = vector.shape_cast %269 : vector<1x1x4xf32> to vector<1x4xf32>
    %271 = vector.broadcast %270 : vector<1x4xf32> to vector<48x4xf32>
    %272 = arith.addf %268, %271 : vector<48x4xf32>
    %cst_153 = arith.constant 0.000000e+00 : f32
    %273 = vector.broadcast %cst_153 : f32 to vector<48x4xf32>
    %274 = arith.cmpf oge, %272, %273 : vector<48x4xf32>
    %cst_154 = arith.constant 2.000000e-01 : f32
    %275 = vector.broadcast %cst_154 : f32 to vector<48x4xf32>
    %276 = arith.mulf %275, %272 : vector<48x4xf32>
    %277 = arith.select %274, %272, %276 : vector<48x4xi1>, vector<48x4xf32>
    %cst_155 = arith.constant dense<0.000000e+00> : vector<16x4xf32>
    %278 = tpu.matmul %25, %277, %cst_155 {dimension_numbers = #tpu.dot_dimension_numbers<[0], [0], [1], [1], [0, 1, 1, 1], [], []>} : vector<48x16xf32>, vector<48x4xf32>, vector<16x4xf32> -> vector<16x4xf32>
    %279 = arith.addf %278, %34 : vector<16x4xf32>
    %cst_156 = arith.constant dense<0xFF800000> : vector<4xf32>
    %280 = vector.multi_reduction <maximumf>, %279, %cst_156 [0] : vector<16x4xf32> to vector<4xf32>
    %281 = vector.shape_cast %280 : vector<4xf32> to vector<1x4xf32>
    %282 = vector.broadcast %281 : vector<1x4xf32> to vector<16x4xf32>
    %283 = arith.subf %279, %282 : vector<16x4xf32>
    %284 = math.exp %283 : vector<16x4xf32>
    %cst_157 = arith.constant dense<0.000000e+00> : vector<4xf32>
    %285 = vector.multi_reduction <add>, %284, %cst_157 [0] : vector<16x4xf32> to vector<4xf32>
    %286 = vector.shape_cast %285 : vector<4xf32> to vector<1x4xf32>
    %287 = tpu.reciprocal %286 {approx = true} : vector<1x4xf32> -> vector<1x4xf32>
    %288 = vector.broadcast %287 : vector<1x4xf32> to vector<16x4xf32>
    %289 = arith.mulf %284, %288 : vector<16x4xf32>
    %cst_158 = arith.constant dense<0.000000e+00> : vector<48x4xf32>
    %290 = tpu.matmul %12, %289, %cst_158 {dimension_numbers = #tpu.dot_dimension_numbers<[1], [0], [0], [1], [0, 0, 1, 1], [], []>} : vector<48x16xf32>, vector<16x4xf32>, vector<48x4xf32> -> vector<48x4xf32>
    %cst_159 = arith.constant dense<0.000000e+00> : vector<48x256xf32>
    %291 = tpu.matmul %14, %242, %cst_159 {dimension_numbers = #tpu.dot_dimension_numbers<[1], [0], [0], [1], [0, 0, 1, 1], [], []>} : vector<48x16xf32>, vector<16x256xf32>, vector<48x256xf32> -> vector<48x256xf32>
    %cst_160 = arith.constant dense<0.000000e+00> : vector<48x256xf32>
    %292 = tpu.matmul %290, %60, %cst_160 {dimension_numbers = #tpu.dot_dimension_numbers<[1], [0], [0], [1], [0, 0, 1, 1], [], []>} : vector<48x4xf32>, vector<4x256xf32>, vector<48x256xf32> -> vector<48x256xf32>
    %293 = arith.mulf %291, %292 : vector<48x256xf32>
    %cst_161 = arith.constant dense<0.000000e+00> : vector<16x256xf32>
    %294 = tpu.matmul %12, %293, %cst_161 {dimension_numbers = #tpu.dot_dimension_numbers<[0], [0], [1], [1], [0, 1, 1, 1], [], []>} : vector<48x16xf32>, vector<48x256xf32>, vector<16x256xf32> -> vector<16x256xf32>
    %cst_162 = arith.constant dense<0.000000e+00> : vector<16x64xf32>
    %295 = tpu.matmul %294, %89, %cst_162 {dimension_numbers = #tpu.dot_dimension_numbers<[1], [0], [0], [1], [0, 0, 1, 1], [], []>} : vector<16x256xf32>, vector<256x64xf32>, vector<16x64xf32> -> vector<16x64xf32>
    %296 = arith.addf %295, %235 : vector<16x64xf32>
    %cst_163 = arith.constant 0.000000e+00 : f32
    %297 = vector.broadcast %cst_163 : f32 to vector<16x64xf32>
    %298 = arith.maximumf %296, %297 : vector<16x64xf32>
    %c0_164 = arith.constant 0 : index
    %c0_165 = arith.constant 0 : index
    %299 = vector.load %arg4[%c0_164, %c0_165] : memref<16x1xf32, #tpu.memory_space<vmem>>, vector<16x1xf32>
    %c0_166 = arith.constant 0 : index
    %c0_167 = arith.constant 0 : index
    %300 = vector.load %arg13[%c0_166, %c0_167] : memref<1x64xf32, #tpu.memory_space<vmem>>, vector<1x64xf32>
    %301 = vector.broadcast %299 : vector<16x1xf32> to vector<16x64xf32>
    %302 = vector.broadcast %300 : vector<1x64xf32> to vector<16x64xf32>
    %303 = arith.mulf %301, %302 : vector<16x64xf32>
    %c0_168 = arith.constant 0 : index
    %c0_169 = arith.constant 0 : index
    %304 = vector.load %arg14[%c0_168, %c0_169] : memref<1x64xf32, #tpu.memory_space<vmem>>, vector<1x64xf32>
    %305 = vector.broadcast %304 : vector<1x64xf32> to vector<16x64xf32>
    %306 = arith.addf %303, %305 : vector<16x64xf32>
    %cst_170 = arith.constant 0.000000e+00 : f32
    %307 = vector.broadcast %cst_170 : f32 to vector<16x64xf32>
    %308 = arith.maximumf %306, %307 : vector<16x64xf32>
    %c0_171 = arith.constant 0 : index
    %c0_172 = arith.constant 0 : index
    %309 = vector.load %arg6[%c0_171, %c0_172] : memref<16x16xf32, #tpu.memory_space<vmem>>, vector<16x16xf32>
    %cst_173 = arith.constant dense<0.000000e+00> : vector<16xf32>
    %310 = vector.multi_reduction <add>, %309, %cst_173 [1] : vector<16x16xf32> to vector<16xf32>
    %311 = vector.shape_cast %310 : vector<16xf32> to vector<16x1xf32>
    %cst_174 = arith.constant 1.600000e+01 : f32
    %312 = vector.broadcast %cst_174 : f32 to vector<16x1xf32>
    %313 = arith.divf %311, %312 : vector<16x1xf32>
    %c0_175 = arith.constant 0 : index
    %c0_176 = arith.constant 0 : index
    %314 = vector.load %arg15[%c0_175, %c0_176] : memref<1x64xf32, #tpu.memory_space<vmem>>, vector<1x64xf32>
    %315 = vector.broadcast %313 : vector<16x1xf32> to vector<16x64xf32>
    %316 = vector.broadcast %314 : vector<1x64xf32> to vector<16x64xf32>
    %317 = arith.mulf %315, %316 : vector<16x64xf32>
    %c0_177 = arith.constant 0 : index
    %c0_178 = arith.constant 0 : index
    %318 = vector.load %arg16[%c0_177, %c0_178] : memref<1x64xf32, #tpu.memory_space<vmem>>, vector<1x64xf32>
    %319 = vector.broadcast %318 : vector<1x64xf32> to vector<16x64xf32>
    %320 = arith.addf %317, %319 : vector<16x64xf32>
    %cst_179 = arith.constant 0.000000e+00 : f32
    %321 = vector.broadcast %cst_179 : f32 to vector<16x64xf32>
    %322 = arith.maximumf %320, %321 : vector<16x64xf32>
    %c0_180 = arith.constant 0 : index
    %c0_181 = arith.constant 0 : index
    %c0_182 = arith.constant 0 : index
    %323 = vector.load %arg17[%c0_180, %c0_181, %c0_182] : memref<3x64x64xf32, #tpu.memory_space<vmem>>, vector<1x64x64xf32>
    %324 = vector.shape_cast %323 : vector<1x64x64xf32> to vector<64x64xf32>
    %cst_183 = arith.constant dense<0.000000e+00> : vector<16x64xf32>
    %325 = tpu.matmul %298, %324, %cst_183 {dimension_numbers = #tpu.dot_dimension_numbers<[1], [0], [0], [1], [0, 0, 1, 1], [], []>} : vector<16x64xf32>, vector<64x64xf32>, vector<16x64xf32> -> vector<16x64xf32>
    %c1_184 = arith.constant 1 : index
    %c0_185 = arith.constant 0 : index
    %c0_186 = arith.constant 0 : index
    %326 = vector.load %arg17[%c1_184, %c0_185, %c0_186] : memref<3x64x64xf32, #tpu.memory_space<vmem>>, vector<1x64x64xf32>
    %327 = vector.shape_cast %326 : vector<1x64x64xf32> to vector<64x64xf32>
    %cst_187 = arith.constant dense<0.000000e+00> : vector<16x64xf32>
    %328 = tpu.matmul %308, %327, %cst_187 {dimension_numbers = #tpu.dot_dimension_numbers<[1], [0], [0], [1], [0, 0, 1, 1], [], []>} : vector<16x64xf32>, vector<64x64xf32>, vector<16x64xf32> -> vector<16x64xf32>
    %329 = arith.addf %325, %328 : vector<16x64xf32>
    %c2_188 = arith.constant 2 : index
    %c0_189 = arith.constant 0 : index
    %c0_190 = arith.constant 0 : index
    %330 = vector.load %arg17[%c2_188, %c0_189, %c0_190] : memref<3x64x64xf32, #tpu.memory_space<vmem>>, vector<1x64x64xf32>
    %331 = vector.shape_cast %330 : vector<1x64x64xf32> to vector<64x64xf32>
    %cst_191 = arith.constant dense<0.000000e+00> : vector<16x64xf32>
    %332 = tpu.matmul %322, %331, %cst_191 {dimension_numbers = #tpu.dot_dimension_numbers<[1], [0], [0], [1], [0, 0, 1, 1], [], []>} : vector<16x64xf32>, vector<64x64xf32>, vector<16x64xf32> -> vector<16x64xf32>
    %333 = arith.addf %329, %332 : vector<16x64xf32>
    %c0_192 = arith.constant 0 : index
    %c0_193 = arith.constant 0 : index
    %334 = vector.load %arg18[%c0_192, %c0_193] : memref<1x64xf32, #tpu.memory_space<vmem>>, vector<1x64xf32>
    %335 = vector.broadcast %334 : vector<1x64xf32> to vector<16x64xf32>
    %336 = arith.addf %333, %335 : vector<16x64xf32>
    %cst_194 = arith.constant 0.000000e+00 : f32
    %337 = vector.broadcast %cst_194 : f32 to vector<16x64xf32>
    %338 = arith.maximumf %336, %337 : vector<16x64xf32>
    %c0_195 = arith.constant 0 : index
    %c0_196 = arith.constant 0 : index
    %339 = vector.load %arg19[%c0_195, %c0_196] : memref<64x64xf32, #tpu.memory_space<vmem>>, vector<64x64xf32>
    %cst_197 = arith.constant dense<0.000000e+00> : vector<16x64xf32>
    %340 = tpu.matmul %338, %339, %cst_197 {dimension_numbers = #tpu.dot_dimension_numbers<[1], [0], [0], [1], [0, 0, 1, 1], [], []>} : vector<16x64xf32>, vector<64x64xf32>, vector<16x64xf32> -> vector<16x64xf32>
    %c0_198 = arith.constant 0 : index
    %c0_199 = arith.constant 0 : index
    %341 = vector.load %arg20[%c0_198, %c0_199] : memref<1x64xf32, #tpu.memory_space<vmem>>, vector<1x64xf32>
    %342 = vector.broadcast %341 : vector<1x64xf32> to vector<16x64xf32>
    %343 = arith.addf %340, %342 : vector<16x64xf32>
    %cst_200 = arith.constant 0.000000e+00 : f32
    %344 = vector.broadcast %cst_200 : f32 to vector<16x64xf32>
    %345 = arith.maximumf %343, %344 : vector<16x64xf32>
    %c0_201 = arith.constant 0 : index
    %c0_202 = arith.constant 0 : index
    %346 = vector.load %arg21[%c0_201, %c0_202] : memref<64x32xf32, #tpu.memory_space<vmem>>, vector<64x32xf32>
    %cst_203 = arith.constant dense<0.000000e+00> : vector<16x32xf32>
    %347 = tpu.matmul %345, %346, %cst_203 {dimension_numbers = #tpu.dot_dimension_numbers<[1], [0], [0], [1], [0, 0, 1, 1], [], []>} : vector<16x64xf32>, vector<64x32xf32>, vector<16x32xf32> -> vector<16x32xf32>
    %c0_204 = arith.constant 0 : index
    %c0_205 = arith.constant 0 : index
    %348 = vector.load %arg22[%c0_204, %c0_205] : memref<1x32xf32, #tpu.memory_space<vmem>>, vector<1x32xf32>
    %349 = vector.broadcast %348 : vector<1x32xf32> to vector<16x32xf32>
    %350 = arith.addf %347, %349 : vector<16x32xf32>
    %cst_206 = arith.constant 0.000000e+00 : f32
    %351 = vector.broadcast %cst_206 : f32 to vector<16x32xf32>
    %352 = arith.maximumf %350, %351 : vector<16x32xf32>
    %c0_207 = arith.constant 0 : index
    %c0_208 = arith.constant 0 : index
    %353 = vector.load %arg23[%c0_207, %c0_208] : memref<32x1xf32, #tpu.memory_space<vmem>>, vector<32x1xf32>
    %cst_209 = arith.constant dense<0.000000e+00> : vector<16x1xf32>
    %354 = tpu.matmul %352, %353, %cst_209 {dimension_numbers = #tpu.dot_dimension_numbers<[1], [0], [0], [1], [0, 0, 1, 1], [], []>} : vector<16x32xf32>, vector<32x1xf32>, vector<16x1xf32> -> vector<16x1xf32>
    %c0_210 = arith.constant 0 : index
    %c0_211 = arith.constant 0 : index
    %355 = vector.load %arg24[%c0_210, %c0_211] : memref<1x1xf32, #tpu.memory_space<vmem>>, vector<1x1xf32>
    %356 = vector.broadcast %355 : vector<1x1xf32> to vector<16x1xf32>
    %357 = arith.addf %354, %356 : vector<16x1xf32>
    %cst_212 = arith.constant 0.000000e+00 : f32
    %358 = vector.broadcast %cst_212 : f32 to vector<16x1xf32>
    %359 = arith.subf %358, %357 : vector<16x1xf32>
    %360 = math.exp %359 : vector<16x1xf32>
    %cst_213 = arith.constant 1.000000e+00 : f32
    %361 = vector.broadcast %cst_213 : f32 to vector<16x1xf32>
    %362 = arith.addf %361, %360 : vector<16x1xf32>
    %cst_214 = arith.constant 1.000000e+00 : f32
    %363 = vector.broadcast %cst_214 : f32 to vector<16x1xf32>
    %364 = arith.divf %363, %362 : vector<16x1xf32>
    %c0_215 = arith.constant 0 : index
    %c0_216 = arith.constant 0 : index
    %365 = vector.load %arg33[%c0_215, %c0_216] : memref<16x1xf32, #tpu.memory_space<vmem>>, vector<16x1xf32>
    tpu.vector_store %arg33[%c0_215, %c0_216], %364 {strides = array<i32>} : memref<16x1xf32, #tpu.memory_space<vmem>>, vector<16x1xf32>,
    return
  }
  func.func @transform_0(%arg0: i32) -> (i32, i32) {
    %c0_i32 = arith.constant 0 : i32
    %c0_i32_0 = arith.constant 0 : i32
    %c0_i32_1 = arith.constant 0 : i32
    return %c0_i32, %c0_i32_0 : i32, i32
  }
  func.func @transform_1(%arg0: i32) -> (i32, i32) {
    %c0_i32 = arith.constant 0 : i32
    %c0_i32_0 = arith.constant 0 : i32
    %c0_i32_1 = arith.constant 0 : i32
    return %c0_i32, %c0_i32_0 : i32, i32
  }
  func.func @transform_2(%arg0: i32) -> (i32, i32) {
    %c0_i32 = arith.constant 0 : i32
    %c0_i32_0 = arith.constant 0 : i32
    %c0_i32_1 = arith.constant 0 : i32
    return %c0_i32, %c0_i32_0 : i32, i32
  }
  func.func @transform_3(%arg0: i32) -> (i32, i32) {
    %c0_i32 = arith.constant 0 : i32
    %c0_i32_0 = arith.constant 0 : i32
    %c0_i32_1 = arith.constant 0 : i32
    return %c0_i32, %c0_i32_0 : i32, i32
  }
  func.func @transform_4(%arg0: i32) -> (i32, i32) {
    %c0_i32 = arith.constant 0 : i32
    %c0_i32_0 = arith.constant 0 : i32
    %c0_i32_1 = arith.constant 0 : i32
    return %c0_i32, %c0_i32_0 : i32, i32
  }
  func.func @transform_5(%arg0: i32) -> (i32, i32) {
    %c0_i32 = arith.constant 0 : i32
    %c0_i32_0 = arith.constant 0 : i32
    %c0_i32_1 = arith.constant 0 : i32
    return %c0_i32, %c0_i32_0 : i32, i32
  }
  func.func @transform_6(%arg0: i32) -> (i32, i32) {
    %c0_i32 = arith.constant 0 : i32
    %c0_i32_0 = arith.constant 0 : i32
    %c0_i32_1 = arith.constant 0 : i32
    return %c0_i32, %c0_i32_0 : i32, i32
  }
  func.func @transform_7(%arg0: i32) -> (i32, i32) {
    %c0_i32 = arith.constant 0 : i32
    %c0_i32_0 = arith.constant 0 : i32
    %c0_i32_1 = arith.constant 0 : i32
    return %c0_i32, %c0_i32_0 : i32, i32
  }
  func.func @transform_8(%arg0: i32) -> (i32, i32) {
    %c0_i32 = arith.constant 0 : i32
    %c0_i32_0 = arith.constant 0 : i32
    %c0_i32_1 = arith.constant 0 : i32
    return %c0_i32, %c0_i32_0 : i32, i32
  }
  func.func @transform_9(%arg0: i32) -> (i32, i32) {
    %c0_i32 = arith.constant 0 : i32
    %c0_i32_0 = arith.constant 0 : i32
    %c0_i32_1 = arith.constant 0 : i32
    return %c0_i32, %c0_i32_0 : i32, i32
  }
  func.func @transform_10(%arg0: i32) -> (i32, i32) {
    %c0_i32 = arith.constant 0 : i32
    %c0_i32_0 = arith.constant 0 : i32
    %c0_i32_1 = arith.constant 0 : i32
    return %c0_i32, %c0_i32_0 : i32, i32
  }
  func.func @transform_11(%arg0: i32) -> (i32, i32) {
    %c0_i32 = arith.constant 0 : i32
    %c0_i32_0 = arith.constant 0 : i32
    %c0_i32_1 = arith.constant 0 : i32
    return %c0_i32, %c0_i32_0 : i32, i32
  }
  func.func @transform_12(%arg0: i32) -> (i32, i32) {
    %c0_i32 = arith.constant 0 : i32
    %c0_i32_0 = arith.constant 0 : i32
    %c0_i32_1 = arith.constant 0 : i32
    return %c0_i32, %c0_i32_0 : i32, i32
  }
  func.func @transform_13(%arg0: i32) -> (i32, i32) {
    %c0_i32 = arith.constant 0 : i32
    %c0_i32_0 = arith.constant 0 : i32
    %c0_i32_1 = arith.constant 0 : i32
    return %c0_i32, %c0_i32_0 : i32, i32
  }
  func.func @transform_14(%arg0: i32) -> (i32, i32) {
    %c0_i32 = arith.constant 0 : i32
    %c0_i32_0 = arith.constant 0 : i32
    %c0_i32_1 = arith.constant 0 : i32
    return %c0_i32, %c0_i32_0 : i32, i32
  }
  func.func @transform_15(%arg0: i32) -> (i32, i32) {
    %c0_i32 = arith.constant 0 : i32
    %c0_i32_0 = arith.constant 0 : i32
    %c0_i32_1 = arith.constant 0 : i32
    return %c0_i32, %c0_i32_0 : i32, i32
  }
  func.func @transform_16(%arg0: i32) -> (i32, i32, i32) {
    %c0_i32 = arith.constant 0 : i32
    %c0_i32_0 = arith.constant 0 : i32
    %c0_i32_1 = arith.constant 0 : i32
    %c0_i32_2 = arith.constant 0 : i32
    return %c0_i32, %c0_i32_0, %c0_i32_1 : i32, i32, i32
  }
  func.func @transform_17(%arg0: i32) -> (i32, i32) {
    %c0_i32 = arith.constant 0 : i32
    %c0_i32_0 = arith.constant 0 : i32
    %c0_i32_1 = arith.constant 0 : i32
    return %c0_i32, %c0_i32_0 : i32, i32
  }
  func.func @transform_18(%arg0: i32) -> (i32, i32) {
    %c0_i32 = arith.constant 0 : i32
    %c0_i32_0 = arith.constant 0 : i32
    %c0_i32_1 = arith.constant 0 : i32
    return %c0_i32, %c0_i32_0 : i32, i32
  }
  func.func @transform_19(%arg0: i32) -> (i32, i32) {
    %c0_i32 = arith.constant 0 : i32
    %c0_i32_0 = arith.constant 0 : i32
    %c0_i32_1 = arith.constant 0 : i32
    return %c0_i32, %c0_i32_0 : i32, i32
  }
  func.func @transform_20(%arg0: i32) -> (i32, i32) {
    %c0_i32 = arith.constant 0 : i32
    %c0_i32_0 = arith.constant 0 : i32
    %c0_i32_1 = arith.constant 0 : i32
    return %c0_i32, %c0_i32_0 : i32, i32
  }
  func.func @transform_21(%arg0: i32) -> (i32, i32) {
    %c0_i32 = arith.constant 0 : i32
    %c0_i32_0 = arith.constant 0 : i32
    %c0_i32_1 = arith.constant 0 : i32
    return %c0_i32, %c0_i32_0 : i32, i32
  }
  func.func @transform_22(%arg0: i32) -> (i32, i32) {
    %c0_i32 = arith.constant 0 : i32
    %c0_i32_0 = arith.constant 0 : i32
    %c0_i32_1 = arith.constant 0 : i32
    return %c0_i32, %c0_i32_0 : i32, i32
  }
  func.func @transform_23(%arg0: i32) -> (i32, i32) {
    %c0_i32 = arith.constant 0 : i32
    %c0_i32_0 = arith.constant 0 : i32
    %c0_i32_1 = arith.constant 0 : i32
    return %c0_i32, %c0_i32_0 : i32, i32
  }
  func.func @transform_24(%arg0: i32) -> (i32, i32, i32) {
    %c0_i32 = arith.constant 0 : i32
    %c0_i32_0 = arith.constant 0 : i32
    %c0_i32_1 = arith.constant 0 : i32
    %c0_i32_2 = arith.constant 0 : i32
    return %c0_i32, %c0_i32_0, %c0_i32_1 : i32, i32, i32
  }
  func.func @transform_25(%arg0: i32) -> (i32, i32, i32) {
    %c0_i32 = arith.constant 0 : i32
    %c0_i32_0 = arith.constant 0 : i32
    %c0_i32_1 = arith.constant 0 : i32
    %c0_i32_2 = arith.constant 0 : i32
    return %c0_i32, %c0_i32_0, %c0_i32_1 : i32, i32, i32
  }
  func.func @transform_26(%arg0: i32) -> (i32, i32, i32) {
    %c0_i32 = arith.constant 0 : i32
    %c0_i32_0 = arith.constant 0 : i32
    %c0_i32_1 = arith.constant 0 : i32
    %c0_i32_2 = arith.constant 0 : i32
    return %c0_i32, %c0_i32_0, %c0_i32_1 : i32, i32, i32
  }
  func.func @transform_27(%arg0: i32) -> (i32, i32, i32) {
    %c0_i32 = arith.constant 0 : i32
    %c0_i32_0 = arith.constant 0 : i32
    %c0_i32_1 = arith.constant 0 : i32
    %c0_i32_2 = arith.constant 0 : i32
    return %c0_i32, %c0_i32_0, %c0_i32_1 : i32, i32, i32
  }
  func.func @transform_28(%arg0: i32) -> (i32, i32, i32) {
    %c0_i32 = arith.constant 0 : i32
    %c0_i32_0 = arith.constant 0 : i32
    %c0_i32_1 = arith.constant 0 : i32
    %c0_i32_2 = arith.constant 0 : i32
    return %c0_i32, %c0_i32_0, %c0_i32_1 : i32, i32, i32
  }
  func.func @transform_29(%arg0: i32) -> (i32, i32, i32) {
    %c0_i32 = arith.constant 0 : i32
    %c0_i32_0 = arith.constant 0 : i32
    %c0_i32_1 = arith.constant 0 : i32
    %c0_i32_2 = arith.constant 0 : i32
    return %c0_i32, %c0_i32_0, %c0_i32_1 : i32, i32, i32
  }
  func.func @transform_30(%arg0: i32) -> (i32, i32, i32) {
    %c0_i32 = arith.constant 0 : i32
    %c0_i32_0 = arith.constant 0 : i32
    %c0_i32_1 = arith.constant 0 : i32
    %c0_i32_2 = arith.constant 0 : i32
    return %c0_i32, %c0_i32_0, %c0_i32_1 : i32, i32, i32
  }
  func.func @transform_31(%arg0: i32) -> (i32, i32, i32) {
    %c0_i32 = arith.constant 0 : i32
    %c0_i32_0 = arith.constant 0 : i32
    %c0_i32_1 = arith.constant 0 : i32
    %c0_i32_2 = arith.constant 0 : i32
    return %c0_i32, %c0_i32_0, %c0_i32_1 : i32, i32, i32
  }
  func.func @transform_32(%arg0: i32) -> (i32, i32) {
    %c0_i32 = arith.constant 0 : i32
    %c0_i32_0 = arith.constant 0 : i32
    %c0_i32_1 = arith.constant 0 : i32
    return %c0_i32, %c0_i32_0 : i32, i32
  }
}

</mosaic_0001>

<bundles_post_ra>
// kernel: tpu_custom_call.1
= control target key start
LH: loop header
LB: loop body
LE: loop exit
PB: predicated region body
PF: predicated region fallthrough
CT: control target
= control target key end

     0   :  { %s9273_s6 = smov 1   ;;  %s9274_s10 = smov 2   ;;  %s11246_s0 = inlined_call_operand.smem [shape: u32[33], index: -1, kind: input, shape index: {}] }
   0x1   :  { %s9338_s5 = sld [smem:[%s11246_s0]]   ;;  %s9275_s14 = smov 3  }
   0x2   :  { %s9343_s9 = sld [smem:[%s11246_s0 + %s9273_s6]]   ;;  %s9276_s18 = smov 4  }
   0x3   :  { %s9348_s13 = sld [smem:[%s11246_s0 + %s9274_s10]]   ;;  %s9277_s22 = smov 5  }
   0x4   :  { %s9353_s17 = sld [smem:[%s11246_s0 + %s9275_s14]]   ;;  %s9278_s26 = smov 6  }
   0x5   :  { %s9358_s21 = sld [smem:[%s11246_s0 + %s9276_s18]]   ;;  %s9279_s30 = smov 7  }
   0x6   :  { %s9363_s25 = sld [smem:[%s11246_s0 + %s9277_s22]]   ;;  %s9280_s4 = smov 8  }
   0x7   :  { %s9368_s29 = sld [smem:[%s11246_s0 + %s9278_s26]]   ;;  %s9281_s10 = smov 9  }
   0x8   :  { %11395 = sst [smem:[#allocation37_spill]] %s9343_s9  ;;  %s9282_s15 = smov 10  }
   0x9   :  { %11396 = sst [smem:[#allocation38_spill]] %s9348_s13  ;;  %s9283_s20 = smov 11  }
   0xa   :  { %11397 = sst [smem:[#allocation39_spill]] %s9353_s17  ;;  %s9284_s26 = smov 12  }
   0xb   :  { %11398 = sst [smem:[#allocation40_spill]] %s9358_s21  ;;  %s9285_s1 = smov 13  }
   0xc   :  { %s9373_s3 = sld [smem:[%s11246_s0 + %s9279_s30]]   ;;  %s9286_s7 = smov 14  }
   0xd   :  { %11399 = sst [smem:[#allocation41_spill]] %s9368_s29  ;;  %s9288_s22 = smov 16  }
   0xe   :  { %s9378_s8 = sld [smem:[%s11246_s0 + %s9280_s4]]   ;;  %s9289_s28 = smov 17  }
   0xf   :  { %s9383_s14 = sld [smem:[%s11246_s0 + %s9281_s10]]   ;;  %s9296_s23 = smov 24  }
  0x10   :  { %s9388_s19 = sld [smem:[%s11246_s0 + %s9282_s15]]   ;;  %s9287_s15 = smov 15  }
  0x11   :  { %s9393_s24 = sld [smem:[%s11246_s0 + %s9283_s20]]   ;;  %s9298_s10 = smov 26  }
  0x12   :  { %11400 = sst [smem:[#allocation42_spill]] %s9373_s3  ;;  %s9299_s16 = smov 27  }
  0x13   :  { %s9398_s30 = sld [smem:[%s11246_s0 + %s9284_s26]]  }
  0x14   :  { %s9403_s6 = sld [smem:[%s11246_s0 + %s9285_s1]]   ;;  %s9297_s1 = smov 25  }
  0x15   :  { %11401 = sst [smem:[#allocation43_spill]] %s9383_s14 }
  0x16   :  { %s9408_s12 = sld [smem:[%s11246_s0 + %s9286_s7]]   ;;  %s9290_s7 = smov 18  }
  0x17   :  { %s9413_s20 = sld [smem:[%s11246_s0 + %s9287_s15]]   ;;  %s9291_s15 = smov 19  }
  0x18   :  { %s9418_s27 = sld [smem:[%s11246_s0 + %s9288_s22]]   ;;  %s9292_s22 = smov 20  }
  0x19   :  { %s9423_s4 = sld [smem:[%s11246_s0 + %s9289_s28]]   ;;  %s9293_s28 = smov 21  }
  0x1a   :  { %s9428_s21 = sld [smem:[%s11246_s0 + %s9290_s7]]   ;;  %s9294_s7 = smov 22  }
  0x1b   :  { %s9433_s17 = sld [smem:[%s11246_s0 + %s9291_s15]]   ;;  %s9295_s15 = smov 23  }
  0x1c   :  { %s9438_s3 = sld [smem:[%s11246_s0 + %s9292_s22]]   ;;  %s9304_s22 = smov 32  }
  0x1d   :  { %s9443_s14 = sld [smem:[%s11246_s0 + %s9293_s28]]  }
  0x1e   :  { %s6557_s13 = sld [smem:[%s11246_s0 + %s9295_s15]]  }
  0x1f   :  { %s9461_s9 = sld [smem:[%s11246_s0 + %s9297_s1]]   ;;  %s9301_s1 = smov 29  }
  0x20   :  { %11402 = sst [smem:[#allocation44_spill]] %s9428_s21 }
  0x21   :  { %s9448_s21 = sld [smem:[%s11246_s0 + %s9294_s7]]  }
  0x22   :  { %11403 = sst [smem:[#allocation45_spill]] %s9438_s3 }
  0x23   :  { %11404 = sst [smem:[#allocation46_spill]] %s9443_s14 }
  0x24   :  { %s9456_s3 = sld [smem:[%s11246_s0 + %s9296_s23]]   ;;  %s9300_s23 = smov 28   ;;  %v70_v0 = vstv %s6557_s13 }
  0x25   :  { %s9471_s29 = sld [smem:[%s11246_s0 + %s9299_s16]]   ;;  %71 = vst [vmem:[#allocation2] sm:$0x1] %v70_v0  ;;  %s9303_s16 = smov 31  }
  0x26   :  { %s9481_s14 = sld [smem:[%s11246_s0 + %s9301_s1]]  }
  0x27   :  { %11405 = sst [smem:[#allocation47_spill]] %s9448_s21 }
  0x28   :  { %s9466_s21 = sld [smem:[%s11246_s0 + %s9298_s10]]   ;;  %s9302_s10 = smov 30  }
  0x29   :  { %s9486_s15 = sld [smem:[%s11246_s0 + %s9302_s10]]  }
  0x2a   :  { %11406 = sst [smem:[#allocation48_spill]] %s9456_s3 }
  0x2b   :  { %11407 = sst [smem:[#allocation49_spill]] %s9471_s29 }
  0x2c   :  { %s9476_s3 = sld [smem:[%s11246_s0 + %s9300_s23]]  }
  0x2d   :  { %s9491_s23 = sld [smem:[%s11246_s0 + %s9303_s16]]  }
  0x2e   :  { %s9496_s1 = sld [smem:[%s11246_s0 + %s9304_s22]]  }
  0x32   :  { %11408 = sst [smem:[#allocation50_spill]] %s9476_s3 }
  0x33   :  { %72 = vsyncpa [#allocation4], 0 }
  0x34   :  { %73 = vsyncpa [#allocation6], 0 }
  0x35   :  { %74 = vsyncpa [#allocation9], 0 }
  0x36   :  { %75 = vsyncpa [#allocation12], 0 }
  0x37   :  { %76 = vsyncpa [#allocation15], 0 }
  0x38   :  { %77 = vsyncpa [#allocation18], 0 }
  0x39   :  { %78 = vsyncpa [#allocation21], 0 }
  0x3a   :  { %79 = vsyncpa [#allocation24], 0 }
  0x3b   :  { %80 = vsyncpa [#allocation27], 0  ;;  %s9305_s13 = smov [#allocation5]   ;;  %s9306_s28 = smov [#allocation8]  }
  0x3c   :  { %s106_s29 = sshll.u32 %s9305_s13, 4  ;;  %s136_s2 = sshll.u32 %s9306_s28, 4  ;;  %s107_s29 = int_to_ptr.vmem [resolvable:$true] %s106_s29  ;;  %s9498_s2 = int_to_ptr.vmem [resolvable:$true] %s136_s2 }
  0x3d   :  { %s8903_s0 = scalar_lea.hbm %s9363_s25, 256 }
  0x3e   :  { %p8904_p0 = scmp.ne.s32.totalorder %s9363_s25, %s8903_s0  ;;  %p8907_p1 = scmp.lt.u32.totalorder %s8903_s0, %s9363_s25 }
  0x40   :  { %p8909_p2 = pnand %p8907_p1, %p8904_p0 }
  0x42   :  { %8912 = shalt.err (!%p8909_p2)
}
  0x43   :  { %s8913_s3 = scalar_lea.vmem %s107_s29, 256  ;;  %p8918_p4 = scmp.lt.s32.totalorder %s107_s29, %s107_s29 }
  0x44   :  { %p8914_p3 = scmp.ne.s32.totalorder %s107_s29, %s8913_s3  ;;  %p8919_p5 = scmp.lt.s32.totalorder %s8913_s3, %s8913_s3 }
  0x46   :  { %p8920_p6 = por %p8919_p5, %p8918_p4 }
  0x48   :  { %p8921_p7 = pnand %p8920_p6, %p8914_p3 }
  0x4a   :  { %8924 = shalt.err (!%p8921_p7)
}
  0x4b   :  { %s9307_s10 = smov 128   ;;  %s9308_s7 = smov 8  }
  0x4c   :  { %112 = dma.hbm_to_vmem [thread:$0]  %s9363_s25, 256, %s107_s29, [#allocation6], %s9307_s10, %s9307_s10, %s9308_s7  }
  0x4d   :  { %s8925_s11 = scalar_lea.hbm %s9388_s19, 512 }
  0x4e   :  { %p8926_p8 = scmp.ne.s32.totalorder %s9388_s19, %s8925_s11  ;;  %p8929_p9 = scmp.lt.u32.totalorder %s8925_s11, %s9388_s19 }
  0x50   :  { %p8931_p10 = pnand %p8929_p9, %p8926_p8 }
  0x52   :  { %8934 = shalt.err (!%p8931_p10)
}
  0x53   :  { %s8935_s16 = scalar_lea.vmem %s9498_s2, 512  ;;  %p8940_p12 = scmp.lt.s32.totalorder %s9498_s2, %s9498_s2 }
  0x54   :  { %p8936_p11 = scmp.ne.s32.totalorder %s9498_s2, %s8935_s16  ;;  %p8941_p13 = scmp.lt.s32.totalorder %s8935_s16, %s8935_s16 }
  0x56   :  { %p8942_p0 = por %p8941_p13, %p8940_p12 }
  0x58   :  { %p8943_p1 = pnand %p8942_p0, %p8936_p11 }
  0x5a   :  { %8946 = shalt.err (!%p8943_p1)
}
  0x5b   :  { %142 = dma.hbm_to_vmem [thread:$0]  %s9388_s19, 512, %s9498_s2, [#allocation9], %s9307_s10, %s9307_s10, %s9308_s7  }
  0x5c   :  { %s9309_s25 = smov [#allocation11]   ;;  %s9310_s22 = smov [#allocation14]  }
  0x5d   :  { %s159_s18 = sshll.u32 %s9309_s25, 4  ;;  %s179_s26 = sshll.u32 %s9310_s22, 4  ;;  %s160_s18 = int_to_ptr.vmem [resolvable:$true] %s159_s18  ;;  %s180_s26 = int_to_ptr.vmem [resolvable:$true] %s179_s26 }
  0x5e   :  { %s8947_s13 = scalar_lea.hbm %s9398_s30, 16 }
  0x5f   :  { %p8948_p2 = scmp.ne.s32.totalorder %s9398_s30, %s8947_s13  ;;  %p8951_p3 = scmp.lt.u32.totalorder %s8947_s13, %s9398_s30 }
  0x61   :  { %p8953_p4 = pnand %p8951_p3, %p8948_p2 }
  0x63   :  { %8956 = shalt.err (!%p8953_p4)
}
  0x64   :  { %s8957_s29 = scalar_lea.vmem %s160_s18, 16  ;;  %s8961_s28 = scalar_lea.vmem %s160_s18, 32 }
  0x65   :  { %p8958_p5 = scmp.ne.s32.totalorder %s160_s18, %s8957_s29  ;;  %p8962_p6 = scmp.lt.s32.totalorder %s160_s18, %s160_s18 }
  0x66   :  { %p8963_p7 = scmp.lt.s32.totalorder %s8961_s28, %s8957_s29 }
  0x68   :  { %p8964_p8 = por %p8963_p7, %p8962_p6 }
  0x6a   :  { %p8965_p9 = pnand %p8964_p8, %p8958_p5 }
  0x6c   :  { %8968 = shalt.err (!%p8965_p9)
}
  0x6d   :  { %162 = dma.hbm_to_vmem [thread:$0]  %s9398_s30, 16, %s160_s18, [#allocation12]  }
  0x6e   :  { %s8969_s19 = scalar_lea.hbm %s9408_s12, 16 }
  0x6f   :  { %p8970_p10 = scmp.ne.s32.totalorder %s9408_s12, %s8969_s19  ;;  %p8973_p11 = scmp.lt.u32.totalorder %s8969_s19, %s9408_s12 }
  0x71   :  { %p8975_p12 = pnand %p8973_p11, %p8970_p10 }
  0x73   :  { %8978 = shalt.err (!%p8975_p12)
}
  0x74   :  { %s8979_s2 = scalar_lea.vmem %s180_s26, 16  ;;  %s8983_s0 = scalar_lea.vmem %s180_s26, 32 }
  0x75   :  { %p8980_p13 = scmp.ne.s32.totalorder %s180_s26, %s8979_s2  ;;  %p8984_p0 = scmp.lt.s32.totalorder %s180_s26, %s180_s26 }
  0x76   :  { %p8985_p1 = scmp.lt.s32.totalorder %s8983_s0, %s8979_s2 }
  0x78   :  { %p8986_p2 = por %p8985_p1, %p8984_p0 }
  0x7a   :  { %p8987_p3 = pnand %p8986_p2, %p8980_p13 }
  0x7c   :  { %8990 = shalt.err (!%p8987_p3)
}
  0x7d   :  { %182 = dma.hbm_to_vmem [thread:$0]  %s9408_s12, 16, %s180_s26, [#allocation15]  }
  0x7e   :  { %s9311_s3 = smov [#allocation17]   ;;  %s9312_s11 = smov [#allocation20]  }
  0x7f   :  { %s198_s30 = sshll.u32 %s9311_s3, 4  ;;  %s223_s16 = sshll.u32 %s9312_s11, 4  ;;  %s199_s30 = int_to_ptr.vmem [resolvable:$true] %s198_s30  ;;  %s224_s16 = int_to_ptr.vmem [resolvable:$true] %s223_s16 }
  0x80   :  { %s8991_s25 = scalar_lea.hbm %s9418_s27, 3072 }
  0x81   :  { %p8992_p4 = scmp.ne.s32.totalorder %s9418_s27, %s8991_s25  ;;  %p8995_p5 = scmp.lt.u32.totalorder %s8991_s25, %s9418_s27 }
  0x83   :  { %p8997_p6 = pnand %p8995_p5, %p8992_p4 }
  0x85   :  { %9000 = shalt.err (!%p8997_p6)
}
  0x86   :  { %s9001_s18 = scalar_lea.vmem %s199_s30, 3072  ;;  %p9006_p8 = scmp.lt.s32.totalorder %s199_s30, %s199_s30 }
  0x87   :  { %p9002_p7 = scmp.ne.s32.totalorder %s199_s30, %s9001_s18  ;;  %p9007_p9 = scmp.lt.s32.totalorder %s9001_s18, %s9001_s18 }
  0x89   :  { %p9008_p10 = por %p9007_p9, %p9006_p8 }
  0x8b   :  { %p9009_p11 = pnand %p9008_p10, %p9002_p7 }
  0x8d   :  { %9012 = shalt.err (!%p9009_p11)
}
  0x8e   :  { %204 = dma.hbm_to_vmem [thread:$0]  %s9418_s27, 3072, %s199_s30, [#allocation18], %s9307_s10, %s9307_s10, %s9308_s7  }
  0x8f   :  { %s9013_s12 = scalar_lea.hbm %s9433_s17, 16 }
  0x90   :  { %p9014_p12 = scmp.ne.s32.totalorder %s9433_s17, %s9013_s12  ;;  %p9017_p13 = scmp.lt.u32.totalorder %s9013_s12, %s9433_s17 }
  0x92   :  { %p9019_p0 = pnand %p9017_p13, %p9014_p12 }
  0x94   :  { %9022 = shalt.err (!%p9019_p0)
}
  0x95   :  { %s9023_s22 = scalar_lea.vmem %s224_s16, 16  ;;  %s9027_s26 = scalar_lea.vmem %s224_s16, 32 }
  0x96   :  { %p9024_p1 = scmp.ne.s32.totalorder %s224_s16, %s9023_s22  ;;  %p9028_p2 = scmp.lt.s32.totalorder %s224_s16, %s224_s16 }
  0x97   :  { %p9029_p3 = scmp.lt.s32.totalorder %s9027_s26, %s9023_s22 }
  0x99   :  { %p9030_p4 = por %p9029_p3, %p9028_p2 }
  0x9b   :  { %p9031_p5 = pnand %p9030_p4, %p9024_p1 }
  0x9d   :  { %9034 = shalt.err (!%p9031_p5)
}
  0x9e   :  { %226 = dma.hbm_to_vmem [thread:$0]  %s9433_s17, 16, %s224_s16, [#allocation21]  }
  0x9f   :  { %s9313_s13 = smov [#allocation23]   ;;  %s9035_s29 = scalar_lea.hbm %s9461_s9, 96 }
  0xa0   :  { %s250_s27 = sshll.u32 %s9313_s13, 4  ;;  %p9036_p6 = scmp.ne.s32.totalorder %s9461_s9, %s9035_s29  ;;  %s251_s27 = int_to_ptr.vmem [resolvable:$true] %s250_s27 }
  0xa1   :  { %p9039_p7 = scmp.lt.u32.totalorder %s9035_s29, %s9461_s9 }
  0xa3   :  { %p9041_p8 = pnand %p9039_p7, %p9036_p6 }
  0xa5   :  { %9044 = shalt.err (!%p9041_p8)
}
  0xa6   :  { %s9045_s28 = scalar_lea.vmem %s251_s27, 96  ;;  %p9050_p10 = scmp.lt.s32.totalorder %s251_s27, %s251_s27 }
  0xa7   :  { %p9046_p9 = scmp.ne.s32.totalorder %s251_s27, %s9045_s28  ;;  %p9051_p11 = scmp.lt.s32.totalorder %s9045_s28, %s9045_s28 }
  0xa9   :  { %p9052_p12 = por %p9051_p11, %p9050_p10 }
  0xab   :  { %p9053_p13 = pnand %p9052_p12, %p9046_p9 }
  0xad   :  { %9056 = shalt.err (!%p9053_p13)
}
  0xae   :  { %s9314_s19 = smov 32   ;;  %s9315_s17 = smov 2  }
  0xaf   :  { %256 = dma.hbm_to_vmem [thread:$0]  %s9461_s9, 96, %s251_s27, [#allocation24], %s9314_s19, %s9314_s19, %s9315_s17  }
  0xb0   :  { %s9316_s2 = smov [#allocation3]   ;;  %s9317_s3 = smov [#allocation7]  }
  0xb1   :  { %s86_s0 = sshll.u32 %s9316_s2, 4  ;;  %s122_s30 = sshll.u32 %s9317_s3, 4  ;;  %s87_s0 = int_to_ptr.vmem [resolvable:$true] %s86_s0  ;;  %s123_s30 = int_to_ptr.vmem [resolvable:$true] %s122_s30 }
  0xb2   :  { %s9057_s11 = scalar_lea.hbm %s9338_s5, 256 }
  0xb3   :  { %p9058_p0 = scmp.ne.s32.totalorder %s9338_s5, %s9057_s11  ;;  %p9061_p1 = scmp.lt.u32.totalorder %s9057_s11, %s9338_s5 }
  0xb5   :  { %p9063_p2 = pnand %p9061_p1, %p9058_p0 }
  0xb7   :  { %9066 = shalt.err (!%p9063_p2)
}
  0xb8   :  { %s9067_s16 = scalar_lea.vmem %s87_s0, 256  ;;  %p9072_p4 = scmp.lt.s32.totalorder %s87_s0, %s87_s0 }
  0xb9   :  { %p9068_p3 = scmp.ne.s32.totalorder %s87_s0, %s9067_s16  ;;  %p9073_p5 = scmp.lt.s32.totalorder %s9067_s16, %s9067_s16 }
  0xbb   :  { %p9074_p6 = por %p9073_p5, %p9072_p4 }
  0xbd   :  { %p9075_p7 = pnand %p9074_p6, %p9068_p3 }
  0xbf   :  { %9078 = shalt.err (!%p9075_p7)
}
  0xc0   :  { %92 = dma.hbm_to_vmem [thread:$0]  %s9338_s5, 256, %s87_s0, [#allocation4], %s9307_s10, %s9307_s10, %s9308_s7  }
  0xc1   :  { %s9079_s9 = scalar_lea.hbm %s9378_s8, 512 }
  0xc2   :  { %p9080_p8 = scmp.ne.s32.totalorder %s9378_s8, %s9079_s9  ;;  %p9083_p9 = scmp.lt.u32.totalorder %s9079_s9, %s9378_s8 }
  0xc4   :  { %p9085_p10 = pnand %p9083_p9, %p9080_p8 }
  0xc6   :  { %9088 = shalt.err (!%p9085_p10)
}
  0xc7   :  { %s9089_s25 = scalar_lea.vmem %s123_s30, 512  ;;  %p9094_p12 = scmp.lt.s32.totalorder %s123_s30, %s123_s30 }
  0xc8   :  { %p9090_p11 = scmp.ne.s32.totalorder %s123_s30, %s9089_s25  ;;  %p9095_p13 = scmp.lt.s32.totalorder %s9089_s25, %s9089_s25 }
  0xca   :  { %p9096_p0 = por %p9095_p13, %p9094_p12 }
  0xcc   :  { %p9097_p1 = pnand %p9096_p0, %p9090_p11 }
  0xce   :  { %9100 = shalt.err (!%p9097_p1)
}
  0xcf   :  { %128 = dma.hbm_to_vmem [thread:$0]  %s9378_s8, 512, %s123_s30, [#allocation6], %s9307_s10, %s9307_s10, %s9308_s7  }
  0xd0   :  { %s9318_s5 = smov [#allocation10]   ;;  %s9319_s12 = smov [#allocation13]  }
  0xd1   :  { %s149_s18 = sshll.u32 %s9318_s5, 4  ;;  %s169_s22 = sshll.u32 %s9319_s12, 4  ;;  %s150_s18 = int_to_ptr.vmem [resolvable:$true] %s149_s18  ;;  %s170_s22 = int_to_ptr.vmem [resolvable:$true] %s169_s22 }
  0xd2   :  { %s9101_s26 = scalar_lea.hbm %s9393_s24, 16 }
  0xd3   :  { %p9102_p2 = scmp.ne.s32.totalorder %s9393_s24, %s9101_s26  ;;  %p9105_p3 = scmp.lt.u32.totalorder %s9101_s26, %s9393_s24 }
  0xd5   :  { %p9107_p4 = pnand %p9105_p3, %p9102_p2 }
  0xd7   :  { %9110 = shalt.err (!%p9107_p4)
}
  0xd8   :  { %s9111_s13 = scalar_lea.vmem %s150_s18, 16  ;;  %s9115_s27 = scalar_lea.vmem %s150_s18, 32 }
  0xd9   :  { %p9112_p5 = scmp.ne.s32.totalorder %s150_s18, %s9111_s13  ;;  %p9116_p6 = scmp.lt.s32.totalorder %s150_s18, %s150_s18 }
  0xda   :  { %p9117_p7 = scmp.lt.s32.totalorder %s9115_s27, %s9111_s13 }
  0xdc   :  { %p9118_p8 = por %p9117_p7, %p9116_p6 }
  0xde   :  { %p9119_p9 = pnand %p9118_p8, %p9112_p5 }
  0xe0   :  { %9122 = shalt.err (!%p9119_p9)
}
  0xe1   :  { %152 = dma.hbm_to_vmem [thread:$0]  %s9393_s24, 16, %s150_s18, [#allocation9]  }
  0xe2   :  { %s9123_s8 = scalar_lea.hbm %s9403_s6, 16 }
  0xe3   :  { %p9124_p10 = scmp.ne.s32.totalorder %s9403_s6, %s9123_s8  ;;  %p9127_p11 = scmp.lt.u32.totalorder %s9123_s8, %s9403_s6 }
  0xe5   :  { %p9129_p12 = pnand %p9127_p11, %p9124_p10 }
  0xe7   :  { %9132 = shalt.err (!%p9129_p12)
}
  0xe8   :  { %s9133_s10 = scalar_lea.vmem %s170_s22, 16  ;;  %s9137_s7 = scalar_lea.vmem %s170_s22, 32 }
  0xe9   :  { %p9134_p13 = scmp.ne.s32.totalorder %s170_s22, %s9133_s10  ;;  %p9138_p0 = scmp.lt.s32.totalorder %s170_s22, %s170_s22 }
  0xea   :  { %p9139_p1 = scmp.lt.s32.totalorder %s9137_s7, %s9133_s10 }
  0xec   :  { %p9140_p2 = por %p9139_p1, %p9138_p0 }
  0xee   :  { %p9141_p3 = pnand %p9140_p2, %p9134_p13 }
  0xf0   :  { %9144 = shalt.err (!%p9141_p3)
}
  0xf1   :  { %172 = dma.hbm_to_vmem [thread:$0]  %s9403_s6, 16, %s170_s22, [#allocation12]  }
  0xf2   :  { %s9320_s24 = smov [#allocation16]   ;;  %s9321_s28 = smov [#allocation19]  }
  0xf3   :  { %s189_s29 = sshll.u32 %s9320_s24, 4  ;;  %s211_s2 = sshll.u32 %s9321_s28, 4  ;;  %s190_s29 = int_to_ptr.vmem [resolvable:$true] %s189_s29  ;;  %s212_s2 = int_to_ptr.vmem [resolvable:$true] %s211_s2 }
  0xf4   :  { %s9145_s0 = scalar_lea.hbm %s9413_s20, 16 }
  0xf5   :  { %p9146_p4 = scmp.ne.s32.totalorder %s9413_s20, %s9145_s0  ;;  %p9149_p5 = scmp.lt.u32.totalorder %s9145_s0, %s9413_s20 }
  0xf7   :  { %p9151_p6 = pnand %p9149_p5, %p9146_p4 }
  0xf9   :  { %9154 = shalt.err (!%p9151_p6)
}
  0xfa   :  { %s9155_s3 = scalar_lea.vmem %s190_s29, 16  ;;  %s9159_s30 = scalar_lea.vmem %s190_s29, 32 }
  0xfb   :  { %p9156_p7 = scmp.ne.s32.totalorder %s190_s29, %s9155_s3  ;;  %p9160_p8 = scmp.lt.s32.totalorder %s190_s29, %s190_s29 }
  0xfc   :  { %p9161_p9 = scmp.lt.s32.totalorder %s9159_s30, %s9155_s3 }
  0xfe   :  { %p9162_p10 = por %p9161_p9, %p9160_p8 }
 0x100   :  { %p9163_p11 = pnand %p9162_p10, %p9156_p7 }
 0x102   :  { %9166 = shalt.err (!%p9163_p11)
}
 0x103   :  { %192 = dma.hbm_to_vmem [thread:$0]  %s9413_s20, 16, %s190_s29, [#allocation15]  }
 0x104   :  { %s9167_s6 = scalar_lea.hbm %s9423_s4, 16 }
 0x105   :  { %p9168_p12 = scmp.ne.s32.totalorder %s9423_s4, %s9167_s6  ;;  %p9171_p13 = scmp.lt.u32.totalorder %s9167_s6, %s9423_s4 }
 0x107   :  { %p9173_p0 = pnand %p9171_p13, %p9168_p12 }
 0x109   :  { %9176 = shalt.err (!%p9173_p0)
}
 0x10a   :  { %s9177_s11 = scalar_lea.vmem %s212_s2, 16  ;;  %s9181_s16 = scalar_lea.vmem %s212_s2, 32 }
 0x10b   :  { %p9178_p1 = scmp.ne.s32.totalorder %s212_s2, %s9177_s11  ;;  %p9182_p2 = scmp.lt.s32.totalorder %s212_s2, %s212_s2 }
 0x10c   :  { %p9183_p3 = scmp.lt.s32.totalorder %s9181_s16, %s9177_s11 }
 0x10e   :  { %p9184_p4 = por %p9183_p3, %p9182_p2 }
 0x110   :  { %p9185_p5 = pnand %p9184_p4, %p9178_p1 }
 0x112   :  { %9188 = shalt.err (!%p9185_p5)
}
 0x113   :  { %s11409_s9 = sld [smem:[#allocation46_spill]]  ;;  %s9322_s20 = smov [#allocation22]  }
 0x114   :  { %214 = dma.hbm_to_vmem [thread:$0]  %s9423_s4, 16, %s212_s2, [#allocation18]  }
 0x115   :  { %s235_s25 = sshll.u32 %s9322_s20, 4  ;;  %s9323_s5 = smov [#allocation25]   ;;  %s236_s25 = int_to_ptr.vmem [resolvable:$true] %s235_s25 }
 0x116   :  { %s262_s18 = sshll.u32 %s9323_s5, 4  ;;  %s263_s18 = int_to_ptr.vmem [resolvable:$true] %s262_s18 }
 0x119   :  { %s9189_s12 = scalar_lea.hbm %s11409_s9, 16 }
 0x11a   :  { %p9190_p6 = scmp.ne.s32.totalorder %s11409_s9, %s9189_s12  ;;  %p9193_p7 = scmp.lt.u32.totalorder %s9189_s12, %s11409_s9 }
 0x11c   :  { %p9195_p8 = pnand %p9193_p7, %p9190_p6 }
 0x11e   :  { %9198 = shalt.err (!%p9195_p8)
}
 0x11f   :  { %s9199_s22 = scalar_lea.vmem %s236_s25, 16  ;;  %s9203_s26 = scalar_lea.vmem %s236_s25, 32 }
 0x120   :  { %p9200_p9 = scmp.ne.s32.totalorder %s236_s25, %s9199_s22  ;;  %p9204_p10 = scmp.lt.s32.totalorder %s236_s25, %s236_s25 }
 0x121   :  { %p9205_p11 = scmp.lt.s32.totalorder %s9203_s26, %s9199_s22 }
 0x123   :  { %p9206_p12 = por %p9205_p11, %p9204_p10 }
 0x125   :  { %p9207_p13 = pnand %p9206_p12, %p9200_p9 }
 0x127   :  { %9210 = shalt.err (!%p9207_p13)
}
 0x128   :  { %238 = dma.hbm_to_vmem [thread:$0]  %s11409_s9, 16, %s236_s25, [#allocation21]  }
 0x129   :  { %s9211_s4 = scalar_lea.hbm %s9466_s21, 96 }
 0x12a   :  { %p9212_p0 = scmp.ne.s32.totalorder %s9466_s21, %s9211_s4  ;;  %p9215_p1 = scmp.lt.u32.totalorder %s9211_s4, %s9466_s21 }
 0x12c   :  { %p9217_p2 = pnand %p9215_p1, %p9212_p0 }
 0x12e   :  { %9220 = shalt.err (!%p9217_p2)
}
 0x12f   :  { %s9221_s13 = scalar_lea.vmem %s263_s18, 96  ;;  %p9226_p4 = scmp.lt.s32.totalorder %s263_s18, %s263_s18 }
 0x130   :  { %p9222_p3 = scmp.ne.s32.totalorder %s263_s18, %s9221_s13  ;;  %p9227_p5 = scmp.lt.s32.totalorder %s9221_s13, %s9221_s13 }
 0x132   :  { %p9228_p6 = por %p9227_p5, %p9226_p4 }
 0x134   :  { %p9229_p7 = pnand %p9228_p6, %p9222_p3 }
 0x136   :  { %9232 = shalt.err (!%p9229_p7)
}
 0x137   :  { %s11410_s27 = sld [smem:[#allocation49_spill]]  ;;  %s9324_s8 = smov [#allocation26]  }
 0x138   :  { %268 = dma.hbm_to_vmem [thread:$0]  %s9466_s21, 96, %s263_s18, [#allocation24], %s9314_s19, %s9314_s19, %s9315_s17  }
 0x139   :  { %s274_s10 = sshll.u32 %s9324_s8, 4  ;;  %s275_s10 = int_to_ptr.vmem [resolvable:$true] %s274_s10 }
 0x13d   :  { %s9233_s7 = scalar_lea.hbm %s11410_s27, 96 }
 0x13e   :  { %p9234_p8 = scmp.ne.s32.totalorder %s11410_s27, %s9233_s7  ;;  %p9237_p9 = scmp.lt.u32.totalorder %s9233_s7, %s11410_s27 }
 0x140   :  { %p9239_p10 = pnand %p9237_p9, %p9234_p8 }
 0x142   :  { %9242 = shalt.err (!%p9239_p10)
}
 0x143   :  { %s9243_s24 = scalar_lea.vmem %s275_s10, 96  ;;  %p9248_p12 = scmp.lt.s32.totalorder %s275_s10, %s275_s10 }
 0x144   :  { %p9244_p11 = scmp.ne.s32.totalorder %s275_s10, %s9243_s24  ;;  %p9249_p13 = scmp.lt.s32.totalorder %s9243_s24, %s9243_s24 }
 0x146   :  { %p9250_p0 = por %p9249_p13, %p9248_p12 }
 0x148   :  { %p9251_p1 = pnand %p9250_p0, %p9244_p11 }
 0x14a   :  { %9254 = shalt.err (!%p9251_p1)
}
 0x14b   :  { %280 = dma.hbm_to_vmem [thread:$0]  %s11410_s27, 96, %s275_s10, [#allocation27], %s9314_s19, %s9314_s19, %s9315_s17  }
 0x14c   :  { %9255 = dma.done.wait [#allocation4], 256  }
 0x14d   :  { %9256 = vsyncadd [#allocation4], 4294967040 }
 0x14e   :  { %9257 = dma.done.wait [#allocation6], 768  }
 0x14f   :  { %9258 = vsyncadd [#allocation6], 4294966528 }
 0x150   :  { %9259 = dma.done.wait [#allocation9], 528  }
 0x151   :  { %9260 = vsyncadd [#allocation9], 4294966768 }
 0x152   :  { %9261 = dma.done.wait [#allocation12], 32  }
 0x153   :  { %9262 = vsyncadd [#allocation12], 4294967264 }
 0x154   :  { %9263 = dma.done.wait [#allocation15], 32  }
 0x155   :  { %9264 = vsyncadd [#allocation15], 4294967264 }
 0x156   :  { %9265 = dma.done.wait [#allocation18], 3088  }
 0x157   :  { %9266 = vsyncadd [#allocation18], 4294964208 }
 0x158   :  { %9267 = dma.done.wait [#allocation21], 32  }
 0x159   :  { %9268 = vsyncadd [#allocation21], 4294967264 }
 0x15a   :  { %9269 = dma.done.wait [#allocation24], 192  }
 0x15b   :  { %9270 = vsyncadd [#allocation24], 4294967104 }
 0x15c   :  { %9271 = dma.done.wait [#allocation27], 96  }
 0x15d   :  { %9272 = vsyncadd [#allocation27], 4294967200  ;;  %s11411_s21 = sld [smem:[#allocation41_spill]]  ;;  %s11412_s19 = sld [smem:[#allocation37_spill]]  ;;  %v9325_v1 = vmov 0   ;;  %vm1488_vm0 = vcmask 1040384   ;;  %v373_v48 = vlaneseq }
 0x15e   :  { %8869 = vset.pattern.permute.xlu0 %v9325_v1  ;;  %8870 = vset.pattern.permute.xlu1 %v9325_v1  ;;  %vm9326_vm1 = vmmov 1   ;;  %vm1481_vm4 = vcmask 203776   ;;  %v1468_v12 = vld [vmem:[#allocation3] sm:$0xff]  ;;  %v1568_v14 = vld [vmem:[#allocation7 + $0x8] sm:$0xff]  ;;  %v1569_v22 = vld [vmem:[#allocation7 + $0x10] sm:$0xff]  ;;  %s11415_s17 = sld [smem:[#allocation38_spill]] }
 0x15f   :  { %vm9595_vm2 = vmpackc.low %vm1488_vm0, %vm9326_vm1  ;;  %v1567_v13 = vld [vmem:[#allocation7] sm:$0xff]  ;;  %7789 = vmatprep.mubr.msk.f32.mxu1 %vm1481_vm4, %v1468_v12  ;;  %v1570_v23 = vld [vmem:[#allocation7 + $0x18] sm:$0x1]  ;;  %v11291_v47 = vmov 1.0|1.0   ;;  %v9633_v49 = vand.u32 127, %v373_v48 }
 0x160   :  { %v8182_v19 = vpack.c.bf16 %v1568_v14, %v1567_v13  ;;  %v1469_v25 = vld [vmem:[#allocation3 + $0x8] sm:$0xff]  ;;  %v8186_v27 = vpack.c.bf16 %v1570_v23, %v1569_v22  ;;  %v1658_v33 = vld [vmem:[#allocation8] sm:$0xff]  ;;  %v1660_v44 = vld [vmem:[#allocation8 + $0x10] sm:$0xff]  ;;  %8166 = vmatprep.subr.bf16.mxu0 %v11291_v47  ;;  %v9635_v50 = vshrl.u32 %v373_v48, 7  ;;  %v11281_v55 = vmov 0.0   ;;  %s11416_s29 = sld [smem:[#allocation48_spill]] }
 0x161   :  { %v1659_v35 = vld [vmem:[#allocation8 + $0x8] sm:$0xff]  ;;  %v1661_v45 = vld [vmem:[#allocation8 + $0x18] sm:$0xff]  ;;  %8167 = vmatpush3.bf16.msra.mxu0 %v11291_v47  ;;  %s11418_s28 = sld [smem:[#allocation43_spill]]  ;;  %s11421_s2 = sld [smem:[#allocation42_spill]] }
 0x162   :  { %v8192_v37 = vpack.c.bf16 %v1659_v35, %v1658_v33  ;;  %v8196_v46 = vpack.c.bf16 %v1661_v45, %v1660_v44  ;;  %8168 = vmatprep.subr.bf16.mxu0 %v11291_v47  ;;  %v9640_v52 = vadd.s32 16, %v9635_v50  ;;  %v9645_v53 = vadd.s32 8, %v9635_v50  ;;  %s11422_s0 = sld [smem:[#allocation39_spill]]  ;;  %s11474_s3 = sld [smem:[#allocation50_spill]] }
 0x163   :  { %v1470_v3 = vld [vmem:[%s11411_s21] sm:$0xff]  ;;  %v1471_v4 = vld [vmem:[%s11411_s21 + $0x8] sm:$0xff]  ;;  %v1472_v7 = vld [vmem:[%s11411_s21 + $0x10] sm:$0xff]  ;;  %v9648_v54 = vadd.s32 24, %v9635_v50  ;;  %v9657_v57 = vadd.s32 32, %v9635_v50  ;;  %v454_v58 = vcvt.s32.f32 %v9635_v50  ;;  %v9663_v62 = vadd.s32 40, %v9635_v50 }
 0x164   :  { %v337_v5 = vld [vmem:[%s11412_s19] sm:$0xff]  ;;  %v8172_v6 = vpack.c.bf16 %v1471_v4, %v1470_v3  ;;  %v1473_v8 = vld [vmem:[%s11411_s21 + $0x18] sm:$0x1]  ;;  %v338_v9 = vld [vmem:[%s11412_s19 + $0x8] sm:$0xff]  ;;  %v456_v61 = vcvt.s32.f32 %v9640_v52  ;;  %v455_v63 = vcvt.s32.f32 %v9645_v53  ;;  %s11483_s30 = sld [smem:[#allocation40_spill]] }
 0x165   :  { %vm343_vm3 = vcmp.lt.s32.totalorder %v337_v5, 15  ;;  %v8176_v11 = vpack.c.bf16 %v1473_v8, %v1472_v7  ;;  %vm345_vm5 = vcmp.lt.s32.totalorder %v338_v9, 15  ;;  %v339_v15 = vld [vmem:[%s11412_s19 + $0x10] sm:$0xff]  ;;  %v340_v17 = vld [vmem:[%s11412_s19 + $0x18] sm:$0xff]  ;;  %v341_v18 = vld [vmem:[%s11412_s19 + $0x20] sm:$0xff]  ;;  %8169 = vmatpush3.bf16.msra.mxu0 %v11291_v47  ;;  %v457_v0 = vcvt.s32.f32 %v9648_v54 }
 0x166   :  { %v344_v10 = vsel %vm343_vm3, %v337_v5, 15  ;;  %8173 = vmatprep.subr.bf16.mxu1 %v8172_v6  ;;  %v346_v16 = vsel %vm345_vm5, %v338_v9, 15  ;;  %vm347_vm6 = vcmp.lt.s32.totalorder %v339_v15, 15  ;;  %vm349_vm7 = vcmp.lt.s32.totalorder %v340_v17, 15  ;;  %v342_v21 = vld [vmem:[%s11412_s19 + $0x28] sm:$0xff]  ;;  %v355_v29 = vld [vmem:[%s11415_s17] sm:$0xff]  ;;  %8170 = vmatprep.subr.bf16.mxu0 %v11291_v47 }
 0x167   :  { %376 = vperm.xlu0 %8869, %v344_v10   ;;  %8175 = vmatpush3.bf16.msra.mxu1 %v8172_v6  ;;  %v348_v20 = vsel %vm347_vm6, %v339_v15, 15  ;;  %vm351_vm8 = vcmp.lt.s32.totalorder %v341_v18, 15  ;;  %v350_v24 = vsel %vm349_vm7, %v340_v17, 15  ;;  %vm353_vm9 = vcmp.lt.s32.totalorder %v342_v21, 15  ;;  %v356_v31 = vld [vmem:[%s11415_s17 + $0x8] sm:$0xff]  ;;  %v357_v32 = vld [vmem:[%s11415_s17 + $0x10] sm:$0xff] }
 0x168   :  { %8178 = vmatprep.subr.msk.bf16.mxu1 %vm9595_vm2, %v8176_v11  ;;  %382 = vperm.xlu1 %8870, %v348_v20   ;;  %v352_v26 = vsel %vm351_vm8, %v341_v18, 15  ;;  %v354_v28 = vsel %vm353_vm9, %v342_v21, 15  ;;  %vm361_vm10 = vcmp.lt.s32.totalorder %v355_v29, 15  ;;  %vm363_vm11 = vcmp.lt.s32.totalorder %v356_v31, 15  ;;  %v358_v36 = vld [vmem:[%s11415_s17 + $0x18] sm:$0xff]  ;;  %v359_v39 = vld [vmem:[%s11415_s17 + $0x20] sm:$0xff] }
 0x169   :  { %v362_v30 = vsel %vm361_vm10, %v355_v29, 15  ;;  %v364_v34 = vsel %vm363_vm11, %v356_v31, 15  ;;  %vm365_vm12 = vcmp.lt.s32.totalorder %v357_v32, 15  ;;  %vm367_vm13 = vcmp.lt.s32.totalorder %v358_v36, 15  ;;  %v360_v41 = vld [vmem:[%s11415_s17 + $0x28] sm:$0xff]  ;;  %8171 = vmatpush3.bf16.msra.mxu0 %v11291_v47 }
 0x16a   :  { %v366_v38 = vsel %vm365_vm12, %v357_v32, 15  ;;  %v368_v40 = vsel %vm367_vm13, %v358_v36, 15  ;;  %vm369_vm14 = vcmp.lt.s32.totalorder %v359_v39, 15  ;;  %vm371_vm15 = vcmp.lt.s32.totalorder %v360_v41, 15  ;;  %v1762_v10 = vld [vmem:[%s11416_s29 + $0x8] sm:$0xff] }
 0x16b   :  { %379 = vperm.xlu0 %8869, %v346_v16   ;;  %8181 = vmatpush3.bf16.msk.msra.mxu1 %vm9595_vm2, %v8176_v11  ;;  %v370_v42 = vsel %vm369_vm14, %v359_v39, 15  ;;  %v372_v43 = vsel %vm371_vm15, %v360_v41, 15  ;;  %v458_v3 = vcvt.s32.f32 %v9657_v57  ;;  %vm11262_vm3 = vcmask 130048   ;;  %v1764_v11 = vld [vmem:[%s11416_s29 + $0x18] sm:$0xff]  ;;  %v6771_v44 = vld [vmem:[%s11418_s28] ss:$0 sm:$0xff] }
 0x16c   :  { %8183 = vmatprep.subr.bf16.mxu1 %v8182_v19  ;;  %385 = vperm.xlu1 %8870, %v350_v24   ;;  %v459_v9 = vcvt.s32.f32 %v9663_v62  ;;  %v8200_v14 = vpack.c.bf16 %v1764_v11, %v1762_v10  ;;  %v1770_v10 = vld [vmem:[%s11416_s29 + $0x48] sm:$0xff]  ;;  %v1772_v11 = vld [vmem:[%s11416_s29 + $0x58] sm:$0xff] }
 0x16e   :  { %7790 = vmatmul.mubr.msk.f32.vlgmr.msra.gmra.mrb[0].mxu1 %vm1481_vm4, %v1469_v25  ;;  %8201 = vmatprep.subr.bf16.mxu0 %v8200_v14  ;;  %v1769_v14 = vld [vmem:[%s11416_s29 + $0x40] sm:$0xff] }
 0x16f   :  { %388 = vperm.xlu0 %8869, %v352_v26   ;;  %8185 = vmatpush3.bf16.msra.mxu1 %v8182_v19 }
 0x170   :  { %7800 = vmatprep.mubr.msk.f32.mxu1 %vm1481_vm4, %v1468_v12  ;;  %8188 = vmatprep.subr.msk.bf16.mxu1 %vm9595_vm2, %v8186_v27 }
 0x171   :  { %391 = vperm.xlu1 %8870, %v354_v28  }
 0x173   :  { %8191 = vmatpush3.bf16.msk.msra.mxu1 %vm9595_vm2, %v8186_v27 }
 0x174   :  { %8193 = vmatprep.subr.bf16.mxu1 %v8192_v37 }
 0x175   :  { %400 = vperm.xlu1 %8870, %v362_v30  }
 0x176   :  { %7801 = vmatmul.mubr.msk.f32.vlgmr.msra.gmra.mrb[2].mxu1 %vm1481_vm4, %v1469_v25 }
 0x177   :  { %8195 = vmatpush3.bf16.msra.mxu1 %v8192_v37 }
 0x178   :  { %8197 = vmatprep.subr.bf16.mxu1 %v8196_v46 }
 0x179   :  { %403 = vperm.xlu1 %8870, %v364_v34  }
 0x17b   :  { %8199 = vmatpush3.bf16.msra.mxu1 %v8196_v46 }
 0x17d   :  { %406 = vperm.xlu1 %8870, %v366_v38  }
 0x181   :  { %409 = vperm.xlu1 %8870, %v368_v40  }
 0x185   :  { %412 = vperm.xlu1 %8870, %v370_v42  }
 0x189   :  { %415 = vperm.xlu1 %8870, %v372_v43  }
 0x1e6   :  { %v9637_v51 = vpop.permute.xlu0 %376 }
 0x1e7   :  { %vm393_vm0 = vcmp.eq.s32.totalorder %v9633_v49, %v9637_v51  ;;  %v383_v59 = vpop.permute.xlu1 %382 }
 0x1e8   :  { %v9654_v56 = vsel %vm393_vm0, 1.0, %v11281_v55  ;;  %vm395_vm2 = vcmp.eq.s32.totalorder %v9633_v49, %v383_v59  ;;  %v460_v4 = vsel %vm393_vm0, %v454_v58, -1.0 }
 0x1e9   :  { %508 = vxpose.xlu0.b32.start [1/6] (short) (narrow) %v9654_v56, 16  ;;  %v9682_v6 = vsel %vm395_vm2, 1.0, %v11281_v55  ;;  %v462_v7 = vsel %vm395_vm2, %v456_v61, -1.0  ;;  %v467_v15 = vsel %vm11262_vm3, %v460_v4, -inf }
 0x1ea   :  { %v380_v60 = vpop.permute.xlu0 %379  ;;  %v469_v17 = vsel %vm11262_vm3, %v462_v7, -inf  ;;  %v1765_v7 = vld [vmem:[%s11416_s29 + $0x20] sm:$0xff] }
 0x1eb   :  { %vm394_vm1 = vcmp.eq.s32.totalorder %v9633_v49, %v380_v60  ;;  %v386_v5 = vpop.permute.xlu1 %385  ;;  %v1761_v60 = vld [vmem:[%s11416_s29] sm:$0xff] }
 0x1ec   :  { %v9672_v2 = vsel %vm394_vm1, 1.0, %v11281_v55  ;;  %vm396_vm4 = vcmp.eq.s32.totalorder %v9633_v49, %v386_v5  ;;  %v461_v12 = vsel %vm394_vm1, %v455_v63, -1.0 }
 0x1ed   :  { %509 = vxpose.xlu0.b32.cont [2/6] (short) (narrow) %v9672_v2, 16  ;;  %v463_v13 = vsel %vm396_vm4, %v457_v0, -1.0  ;;  %v468_v20 = vsel %vm11262_vm3, %v461_v12, -inf  ;;  %v9705_v21 = vsel %vm396_vm4, 1.0, %v11281_v55 }
 0x1ee   :  { %v389_v8 = vpop.permute.xlu0 %388  ;;  %v470_v22 = vsel %vm11262_vm3, %v463_v13, -inf  ;;  %v8208_v13 = vpack.c.bf16 %v1772_v11, %v1770_v10  ;;  %v9944_v10 = vadd.s32 200, %v9635_v50  ;;  %v11443_v11 = vmov 0 }
 0x1ef   :  { %vm397_vm5 = vcmp.eq.s32.totalorder %v9633_v49, %v389_v8  ;;  %v476_v26 = vmax.f32 %v469_v17, %v470_v22  ;;  %v1767_v8 = vld [vmem:[%s11416_s29 + $0x30] sm:$0xff]  ;;  %v1774_v17 = vld [vmem:[%s11416_s29 + $0x68] sm:$0xff] }
 0x1f0   :  { %v464_v16 = vsel %vm397_vm5, %v458_v3, -1.0  ;;  %v392_v19 = vpop.permute.xlu1 %391  ;;  %v9716_v28 = vsel %vm397_vm5, 1.0, %v11281_v55  ;;  %v8206_v12 = vpack.c.bf16 %v1767_v8, %v1765_v7  ;;  %v1775_v22 = vld [vmem:[%s11416_s29 + $0x70] sm:$0xff]  ;;  %v11440_v7 = vmov 0 }
 0x1f1   :  { %510 = vxpose.xlu0.b32.cont [3/6] (short) (narrow) %v9682_v6, 16  ;;  %v471_v18 = vsel %vm11262_vm3, %v464_v16, -inf  ;;  %vm398_vm6 = vcmp.eq.s32.totalorder %v9633_v49, %v392_v19  ;;  %v9931_v8 = vadd.s32 192, %v9635_v50 }
 0x1f2   :  { %v472_v23 = vmax.f32 %v467_v15, %v471_v18  ;;  %v465_v24 = vsel %vm398_vm6, %v459_v9, -1.0  ;;  %v9722_v31 = vsel %vm398_vm6, 1.0, %v11281_v55  ;;  %v1771_v15 = vld [vmem:[%s11416_s29 + $0x50] sm:$0xff]  ;;  %v1776_v18 = vld [vmem:[%s11416_s29 + $0x78] sm:$0xff] }
 0x1f3   :  { %v473_v25 = vsel %vm11262_vm3, %v465_v24, -inf  ;;  %11417 = vst [vmem:[#allocation51_spill] sm:$0xff] %v9722_v31  ;;  %v8210_v16 = vpack.c.bf16 %v1771_v15, %v1769_v14  ;;  %v8212_v19 = vpack.c.bf16 %v1776_v18, %v1774_v17  ;;  %v6767_v24 = vld [vmem:[%s11421_s2] ss:$0 sm:$0xff]  ;;  %v11446_v14 = vmov 0 }
 0x1f4   :  { %v474_v27 = vmax.f32 %v468_v20, %v473_v25  ;;  %v1773_v20 = vld [vmem:[%s11416_s29 + $0x60] sm:$0xff]  ;;  %v9979_v15 = vadd.s32 208, %v9635_v50  ;;  %v11449_v17 = vmov 0  ;;  %v10003_v18 = vadd.s32 80, %v9635_v50 }
 0x1f5   :  { %511 = vxpose.xlu0.b32.cont [4/6] (short) (narrow) %v9705_v21, 16 }
 0x1f6   :  { %v475_v29 = vmax.f32 %v472_v23, %v474_v27  ;;  %v8214_v23 = vpack.c.bf16 %v1775_v22, %v1773_v20  ;;  %v11452_v20 = vmov 0  ;;  %v10027_v22 = vadd.s32 224, %v9635_v50 }
 0x1f8   :  { %v477_v30 = vmax.f32 %v475_v29, %v476_v26  ;;  %v6777_v26 = vld [vmem:[#allocation10] ss:$0 sm:$0xff] }
 0x1f9   :  { %512 = vxpose.xlu0.b32.cont [5/6] (short) (narrow) %v9716_v28, 16 }
 0x1fa   :  { %v478_v32 = vrot.slane %v477_v30, 4 }
 0x1fc   :  { %v479_v33 = vmax.f32 %v477_v30, %v478_v32 }
 0x1fd   :  { %513 = vxpose.xlu0.b32.end [6/6] (short) (narrow) %v9722_v31, 16 }
 0x1fe   :  { %v480_v34 = vrot.slane %v479_v33, 2 }
 0x200   :  { %v481_v35 = vmax.f32 %v479_v33, %v480_v34 }
 0x202   :  { %v482_v36 = vrot.slane %v481_v35, 1 }
 0x204   :  { %v483_v37 = vmax.f32 %v481_v35, %v482_v36 }
 0x206   :  { %vm484_vm7 = vcmp.eq.f32.partialorder %v454_v58, %v483_v37  ;;  %vm485_vm8 = vcmp.eq.f32.partialorder %v455_v63, %v483_v37  ;;  %vm486_vm11 = vcmp.eq.f32.partialorder %v456_v61, %v483_v37  ;;  %vm487_vm13 = vcmp.eq.f32.partialorder %v457_v0, %v483_v37  ;;  %v1763_v61 = vld [vmem:[%s11416_s29 + $0x10] sm:$0xff]  ;;  %v1766_v0 = vld [vmem:[%s11416_s29 + $0x28] sm:$0xff] }
 0x207   :  { %vm490_vm9 = vmand %vm393_vm0, %vm484_vm7  ;;  %vm488_vm15 = vcmp.eq.f32.partialorder %v458_v3, %v483_v37  ;;  %v1768_v3 = vld [vmem:[%s11416_s29 + $0x38] sm:$0xff]  ;;  %v8202_v4 = vpack.c.bf16 %v1763_v61, %v1761_v60  ;;  %v11434_v60 = vmov 0  ;;  %v9883_v61 = vadd.s32 176, %v9635_v50 }
 0x208   :  { %v6579_v38 = vsel %vm490_vm9, 1.0, %v11281_v55  ;;  %vm491_vm10 = vmand %vm394_vm1, %vm485_vm8  ;;  %vm489_vm1 = vcmp.eq.f32.partialorder %v459_v9, %v483_v37  ;;  %v8204_v5 = vpack.c.bf16 %v1768_v3, %v1766_v0  ;;  %v9896_v0 = vadd.s32 184, %v9635_v50 }
 0x209   :  { %2567 = vxpose.xlu1.b32.start [1/6] (short) (narrow) %v6579_v38, 16  ;;  %v6580_v39 = vsel %vm491_vm10, 1.0, %v11281_v55  ;;  %vm492_vm12 = vmand %vm395_vm2, %vm486_vm11  ;;  %v5874_v38 = vld [vmem:[%s11422_s0] sm:$0xff]  ;;  %v11437_v3 = vmov 0 }
 0x20a   :  { %v6581_v40 = vsel %vm492_vm12, 1.0, %v11281_v55  ;;  %vm493_vm14 = vmand %vm396_vm4, %vm487_vm13  ;;  %vm11260_vm4 = vcmask 261120  }
 0x20b   :  { %v6582_v41 = vsel %vm493_vm14, 1.0, %v11281_v55  ;;  %vm494_vm0 = vmand %vm397_vm5, %vm488_vm15  ;;  %vm11261_vm5 = vcmask 392192  }
 0x20c   :  { %v6583_v42 = vsel %vm494_vm0, 1.0, %v11281_v55  ;;  %vm495_vm2 = vmand %vm398_vm6, %vm489_vm1  ;;  %vm11259_vm6 = vcmask 523264  }
 0x20d   :  { %2568 = vxpose.xlu1.b32.cont [2/6] (short) (narrow) %v6580_v39, 16  ;;  %v6584_v43 = vsel %vm495_vm2, 1.0, %v11281_v55  ;;  %v5875_v39 = vld [vmem:[%s11422_s0 + $0x8] sm:$0xff] }
 0x211   :  { %2569 = vxpose.xlu1.b32.cont [3/6] (short) (narrow) %v6581_v40, 16  ;;  %v9785_v40 = vadd.s32 128, %v9635_v50 }
 0x215   :  { %2570 = vxpose.xlu1.b32.cont [4/6] (short) (narrow) %v6582_v41, 16  ;;  %v9788_v41 = vadd.s32 136, %v9635_v50 }
 0x219   :  { %2571 = vxpose.xlu1.b32.cont [5/6] (short) (narrow) %v6583_v42, 16  ;;  %v9791_v42 = vmul.u32 64, %v9633_v49 }
 0x21b   :  { %vm679_vm9 = vcmp.ge.s32.totalorder %v9785_v40, %v9791_v42  ;;  %vm680_vm10 = vcmp.ge.s32.totalorder %v9788_v41, %v9791_v42  ;;  %vm663_vm14 = vcmp.ge.s32.totalorder %v9635_v50, %v9791_v42  ;;  %vm664_vm1 = vcmp.ge.s32.totalorder %v9645_v53, %v9791_v42 }
 0x21d   :  { %2572 = vxpose.xlu1.b32.end [6/6] (short) (narrow) %v6584_v43, 16  ;;  %v695_v43 = vadd.s32 1, %v9633_v49 }
 0x249   :  { %v7802_v45 = vpop.f32.mrb[2].mxu1 }
 0x24a   :  { %v1653_v46 = vadd.f32 %v7802_v45, %v6771_v44  ;;  %v1647_v48 = vpop.f32.mrb[3].mxu1  ;;  %v9812_v45 = vadd.s32 152, %v9635_v50 }
 0x24b   :  { %v1648_v51 = vadd.f32 %v6771_v44, %v1647_v48  ;;  %v9805_v44 = vadd.s32 144, %v9635_v50  ;;  %v11428_v48 = vmov 0 }
 0x24c   :  { %v1657_v59 = vmax.f32 %v1653_v46, 0.0  ;;  %v11425_v46 = vmov 0 }
 0x24d   :  { %v1656_v58 = vmax.f32 %v1648_v51, 0.0  ;;  %v9841_v51 = vadd.s32 160, %v9635_v50 }
 0x24f   :  { %7811 = vmatprep.mubr.msk.f32.mxu1 %vm11260_vm4, %v1656_v58  ;;  %v9854_v58 = vadd.s32 168, %v9635_v50 }
 0x250   :  { %7812 = vmatmul.mubr.msk.f32.vlgmr.msra.gmra.mrb[0].mxu1 %vm11260_vm4, %v1657_v59  ;;  %v11431_v59 = vmov 0 }
 0x269   :  { %v9749_v63 = vpop.trf.xlu0 }
 0x26a   :  { %11419 = vst [vmem:[#allocation52_spill] sm:$0xff] %v9749_v63  ;;  %7778 = vmatprep.mubr.msk.f32.mxu0 %vm11261_vm5, %v9749_v63 }
 0x26d   :  { %v9757_v9 = vpop.trf.xlu0 }
 0x26e   :  { %11420 = vst [vmem:[#allocation53_spill] sm:$0xff] %v9757_v9  ;;  %7779 = vmatmul.mubr.msk.f32.vlgmr.msra.gmra.mrb[0].mxu0 %vm11261_vm5, %v9757_v9 }
 0x26f   :  { %8203 = vmatpush1.bf16.msra.mxu0 %v8202_v4  ;;  %1860 = vmatprep.mubr.f32.mxu0 %v11281_v55  ;;  %v9907_v4 = vadd.s32 48, %v9635_v50 }
 0x270   :  { %8205 = vmatprep.subr.bf16.mxu0 %v8204_v5  ;;  %v9920_v5 = vadd.s32 56, %v9635_v50 }
 0x273   :  { %8207 = vmatpush1.bf16.msra.mxu0 %v8206_v12  ;;  %v9955_v12 = vadd.s32 64, %v9635_v50 }
 0x274   :  { %8209 = vmatprep.subr.bf16.mxu0 %v8208_v13  ;;  %v9968_v13 = vadd.s32 72, %v9635_v50 }
 0x277   :  { %8211 = vmatpush1.bf16.msra.mxu0 %v8210_v16  ;;  %v9992_v16 = vadd.s32 216, %v9635_v50 }
 0x278   :  { %8213 = vmatprep.subr.bf16.mxu0 %v8212_v19  ;;  %v10016_v19 = vadd.s32 88, %v9635_v50 }
 0x27b   :  { %8215 = vmatpush1.bf16.msra.mxu0 %v8214_v23  ;;  %v10040_v23 = vadd.s32 232, %v9635_v50 }
 0x27d   :  { %11455 = vst [vmem:[#allocation66_spill] sm:$0xff] %v10040_v23 }
 0x323   :  { %v7813_v25 = vpop.f32.mrb[0].mxu1 }
 0x324   :  { %v1735_v27 = vpop.f32.mrb[1].mxu1  ;;  %v8768_v30 = vadd.f32 %v7813_v25, %v6767_v24  ;;  %v10065_v25 = vadd.s32 96, %v9635_v50 }
 0x325   :  { %v8769_v29 = vadd.f32 %v6767_v24, %v1735_v27  ;;  %v11456_v24 = vmov 0  ;;  %v11461_v27 = vmov 0 }
 0x326   :  { %v9776_v33 = vadd.f32 %v8768_v30, %v6777_v26  ;;  %11459 = vst [vmem:[#allocation68_spill] sm:$0xff] %v10065_v25  ;;  %v10092_v30 = vadd.s32 248, %v9635_v50 }
 0x327   :  { %v9771_v32 = vadd.f32 %v8769_v29, %v6777_v26  ;;  %v10068_v26 = vadd.s32 104, %v9635_v50  ;;  %v10089_v29 = vadd.s32 240, %v9635_v50 }
 0x328   :  { %11424 = vst [vmem:[#allocation55_spill] sm:$0xff] %v9776_v33  ;;  %11465 = vst [vmem:[#allocation72_spill] sm:$0xff] %v10092_v30 }
 0x329   :  { %11423 = vst [vmem:[#allocation54_spill] sm:$0xff] %v9771_v32  ;;  %6778 = vmatmul.mubr.msk.f32.vlgmr.msra.gmra.mrb[2].mxu0 %vm11259_vm6, %v9771_v32  ;;  %11460 = vst [vmem:[#allocation69_spill] sm:$0xff] %v10068_v26 }
 0x32a   :  { %1866 = vmatprep.mubr.f32.mxu0 %v11281_v55  ;;  %11464 = vst [vmem:[#allocation71_spill] sm:$0xff] %v10089_v29  ;;  %v1777_v55 = vld [vmem:[#allocation23] sm:$0x3] }
 0x32d   :  { %6779 = vmatmul.mubr.msk.f32.gmra.mrb[4].mxu0 %vm11259_vm6, %v9776_v33  ;;  %v10162_v33 = vsub.s32 1, %v9635_v50 }
 0x32f   :  { %11482 = vst [vmem:[#allocation80_spill] sm:$0xff] %v10162_v33 }
 0x341   :  { %v7780_v34 = vpop.f32.mrb[0].mxu0 }
 0x342   :  { %vm623_vm7 = vcmp.gt.f32.partialorder %v7780_v34, 0.0  ;;  %v613_v35 = vpop.f32.mrb[1].mxu0  ;;  %v11466_v34 = vmov 0 }
 0x343   :  { %v625_v36 = vsel %vm623_vm7, 1, %v9325_v1  ;;  %vm622_vm8 = vcmp.gt.f32.partialorder %v613_v35, 0.0  ;;  %v10099_v35 = vadd.s32 112, %v9635_v50 }
 0x344   :  { %v624_v37 = vsel %vm622_vm8, 1, %v9325_v1  ;;  %630 = vperm.xlu1 %8870, %v625_v36   ;;  %v9796_v1 = vmul.u32 64, %v695_v43  ;;  %v10110_v36 = vadd.s32 120, %v9635_v50  ;;  %v401_v43 = vpop.permute.xlu1 %400 }
 0x345   :  { %627 = vperm.xlu0 %8869, %v624_v37   ;;  %11469 = vst [vmem:[#allocation74_spill] sm:$0xff] %v10099_v35  ;;  %v11471_v37 = vmov 0 }
 0x346   :  { %vm713_vm11 = vcmp.lt.s32.totalorder %v9785_v40, %v9796_v1  ;;  %vm714_vm12 = vcmp.lt.s32.totalorder %v9788_v41, %v9796_v1  ;;  %vm697_vm15 = vcmp.lt.s32.totalorder %v9635_v50, %v9796_v1  ;;  %vm698_vm2 = vcmp.lt.s32.totalorder %v9645_v53, %v9796_v1  ;;  %11470 = vst [vmem:[#allocation75_spill] sm:$0xff] %v10110_v36 }
 0x347   :  { %vm745_vm13 = vmand %vm679_vm9, %vm713_vm11  ;;  %vm681_vm9 = vcmp.ge.s32.totalorder %v9805_v44, %v9791_v42 }
 0x348   :  { %vm746_vm0 = vmand %vm680_vm10, %vm714_vm12  ;;  %vm715_vm10 = vcmp.lt.s32.totalorder %v9805_v44, %v9796_v1  ;;  %vm682_vm12 = vcmp.ge.s32.totalorder %v9812_v45, %v9791_v42  ;;  %v10164_v32 = vpop.permute.xlu1 %403 }
 0x349   :  { %5879 = vperm.xlu0 %8869, %v5874_v38   ;;  %vm9818_vm7 = vmpackc.low %vm746_vm0, %vm745_vm13  ;;  %vm716_vm13 = vcmp.lt.s32.totalorder %v9812_v45, %v9796_v1  ;;  %v11475_v38 = vmov 0 }
 0x34a   :  { %v11426_v46 = vsel %vm9818_vm7, 4294967295, %v11425_v46  ;;  %8217 = vmatprep.subr.msk.bf16.mxu1 %vm9818_vm7, %v11291_v47  ;;  %8249 = vmatprep.subr.msk.bf16.mxu0 %vm9818_vm7, %v11291_v47  ;;  %vm729_vm8 = vmand %vm663_vm14, %vm697_vm15  ;;  %vm665_vm15 = vcmp.ge.s32.totalorder %v9640_v52, %v9791_v42 }
 0x34b   :  { %11427 = vst [vmem:[#allocation56_spill] sm:$0xff] %v11426_v46  ;;  %vm730_vm11 = vmand %vm664_vm1, %vm698_vm2  ;;  %vm699_vm1 = vcmp.lt.s32.totalorder %v9640_v52, %v9796_v1 }
 0x34c   :  { %vm9836_vm0 = vmpackc.low %vm730_vm11, %vm729_vm8  ;;  %vm666_vm8 = vcmp.ge.s32.totalorder %v9648_v54, %v9791_v42  ;;  %vm700_vm11 = vcmp.lt.s32.totalorder %v9648_v54, %v9796_v1 }
 0x34d   :  { %5884 = vperm.xlu0 %8869, %v5875_v39   ;;  %v11429_v48 = vsel %vm9836_vm0, 4294967295, %v11428_v48  ;;  %8219 = vmatpush3.bf16.msk.msra.mxu1 %vm9836_vm0, %v11291_v47  ;;  %vm747_vm14 = vmand %vm681_vm9, %vm715_vm10  ;;  %vm683_vm10 = vcmp.ge.s32.totalorder %v9841_v51, %v9791_v42  ;;  %v11478_v39 = vmov 0 }
 0x34e   :  { %11430 = vst [vmem:[#allocation57_spill] sm:$0xff] %v11429_v48  ;;  %8251 = vmatpush3.bf16.msk.msra.mxu0 %vm9836_vm0, %v11291_v47  ;;  %vm748_vm2 = vmand %vm682_vm12, %vm716_vm13  ;;  %vm717_vm12 = vcmp.lt.s32.totalorder %v9841_v51, %v9796_v1 }
 0x34f   :  { %vm9860_vm6 = vmpackc.low %vm748_vm2, %vm747_vm14  ;;  %vm684_vm14 = vcmp.ge.s32.totalorder %v9854_v58, %v9791_v42  ;;  %vm718_vm2 = vcmp.lt.s32.totalorder %v9854_v58, %v9796_v1 }
 0x350   :  { %v11432_v59 = vsel %vm9860_vm6, 4294967295, %v11431_v59  ;;  %8221 = vmatprep.subr.msk.bf16.mxu1 %vm9860_vm6, %v11291_v47  ;;  %8253 = vmatprep.subr.msk.bf16.mxu0 %vm9860_vm6, %v11291_v47  ;;  %vm731_vm9 = vmand %vm665_vm15, %vm699_vm1  ;;  %vm667_vm1 = vcmp.ge.s32.totalorder %v9657_v57, %v9791_v42 }
 0x351   :  { %11433 = vst [vmem:[#allocation58_spill] sm:$0xff] %v11432_v59  ;;  %vm732_vm13 = vmand %vm666_vm8, %vm700_vm11  ;;  %vm701_vm8 = vcmp.lt.s32.totalorder %v9657_v57, %v9796_v1 }
 0x352   :  { %vm9878_vm4 = vmpackc.low %vm732_vm13, %vm731_vm9  ;;  %vm668_vm9 = vcmp.ge.s32.totalorder %v9663_v62, %v9791_v42  ;;  %vm702_vm13 = vcmp.lt.s32.totalorder %v9663_v62, %v9796_v1 }
 0x353   :  { %v11435_v60 = vsel %vm9878_vm4, 4294967295, %v11434_v60  ;;  %8223 = vmatpush3.bf16.msk.msra.mxu1 %vm9878_vm4, %v11291_v47  ;;  %8255 = vmatpush3.bf16.msk.msra.mxu0 %vm9878_vm4, %v11291_v47  ;;  %vm749_vm15 = vmand %vm683_vm10, %vm717_vm12  ;;  %vm685_vm12 = vcmp.ge.s32.totalorder %v9883_v61, %v9791_v42 }
 0x354   :  { %11436 = vst [vmem:[#allocation59_spill] sm:$0xff] %v11435_v60  ;;  %vm750_vm11 = vmand %vm684_vm14, %vm718_vm2  ;;  %vm719_vm14 = vcmp.lt.s32.totalorder %v9883_v61, %v9796_v1 }
 0x355   :  { %vm9902_vm5 = vmpackc.low %vm750_vm11, %vm749_vm15  ;;  %vm686_vm15 = vcmp.ge.s32.totalorder %v9896_v0, %v9791_v42  ;;  %vm720_vm11 = vcmp.lt.s32.totalorder %v9896_v0, %v9796_v1 }
 0x356   :  { %v11438_v3 = vsel %vm9902_vm5, 4294967295, %v11437_v3  ;;  %8225 = vmatprep.subr.msk.bf16.mxu1 %vm9902_vm5, %v11291_v47  ;;  %8257 = vmatprep.subr.msk.bf16.mxu0 %vm9902_vm5, %v11291_v47  ;;  %vm733_vm10 = vmand %vm667_vm1, %vm701_vm8  ;;  %vm669_vm8 = vcmp.ge.s32.totalorder %v9907_v4, %v9791_v42 }
 0x357   :  { %11439 = vst [vmem:[#allocation60_spill] sm:$0xff] %v11438_v3  ;;  %vm734_vm2 = vmand %vm668_vm9, %vm702_vm13  ;;  %vm703_vm9 = vcmp.lt.s32.totalorder %v9907_v4, %v9796_v1 }
 0x358   :  { %vm9926_vm3 = vmpackc.low %vm734_vm2, %vm733_vm10  ;;  %vm670_vm10 = vcmp.ge.s32.totalorder %v9920_v5, %v9791_v42  ;;  %vm704_vm2 = vcmp.lt.s32.totalorder %v9920_v5, %v9796_v1 }
 0x359   :  { %v11441_v7 = vsel %vm9926_vm3, 4294967295, %v11440_v7  ;;  %8227 = vmatpush3.bf16.msk.msra.mxu1 %vm9926_vm3, %v11291_v47  ;;  %8259 = vmatpush3.bf16.msk.msra.mxu0 %vm9926_vm3, %v11291_v47  ;;  %vm751_vm1 = vmand %vm685_vm12, %vm719_vm14  ;;  %vm687_vm14 = vcmp.ge.s32.totalorder %v9931_v8, %v9791_v42 }
 0x35a   :  { %11442 = vst [vmem:[#allocation61_spill] sm:$0xff] %v11441_v7  ;;  %vm752_vm13 = vmand %vm686_vm15, %vm720_vm11  ;;  %vm721_vm15 = vcmp.lt.s32.totalorder %v9931_v8, %v9796_v1 }
 0x35b   :  { %vm9950_vm5 = vmpackc.low %vm752_vm13, %vm751_vm1  ;;  %vm688_vm1 = vcmp.ge.s32.totalorder %v9944_v10, %v9791_v42  ;;  %vm722_vm13 = vcmp.lt.s32.totalorder %v9944_v10, %v9796_v1 }
 0x35c   :  { %v11444_v11 = vsel %vm9950_vm5, 4294967295, %v11443_v11  ;;  %8229 = vmatprep.subr.msk.bf16.mxu1 %vm9950_vm5, %v11291_v47  ;;  %8261 = vmatprep.subr.msk.bf16.mxu0 %vm9950_vm5, %v11291_v47  ;;  %vm735_vm12 = vmand %vm669_vm8, %vm703_vm9  ;;  %vm671_vm9 = vcmp.ge.s32.totalorder %v9955_v12, %v9791_v42 }
 0x35d   :  { %11445 = vst [vmem:[#allocation62_spill] sm:$0xff] %v11444_v11  ;;  %vm736_vm11 = vmand %vm670_vm10, %vm704_vm2  ;;  %vm705_vm10 = vcmp.lt.s32.totalorder %v9955_v12, %v9796_v1 }
 0x35e   :  { %vm9974_vm3 = vmpackc.low %vm736_vm11, %vm735_vm12  ;;  %vm672_vm12 = vcmp.ge.s32.totalorder %v9968_v13, %v9791_v42  ;;  %vm706_vm11 = vcmp.lt.s32.totalorder %v9968_v13, %v9796_v1 }
 0x35f   :  { %v11447_v14 = vsel %vm9974_vm3, 4294967295, %v11446_v14  ;;  %8231 = vmatpush3.bf16.msk.msra.mxu1 %vm9974_vm3, %v11291_v47  ;;  %8263 = vmatpush3.bf16.msk.msra.mxu0 %vm9974_vm3, %v11291_v47  ;;  %vm753_vm8 = vmand %vm687_vm14, %vm721_vm15  ;;  %vm689_vm15 = vcmp.ge.s32.totalorder %v9979_v15, %v9791_v42 }
 0x360   :  { %11448 = vst [vmem:[#allocation63_spill] sm:$0xff] %v11447_v14  ;;  %vm754_vm2 = vmand %vm688_vm1, %vm722_vm13  ;;  %vm723_vm1 = vcmp.lt.s32.totalorder %v9979_v15, %v9796_v1 }
 0x361   :  { %vm9998_vm5 = vmpackc.low %vm754_vm2, %vm753_vm8  ;;  %vm690_vm8 = vcmp.ge.s32.totalorder %v9992_v16, %v9791_v42  ;;  %vm724_vm2 = vcmp.lt.s32.totalorder %v9992_v16, %v9796_v1 }
 0x362   :  { %v11450_v17 = vsel %vm9998_vm5, 4294967295, %v11449_v17  ;;  %8233 = vmatprep.subr.msk.bf16.mxu1 %vm9998_vm5, %v11291_v47  ;;  %8265 = vmatprep.subr.msk.bf16.mxu0 %vm9998_vm5, %v11291_v47  ;;  %vm737_vm14 = vmand %vm671_vm9, %vm705_vm10  ;;  %vm673_vm10 = vcmp.ge.s32.totalorder %v10003_v18, %v9791_v42 }
 0x363   :  { %11451 = vst [vmem:[#allocation64_spill] sm:$0xff] %v11450_v17  ;;  %vm738_vm13 = vmand %vm672_vm12, %vm706_vm11  ;;  %vm707_vm12 = vcmp.lt.s32.totalorder %v10003_v18, %v9796_v1 }
 0x364   :  { %vm10022_vm3 = vmpackc.low %vm738_vm13, %vm737_vm14  ;;  %vm674_vm14 = vcmp.ge.s32.totalorder %v10016_v19, %v9791_v42  ;;  %vm708_vm13 = vcmp.lt.s32.totalorder %v10016_v19, %v9796_v1 }
 0x365   :  { %v11453_v20 = vsel %vm10022_vm3, 4294967295, %v11452_v20  ;;  %8235 = vmatpush3.bf16.msk.msra.mxu1 %vm10022_vm3, %v11291_v47  ;;  %8267 = vmatpush3.bf16.msk.msra.mxu0 %vm10022_vm3, %v11291_v47  ;;  %vm755_vm9 = vmand %vm689_vm15, %vm723_vm1  ;;  %vm691_vm1 = vcmp.ge.s32.totalorder %v10027_v22, %v9791_v42 }
 0x366   :  { %11454 = vst [vmem:[#allocation65_spill] sm:$0xff] %v11453_v20  ;;  %vm756_vm11 = vmand %vm690_vm8, %vm724_vm2  ;;  %vm725_vm8 = vcmp.lt.s32.totalorder %v10027_v22, %v9796_v1  ;;  %v10170_v20 = vpop.permute.xlu1 %406 }
 0x367   :  { %vm10046_vm5 = vmpackc.low %vm756_vm11, %vm755_vm9  ;;  %vm692_vm9 = vcmp.ge.s32.totalorder %v10040_v23, %v9791_v42  ;;  %vm726_vm11 = vcmp.lt.s32.totalorder %v10040_v23, %v9796_v1 }
 0x368   :  { %v11457_v24 = vsel %vm10046_vm5, 4294967295, %v11456_v24  ;;  %8237 = vmatprep.subr.msk.bf16.mxu1 %vm10046_vm5, %v11291_v47  ;;  %8269 = vmatprep.subr.msk.bf16.mxu0 %vm10046_vm5, %v11291_v47  ;;  %vm739_vm15 = vmand %vm673_vm10, %vm707_vm12 }
 0x369   :  { %11458 = vst [vmem:[#allocation67_spill] sm:$0xff] %v11457_v24  ;;  %vm740_vm2 = vmand %vm674_vm14, %vm708_vm13  ;;  %vm675_vm14 = vcmp.ge.s32.totalorder %v10065_v25, %v9791_v42  ;;  %vm709_vm13 = vcmp.lt.s32.totalorder %v10065_v25, %v9796_v1 }
 0x36a   :  { %vm10070_vm10 = vmpackc.low %vm740_vm2, %vm739_vm15  ;;  %vm676_vm15 = vcmp.ge.s32.totalorder %v10068_v26, %v9791_v42  ;;  %vm710_vm2 = vcmp.lt.s32.totalorder %v10068_v26, %v9796_v1 }
 0x36b   :  { %v11462_v27 = vsel %vm10070_vm10, 4294967295, %v11461_v27  ;;  %8239 = vmatpush3.bf16.msk.msra.mxu1 %vm10070_vm10, %v11291_v47  ;;  %8271 = vmatpush3.bf16.msk.msra.mxu0 %vm10070_vm10, %v11291_v47  ;;  %vm757_vm12 = vmand %vm691_vm1, %vm725_vm8  ;;  %vm728_vm10 = vcmp.lt.s32.totalorder %v10092_v30, %v9796_v1 }
 0x36c   :  { %11463 = vst [vmem:[#allocation70_spill] sm:$0xff] %v11462_v27  ;;  %vm758_vm5 = vmand %vm692_vm9, %vm726_vm11  ;;  %vm693_vm9 = vcmp.ge.s32.totalorder %v10089_v29, %v9791_v42  ;;  %vm694_vm11 = vcmp.ge.s32.totalorder %v10092_v30, %v9791_v42  ;;  %v2413_v30 = vld [vmem:[%s9486_s15] sm:$0xff] }
 0x36d   :  { %vm10094_vm1 = vmpackc.low %vm758_vm5, %vm757_vm12  ;;  %vm727_vm12 = vcmp.lt.s32.totalorder %v10089_v29, %v9796_v1  ;;  %v2414_v29 = vld [vmem:[%s9486_s15 + $0x8] sm:$0xff] }
 0x36e   :  { %v11467_v34 = vsel %vm10094_vm1, 4294967295, %v11466_v34  ;;  %8241 = vmatprep.subr.msk.bf16.mxu1 %vm10094_vm1, %v11291_v47  ;;  %8273 = vmatprep.subr.msk.bf16.mxu0 %vm10094_vm1, %v11291_v47  ;;  %vm741_vm8 = vmand %vm675_vm14, %vm709_vm13  ;;  %vm677_vm13 = vcmp.ge.s32.totalorder %v10099_v35, %v9791_v42 }
 0x36f   :  { %11468 = vst [vmem:[#allocation73_spill] sm:$0xff] %v11467_v34  ;;  %vm742_vm5 = vmand %vm676_vm15, %vm710_vm2  ;;  %vm711_vm15 = vcmp.lt.s32.totalorder %v10099_v35, %v9796_v1  ;;  %v1964_v34 = vld [vmem:[#allocation26] sm:$0x3] }
 0x370   :  { %vm10118_vm3 = vmpackc.low %vm742_vm5, %vm741_vm8  ;;  %vm678_vm8 = vcmp.ge.s32.totalorder %v10110_v36, %v9791_v42  ;;  %vm712_vm5 = vcmp.lt.s32.totalorder %v10110_v36, %v9796_v1  ;;  %v2281_v42 = vld [vmem:[%s11474_s3] sm:$0xf]  ;;  %v10159_v1 = vsub.s32 0, %v9635_v50  ;;  %v1973_v24 = vrot.slane %v1964_v34, %v10162_v33 }
 0x371   :  { %v11472_v37 = vsel %vm10118_vm3, 4294967295, %v11471_v37  ;;  %8243 = vmatpush3.bf16.msk.msra.mxu1 %vm10118_vm3, %v11291_v47  ;;  %8275 = vmatpush3.bf16.msk.msra.mxu0 %vm10118_vm3, %v11291_v47  ;;  %vm759_vm14 = vmand %vm693_vm9, %vm727_vm12  ;;  %vm11356_vm12 = vcmask 1043456  }
 0x372   :  { %11473 = vst [vmem:[#allocation76_spill] sm:$0xff] %v11472_v37  ;;  %vm760_vm2 = vmand %vm694_vm11, %vm728_vm10  ;;  %v1873_v37 = vld [vmem:[#allocation25] sm:$0x3]  ;;  %v1969_v11 = vrot.slane %v1964_v34, %v10159_v1  ;;  %v10186_v34 = vpop.permute.xlu1 %409 }
 0x373   :  { %vm10136_vm1 = vmpackc.low %vm760_vm2, %vm759_vm14  ;;  %11481 = vst [vmem:[#allocation79_spill] sm:$0xff] %v10159_v1  ;;  %v1882_v27 = vrot.slane %v1873_v37, %v10162_v33  ;;  %v1878_v14 = vrot.slane %v1873_v37, %v10159_v1  ;;  %vm417_vm14 = vcmp.eq.s32.totalorder %v9633_v49, %v401_v43  ;;  %v1759_v43 = vld [vmem:[%s11483_s30 + $0x20] sm:$0xff]  ;;  %vm11487_vm2 = vcmask 392192  }
 0x374   :  { %v11476_v38 = vsel %vm10136_vm1, 4294967295, %v11475_v38  ;;  %8245 = vmatprep.subr.msk.bf16.mxu1 %vm10136_vm1, %v11291_v47  ;;  %8277 = vmatprep.subr.msk.bf16.mxu0 %vm10136_vm1, %v11291_v47  ;;  %vm743_vm9 = vmand %vm677_vm13, %vm711_vm15  ;;  %vm11343_vm13 = vcmask 31744   ;;  %vm11485_vm15 = vcmask 130048  }
 0x375   :  { %11477 = vst [vmem:[#allocation77_spill] sm:$0xff] %v11476_v38  ;;  %vm744_vm10 = vmand %vm678_vm8, %vm712_vm5  ;;  %v1782_v38 = vrot.slane %v1777_v55, %v10159_v1  ;;  %vm418_vm8 = vcmp.eq.s32.totalorder %v9633_v49, %v10164_v32  ;;  %vm419_vm5 = vcmp.eq.s32.totalorder %v9633_v49, %v10170_v20 }
 0x376   :  { %vm10146_vm11 = vmpackc.low %vm744_vm10, %vm743_vm9  ;;  %vm420_vm9 = vcmp.eq.s32.totalorder %v9633_v49, %v10186_v34  ;;  %v2416_v34 = vld [vmem:[%s9486_s15 + $0x18] sm:$0xff] }
 0x377   :  { %v11479_v39 = vsel %vm10146_vm11, 4294967295, %v11478_v39  ;;  %8247 = vmatpush3.bf16.msk.msra.mxu1 %vm10146_vm11, %v11291_v47  ;;  %8279 = vmatpush3.bf16.msk.msra.mxu0 %vm10146_vm11, %v11291_v47  ;;  %v1786_v47 = vrot.slane %v1777_v55, %v10162_v33  ;;  %vm11488_vm10 = vmmov %vm11485_vm15 }
 0x378   :  { %11480 = vst [vmem:[#allocation78_spill] sm:$0xff] %v11479_v39  ;;  %7840 = vmatprep.subr.msk.mxu0 %vm11356_vm12, %v2281_v42 }
 0x3fc   :  { %v1862_v39 = vpop.f32.mrb[2].mxu0 }
 0x3fd   :  { %v10172_v17 = vadd.f32 %v1862_v39, %v1782_v38  ;;  %v1864_v7 = vpop.f32.mrb[3].mxu0 }
 0x3fe   :  { %v10176_v3 = vadd.f32 %v1864_v7, %v1786_v47 }
 0x3ff   :  { %v1885_v48 = vmul.f32 %v1878_v14, %v10172_v17  ;;  %v1976_v33 = vmul.f32 %v1969_v11, %v10172_v17 }
 0x400   :  { %v1868_v60 = vpop.f32.mrb[4].mxu0  ;;  %v1886_v59 = vmul.f32 %v1882_v27, %v10176_v3  ;;  %v1977_v55 = vmul.f32 %v1973_v24, %v10176_v3 }
 0x401   :  { %v10182_v46 = vadd.f32 %v1868_v60, %v1782_v38  ;;  %v1870_v39 = vpop.f32.mrb[5].mxu0 }
 0x402   :  { %v10184_v36 = vadd.f32 %v1870_v39, %v1786_v47  ;;  %1953 = vmatprep.mubr.f32.mxu1 %v1886_v59  ;;  %2044 = vmatprep.mubr.f32.mxu0 %v1977_v55  ;;  %v1760_v39 = vld [vmem:[%s11483_s30 + $0x28] sm:$0xff] }
 0x403   :  { %1954 = vmatmul.mubr.f32.vlgmr.msra.gmra.mrb[4].mxu1 %v1885_v48  ;;  %2045 = vmatmul.mubr.f32.vlgmr.msra.gmra.mrb[6].mxu0 %v1976_v33  ;;  %v1887_v59 = vmul.f32 %v1878_v14, %v10182_v46  ;;  %v1978_v38 = vmul.f32 %v1969_v11, %v10182_v46  ;;  %v1755_v33 = vld [vmem:[%s11483_s30] sm:$0xff]  ;;  %v11484_v48 = vmov 0.0   ;;  %v1756_v14 = vld [vmem:[%s11483_s30 + $0x8] sm:$0xff]  ;;  %v1758_v11 = vld [vmem:[%s11483_s30 + $0x18] sm:$0xff] }
 0x404   :  { %v1888_v37 = vmul.f32 %v1882_v27, %v10184_v36  ;;  %v1979_v60 = vmul.f32 %v1973_v24, %v10184_v36  ;;  %7841 = vmatpush3.msk.msra.mxu0 %vm11356_vm12, %v2281_v42  ;;  %v10200_v27 = vsel %vm417_vm14, 1.0, %v11484_v48  ;;  %v413_v24 = vpop.permute.xlu1 %412  ;;  %v1757_v42 = vld [vmem:[%s11483_s30 + $0x10] sm:$0xff]  ;;  %v10239_v32 = vsel %vm420_vm9, 1.0, %v11484_v48 }
 0x405   :  { %vm421_vm14 = vcmp.eq.s32.totalorder %v9633_v49, %v413_v24 }
 0x406   :  { %1958 = vmatprep.mubr.f32.mxu1 %v1888_v37  ;;  %2049 = vmatprep.mubr.f32.mxu0 %v1979_v60 }
 0x407   :  { %1959 = vmatmul.mubr.f32.gmra.mrb[6].mxu1 %v1887_v59  ;;  %2050 = vmatmul.mubr.f32.gmra.mrb[8].mxu0 %v1978_v38 }
 0x408   :  { %7818 = vmatprep.mubr.msk.f32.mxu1 %vm11485_vm15, %v10200_v27  ;;  %7842 = vmatprep.mubr.msk.f32.mxu0 %vm11343_vm13, %v1755_v33  ;;  %v416_v55 = vpop.permute.xlu1 %415  ;;  %vm11489_vm15 = vmmov %vm11488_vm10 }
 0x40b   :  { %7843 = vmatmul.mubr.msk.f32.vlgmr.msra.gmra.mrb[10].mxu0 %vm11343_vm13, %v1756_v14 }
 0x40c   :  { %7845 = vmatprep.mubr.msk.f32.mxu0 %vm11343_vm13, %v1757_v42  ;;  %v10214_v37 = vpop.trf.xlu1 }
 0x40d   :  { %11486 = vst [vmem:[#allocation81_spill] sm:$0xff] %v10214_v37 }
 0x40f   :  { %7846 = vmatmul.mubr.msk.f32.gmra.mrb[12].mxu0 %vm11343_vm13, %v1758_v11 }
 0x410   :  { %7848 = vmatprep.mubr.msk.f32.mxu0 %vm11343_vm13, %v1759_v43 }
 0x413   :  { %7849 = vmatmul.mubr.msk.f32.gmra.mrb[14].mxu0 %vm11343_vm13, %v1760_v39 }
 0x414   :  { %7880 = vmatprep.mubr.msk.f32.mxu0 %vm11487_vm2, %v10214_v37  ;;  %vm422_vm2 = vcmp.eq.s32.totalorder %v9633_v49, %v416_v55 }
 0x4d6   :  { %v7253_v60 = vpop.f32.mrb[4].mxu1  ;;  %v7291_v59 = vpop.f32.mrb[6].mxu0 }
 0x4d7   :  { %v7254_v38 = vpop.f32.mrb[5].mxu1  ;;  %v7292_v33 = vpop.f32.mrb[7].mxu0 }
 0x4d8   :  { %v7255_v14 = vadd.f32 %v7254_v38, %v7253_v60  ;;  %v7293_v42 = vadd.f32 %v7292_v33, %v7291_v59  ;;  %v8288_v60 = vpack.c.bf16 %v2414_v29, %v2413_v30  ;;  %v10242_v29 = vsel %vm421_vm14, 1.0, %v11484_v48 }
 0x4d9   :  { %v10250_v30 = vsel %vm422_vm2, 1.0, %v11484_v48 }
 0x4da   :  { %v7256_v7 = vpop.f32.mrb[6].mxu1  ;;  %v7294_v11 = vpop.f32.mrb[8].mxu0 }
 0x4db   :  { %v7257_v47 = vpop.f32.mrb[7].mxu1  ;;  %v7295_v43 = vpop.f32.mrb[9].mxu0 }
 0x4dc   :  { %v7258_v1 = vadd.f32 %v7257_v47, %v7256_v7  ;;  %v7296_v35 = vadd.f32 %v7295_v43, %v7294_v11  ;;  %v10226_v7 = vsel %vm418_vm8, 1.0, %v11484_v48  ;;  %vm11490_vm8 = vmmov %vm11488_vm10  ;;  %v6856_v47 = vld [vmem:[%s9481_s14] ss:$0 sm:$0xff] }
 0x4de   :  { %v8284_v9 = vpack.c.bf16 %v7258_v1, %v7255_v14  ;;  %v8280_v63 = vpack.c.bf16 %v7296_v35, %v7293_v42  ;;  %v7844_v39 = vpop.f32.mrb[10].mxu0  ;;  %v10229_v35 = vsel %vm419_vm5, 1.0, %v11484_v48  ;;  %vm11491_vm5 = vmmov %vm11490_vm8 }
 0x4df   :  { %v2378_v37 = vpop.f32.mrb[11].mxu0  ;;  %vm11492_vm9 = vmmov %vm11491_vm5  ;;  %v2384_v14 = vadd.f32 %v7844_v39, %v6856_v47 }
 0x4e0   :  { %8281 = vmatprep.subr.bf16.mxu1 %v8280_v63  ;;  %vm11494_vm14 = vmmov %vm11491_vm5  ;;  %v2379_v55 = vadd.f32 %v6856_v47, %v2378_v37 }
 0x4e1   :  { %8283 = vmatpush3.bf16.msra.mxu1 %v8280_v63  ;;  %vm11496_vm2 = vmmov %vm11491_vm5  ;;  %v2408_v11 = vmax.f32 %v2384_v14, 0.0 }
 0x4e2   :  { %8285 = vmatprep.subr.bf16.mxu1 %v8284_v9  ;;  %v7847_v59 = vpop.f32.mrb[12].mxu0  ;;  %v2407_v38 = vmax.f32 %v2379_v55, 0.0 }
 0x4e3   :  { %v2388_v1 = vpop.f32.mrb[13].mxu0  ;;  %v2394_v43 = vadd.f32 %v7847_v59, %v6856_v47 }
 0x4e4   :  { %7819 = vmatmul.mubr.msk.f32.vlgmr.msra.gmra.mrb[8].mxu1 %vm11488_vm10, %v10226_v7  ;;  %vm11493_vm10 = vmmov %vm11491_vm5  ;;  %v2389_v33 = vadd.f32 %v6856_v47, %v2388_v1  ;;  %v6870_v1 = vld [vmem:[%s9491_s23] ss:$0 sm:$0xff] }
 0x4e5   :  { %7821 = vmatprep.mubr.msk.f32.mxu1 %vm11489_vm15, %v10229_v35  ;;  %8287 = vmatpush3.bf16.msra.mxu1 %v8284_v9  ;;  %v2415_v9 = vld [vmem:[%s9486_s15 + $0x10] sm:$0xff]  ;;  %vm11495_vm15 = vmmov %vm11491_vm5 }
 0x4e6   :  { %8289 = vmatprep.subr.bf16.mxu1 %v8288_v60  ;;  %v7850_v63 = vpop.f32.mrb[14].mxu0  ;;  %v8292_v24 = vpack.c.bf16 %v2416_v34, %v2415_v9  ;;  %v2409_v42 = vmax.f32 %v2389_v33, 0.0  ;;  %v2410_v9 = vmax.f32 %v2394_v43, 0.0 }
 0x4e7   :  { %v2398_v20 = vpop.f32.mrb[15].mxu0  ;;  %v2404_v34 = vadd.f32 %v7850_v63, %v6856_v47 }
 0x4e8   :  { %7822 = vmatmul.mubr.msk.f32.gmra.mrb[10].mxu1 %vm11490_vm8, %v10239_v32  ;;  %vm11497_vm8 = vmmov %vm11496_vm2  ;;  %v2399_v37 = vadd.f32 %v6856_v47, %v2398_v20 }
 0x4e9   :  { %7824 = vmatprep.mubr.msk.f32.mxu1 %vm11491_vm5, %v10242_v29  ;;  %vm11498_vm5 = vmmov %vm11496_vm2  ;;  %v2412_v39 = vmax.f32 %v2404_v34, 0.0 }
 0x4ec   :  { %7825 = vmatmul.mubr.msk.f32.gmra.mrb[12].mxu1 %vm11492_vm9, %v10250_v30  ;;  %vm11499_vm9 = vcmask 261120  }
 0x4ed   :  { %7831 = vmatprep.mubr.msk.f32.mxu1 %vm11493_vm10, %v9654_v56  ;;  %vm11500_vm10 = vmmov %vm11499_vm9 }
 0x4f0   :  { %7832 = vmatmul.mubr.msk.f32.vlgmr.msra.gmra.mrb[8].mxu1 %vm11494_vm14, %v9672_v2  ;;  %vm11501_vm14 = vmmov %vm11499_vm9 }
 0x4f1   :  { %7834 = vmatprep.mubr.msk.f32.mxu1 %vm11495_vm15, %v9682_v6  ;;  %8291 = vmatpush3.bf16.msra.mxu1 %v8288_v60  ;;  %v2411_v60 = vmax.f32 %v2399_v37, 0.0  ;;  %vm11502_vm15 = vmmov %vm11499_vm9 }
 0x4f2   :  { %8293 = vmatprep.subr.bf16.mxu1 %v8292_v24 }
 0x4f4   :  { %7835 = vmatmul.mubr.msk.f32.gmra.mrb[10].mxu1 %vm11496_vm2, %v9705_v21  ;;  %vm11503_vm2 = vmmov %vm11499_vm9 }
 0x4f5   :  { %7837 = vmatprep.mubr.msk.f32.mxu1 %vm11497_vm8, %v9716_v28  ;;  %8295 = vmatpush3.bf16.msra.mxu1 %v8292_v24  ;;  %vm11504_vm8 = vmmov %vm11503_vm2 }
 0x4f8   :  { %7838 = vmatmul.mubr.msk.f32.gmra.mrb[12].mxu1 %vm11498_vm5, %v9722_v31 }
 0x4f9   :  { %7859 = vmatprep.mubr.msk.f32.mxu1 %vm11499_vm9, %v2407_v38 }
 0x4fc   :  { %7860 = vmatmul.mubr.msk.f32.vlgmr.msra.gmra.mrb[8].mxu1 %vm11500_vm10, %v2408_v11 }
 0x4fd   :  { %7862 = vmatprep.mubr.msk.f32.mxu1 %vm11501_vm14, %v2409_v42 }
 0x500   :  { %7863 = vmatmul.mubr.msk.f32.gmra.mrb[10].mxu1 %vm11502_vm15, %v2410_v9 }
 0x501   :  { %7865 = vmatprep.mubr.msk.f32.mxu1 %vm11503_vm2, %v2411_v60 }
 0x504   :  { %7866 = vmatmul.mubr.msk.f32.gmra.mrb[12].mxu1 %vm11504_vm8, %v2412_v39  ;;  %vm11506_vm8 = vcmask 392192  }
 0x505   :  { %2991 = vmatprep.mubr.f32.mxu1 %v11484_v48 }
 0x5cf   :  { %v7861_v20 = vpop.f32.mrb[8].mxu1 }
 0x5d0   :  { %v2544_v24 = vadd.f32 %v7861_v20, %v6870_v1  ;;  %v2501_v59 = vpop.f32.mrb[9].mxu1 }
 0x5d1   :  { %v2543_v55 = vadd.f32 %v6870_v1, %v2501_v59 }
 0x5d2   :  { %vm2550_vm5 = vcmp.ge.f32.partialorder %v2544_v24, 0.0  ;;  %v2556_v38 = vmul.f32 0.2, %v2544_v24 }
 0x5d3   :  { %vm2549_vm9 = vcmp.ge.f32.partialorder %v2543_v55, 0.0  ;;  %v2555_v33 = vmul.f32 0.2, %v2543_v55  ;;  %v7864_v14 = vpop.f32.mrb[10].mxu1 }
 0x5d4   :  { %v2546_v63 = vadd.f32 %v7864_v14, %v6870_v1  ;;  %v2511_v47 = vpop.f32.mrb[11].mxu1  ;;  %v2562_v42 = vsel %vm2550_vm5, %v2544_v24, %v2556_v38  ;;  %vm11507_vm5 = vcmask 130048  }
 0x5d5   :  { %v2545_v37 = vadd.f32 %v6870_v1, %v2511_v47  ;;  %v2561_v11 = vsel %vm2549_vm9, %v2543_v55, %v2555_v33  ;;  %v10277_v47 = vpop.trf.xlu1 }
 0x5d6   :  { %vm2552_vm10 = vcmp.ge.f32.partialorder %v2546_v63, 0.0  ;;  %v2558_v43 = vmul.f32 0.2, %v2546_v63  ;;  %v8296_v60 = vpack.c.bf16 %v2562_v42, %v2561_v11  ;;  %11505 = vst [vmem:[#allocation82_spill] sm:$0xff] %v10277_v47  ;;  %v628_v11 = vpop.permute.xlu0 %627 }
 0x5d7   :  { %vm2551_vm14 = vcmp.ge.f32.partialorder %v2545_v37, 0.0  ;;  %v2557_v9 = vmul.f32 0.2, %v2545_v37  ;;  %v7867_v34 = vpop.f32.mrb[12].mxu1  ;;  %vm632_vm13 = vcmp.eq.s32.totalorder %v628_v11, 1 }
 0x5d8   :  { %v2548_v39 = vadd.f32 %v7867_v34, %v6870_v1  ;;  %v2521_v20 = vpop.f32.mrb[13].mxu1  ;;  %8297 = vmatprep.subr.bf16.mxu0 %v8296_v60  ;;  %v2564_v59 = vsel %vm2552_vm10, %v2546_v63, %v2558_v43  ;;  %v829_v63 = vadd.s32 1, %v9635_v50  ;;  %v9329_v43 = vmov -inf  }
 0x5d9   :  { %v2547_v26 = vadd.f32 %v6870_v1, %v2521_v20  ;;  %8299 = vmatpush3.bf16.msra.mxu0 %v8296_v60  ;;  %v2563_v25 = vsel %vm2551_vm14, %v2545_v37, %v2557_v9  ;;  %v825_v1 = vadd.s32 128, %v9633_v49  ;;  %v631_v37 = vpop.permute.xlu1 %630  ;;  %v10300_v34 = vsel %vm632_vm13, 0.0, %v9329_v43 }
 0x5da   :  { %vm2554_vm15 = vcmp.ge.f32.partialorder %v2548_v39, 0.0  ;;  %v2560_v23 = vmul.f32 0.2, %v2548_v39  ;;  %v8300_v14 = vpack.c.bf16 %v2564_v59, %v2563_v25  ;;  %v826_v25 = vmul.u32 64, %v9635_v50  ;;  %11511 = vst [vmem:[#allocation86_spill] sm:$0xff] %v10300_v34 }
 0x5db   :  { %vm2553_vm2 = vcmp.ge.f32.partialorder %v2547_v26, 0.0  ;;  %v2559_v24 = vmul.f32 0.2, %v2547_v26 }
 0x5dc   :  { %8301 = vmatprep.subr.bf16.mxu0 %v8300_v14  ;;  %v2566_v55 = vsel %vm2554_vm15, %v2548_v39, %v2560_v23  ;;  %vm828_vm9 = vcmp.ge.s32.totalorder %v825_v1, %v826_v25  ;;  %v830_v23 = vmul.u32 64, %v829_v63  ;;  %vm827_vm10 = vcmp.ge.s32.totalorder %v9633_v49, %v826_v25 }
 0x5dd   :  { %8303 = vmatpush3.bf16.msra.mxu0 %v8300_v14  ;;  %v2565_v38 = vsel %vm2553_vm2, %v2547_v26, %v2559_v24 }
 0x5de   :  { %v8304_v33 = vpack.c.bf16 %v2566_v55, %v2565_v38  ;;  %vm832_vm14 = vcmp.lt.s32.totalorder %v825_v1, %v830_v23  ;;  %vm831_vm15 = vcmp.lt.s32.totalorder %v9633_v49, %v830_v23 }
 0x5df   :  { %vm834_vm2 = vmand %vm828_vm9, %vm832_vm14  ;;  %vm11512_vm9 = vcmask 31744  }
 0x5e0   :  { %8305 = vmatprep.subr.bf16.mxu0 %v8304_v33  ;;  %v10289_v26 = vsel %vm834_vm2, 1.0, %v11484_v48  ;;  %vm11514_vm13 = vmmov %vm11512_vm9 }
 0x5e1   :  { %8307 = vmatpush3.bf16.msra.mxu0 %v8304_v33  ;;  %11508 = vst [vmem:[#allocation83_spill] sm:$0xff] %v10289_v26  ;;  %6885 = vmatprep.subr.msk.mxu1 %vm11356_vm12, %v10289_v26  ;;  %vm11515_vm14 = vmmov %vm11512_vm9 }
 0x5e4   :  { %7881 = vmatmul.mubr.msk.f32.vlgmr.msra.gmra.mrb[16].mxu0 %vm11506_vm8, %v10277_v47  ;;  %vm833_vm8 = vmand %vm827_vm10, %vm831_vm15  ;;  %vm11517_vm15 = vcmask 130048  }
 0x5e5   :  { %7887 = vmatprep.mubr.msk.f32.mxu0 %vm11507_vm5, %v9654_v56  ;;  %v10294_v42 = vsel %vm833_vm8, 1.0, %v11484_v48  ;;  %vm633_vm5 = vcmp.eq.s32.totalorder %v631_v37, 1  ;;  %vm11513_vm10 = vmmov %vm11512_vm9 }
 0x5e6   :  { %11509 = vst [vmem:[#allocation84_spill] sm:$0xff] %v10294_v42  ;;  %6886 = vmatpush1.msk.msra.mxu1 %vm11356_vm12, %v10294_v42  ;;  %v10298_v60 = vsel %vm633_vm5, 0.0, %v9329_v43  ;;  %vm11518_vm2 = vmmov %vm11517_vm15 }
 0x5e7   :  { %11510 = vst [vmem:[#allocation85_spill] sm:$0xff] %v10298_v60  ;;  %vm11520_vm8 = vmmov %vm11518_vm2 }
 0x5e8   :  { %vm11521_vm5 = vmmov %vm11518_vm2 }
 0x6b7   :  { %v7882_v9 = vpop.f32.mrb[16].mxu0 }
 0x6b8   :  { %v2677_v39 = vadd.f32 %v7882_v9, %v10298_v60  ;;  %v2671_v20 = vpop.f32.mrb[17].mxu0 }
 0x6b9   :  { %v2672_v59 = vadd.f32 %v2671_v20, %v10300_v34 }
 0x6ba   :  { %v2681_v14 = vsel %vm11512_vm9, %v2677_v39, -inf  ;;  %vm11522_vm9 = vmmov %vm11518_vm2 }
 0x6bb   :  { %v2680_v24 = vsel %vm11513_vm10, %v2672_v59, -inf  ;;  %vm11523_vm10 = vmmov %vm11518_vm2 }
 0x6bc   :  { %v2682_v55 = vmax.f32 %v2680_v24, %v2681_v14 }
 0x6be   :  { %v2683_v38 = vrot.slane %v2682_v55, 4 }
 0x6c0   :  { %v2684_v33 = vmax.f32 %v2682_v55, %v2683_v38 }
 0x6c2   :  { %v2685_v1 = vrot.slane %v2684_v33, 2 }
 0x6c4   :  { %v2686_v25 = vmax.f32 %v2684_v33, %v2685_v1 }
 0x6c6   :  { %v2687_v63 = vrot.slane %v2686_v25, 1 }
 0x6c8   :  { %v2688_v23 = vmax.f32 %v2686_v25, %v2687_v63 }
 0x6ca   :  { %v2689_v37 = vsub.f32 %v2672_v59, %v2688_v23  ;;  %v2690_v11 = vsub.f32 %v2677_v39, %v2688_v23 }
 0x6cc   :  { %v2691_v43 = vmul.f32 1.442695, %v2689_v37  ;;  %v2693_v47 = vmul.f32 1.442695, %v2690_v11 }
 0x6ce   :  { %8871 = vpow2.f32 %v2691_v43 }
 0x6cf   :  { %8873 = vpow2.f32 %v2693_v47  ;;  %v11516_v47 = vpack.c.bf16 %v10184_v36, %v10176_v3 }
 0x6d8   :  { %v8872_v9 = vpop.eup %8871 }
 0x6d9   :  { %v8874_v60 = vpop.eup %8873  ;;  %v2695_v20 = vsel %vm11514_vm13, %v8872_v9, 0.0  ;;  %vm11524_vm13 = vmmov %vm11518_vm2 }
 0x6da   :  { %v2696_v34 = vsel %vm11515_vm14, %v8874_v60, 0.0  ;;  %vm11525_vm14 = vmmov %vm11518_vm2 }
 0x6db   :  { %v2697_v42 = vadd.f32 %v2696_v34, %v2695_v20 }
 0x6dd   :  { %v2698_v14 = vrot.slane %v2697_v42, 4 }
 0x6df   :  { %v2699_v24 = vadd.f32 %v2698_v14, %v2697_v42  ;;  %v11519_v42 = vpack.c.bf16 %v10182_v46, %v10172_v17 }
 0x6e1   :  { %v2700_v55 = vrot.slane %v2699_v24, 2 }
 0x6e3   :  { %v2701_v38 = vadd.f32 %v2700_v55, %v2699_v24 }
 0x6e5   :  { %v2702_v33 = vrot.slane %v2701_v38, 1 }
 0x6e7   :  { %v2703_v1 = vadd.f32 %v2702_v33, %v2701_v38 }
 0x6e9   :  { %8875 = vrcp.f32 %v2703_v1 }
 0x6f3   :  { %v8876_v59 = vpop.eup %8875 }
 0x6f4   :  { %v2705_v39 = vmul.f32 %v8876_v59, %v8872_v9  ;;  %v2706_v25 = vmul.f32 %v8876_v59, %v8874_v60  ;;  %v6652_v59 = vadd.s32 4294967232, %v9785_v40 }
 0x6f6   :  { %v8308_v63 = vpack.c.bf16 %v2706_v25, %v2705_v39  ;;  %v6653_v39 = vadd.s32 4294967232, %v9788_v41  ;;  %v6699_v25 = vadd.s32 4294967168, %v9788_v41 }
 0x6f8   :  { %8309 = vmatprep.subr.bf16.mxu0 %v8308_v63 }
 0x6f9   :  { %8311 = vmatpush3.bf16.msra.mxu0 %v8308_v63 }
 0x6fa   :  { %8313 = vmatprep.subr.bf16.mxu0 %v11516_v47  ;;  %v6654_v47 = vadd.s32 4294967232, %v9805_v44 }
 0x6fc   :  { %7888 = vmatmul.mubr.msk.f32.vlgmr.msra.gmra.mrb[18].mxu0 %vm11517_vm15, %v9672_v2  ;;  %vm11526_vm15 = vmmov %vm11518_vm2 }
 0x6fd   :  { %7890 = vmatprep.mubr.msk.f32.mxu0 %vm11518_vm2, %v9682_v6  ;;  %8315 = vmatpush1.bf16.msra.mxu0 %v11519_v42  ;;  %v6655_v42 = vadd.s32 4294967232, %v9812_v45 }
 0x700   :  { %7891 = vmatmul.mubr.msk.f32.gmra.mrb[20].mxu0 %vm11520_vm8, %v9705_v21  ;;  %vm11527_vm8 = vmmov %vm11518_vm2 }
 0x701   :  { %7893 = vmatprep.mubr.msk.f32.mxu0 %vm11521_vm5, %v9716_v28  ;;  %vm11528_vm5 = vcmask 31744  }
 0x704   :  { %7894 = vmatmul.mubr.msk.f32.gmra.mrb[22].mxu0 %vm11522_vm9, %v9722_v31  ;;  %vm11529_vm9 = vmmov %vm11528_vm5 }
 0x705   :  { %2866 = vmatprep.mubr.f32.mxu0 %v11484_v48 }
 0x708   :  { %6879 = vmatmul.mubr.msk.f32.vlgmr.msra.gmra.mrb[24].mxu0 %vm11523_vm10, %v10200_v27  ;;  %vm11530_vm10 = vmmov %vm11528_vm5 }
 0x709   :  { %2872 = vmatprep.mubr.f32.mxu0 %v11484_v48 }
 0x70c   :  { %6880 = vmatmul.mubr.msk.f32.gmra.mrb[26].mxu0 %vm11524_vm13, %v10226_v7  ;;  %vm11531_vm13 = vmmov %vm11528_vm5 }
 0x70d   :  { %2878 = vmatprep.mubr.f32.mxu0 %v11484_v48 }
 0x710   :  { %6881 = vmatmul.mubr.msk.f32.gmra.mrb[28].mxu0 %vm11525_vm14, %v10229_v35  ;;  %vm11532_vm14 = vmmov %vm11528_vm5 }
 0x711   :  { %2884 = vmatprep.mubr.f32.mxu0 %v11484_v48 }
 0x714   :  { %6882 = vmatmul.mubr.msk.f32.gmra.mrb[30].mxu0 %vm11526_vm15, %v10239_v32  ;;  %vm11533_vm15 = vmmov %vm11528_vm5 }
 0x715   :  { %2890 = vmatprep.mubr.f32.mxu0 %v11484_v48 }
 0x718   :  { %6883 = vmatmul.mubr.msk.f32.gmra.mrb[32].mxu0 %vm11518_vm2, %v10242_v29  ;;  %vm839_vm2 = vcmp.eq.s32.totalorder %v9635_v50, %v9633_v49 }
 0x719   :  { %2896 = vmatprep.mubr.f32.mxu0 %v11484_v48  ;;  %v10384_v63 = vsel %vm839_vm2, 1.0, %v11484_v48 }
 0x71c   :  { %6884 = vmatmul.mubr.msk.f32.gmra.mrb[34].mxu0 %vm11527_vm8, %v10250_v30  ;;  %vm840_vm8 = vcmp.eq.s32.totalorder %v9645_v53, %v9633_v49  ;;  %v1436_v53 = vmul.f32 0.25, %v10384_v63 }
 0x71d   :  { %3104 = vmatprep.mubr.f32.mxu0 %v11484_v48  ;;  %v6622_v50 = vsel %vm840_vm8, 1.0, %v11484_v48  ;;  %vm841_vm8 = vcmp.eq.s32.totalorder %v9640_v52, %v9633_v49  ;;  %v6656_v52 = vadd.s32 4294967232, %v9841_v51 }
 0x7cf   :  { %v7889_v46 = vpop.f32.mrb[18].mxu0 }
 0x7d0   :  { %v2773_v3 = vpop.f32.mrb[19].mxu0 }
 0x7d1   :  { %6887 = vmatmul.mubr.msk.f32.vlgmr.msra.gmra.mrb[14].mxu1 %vm11528_vm5, %v2773_v3  ;;  %vm1013_vm5 = vcmp.eq.s32.totalorder %v6652_v59, %v9633_v49  ;;  %v6701_v59 = vadd.s32 4294967168, %v9812_v45 }
 0x7d2   :  { %2997 = vmatprep.mubr.f32.mxu1 %v11484_v48  ;;  %v6675_v40 = vsel %vm1013_vm5, 1.0, %v11484_v48  ;;  %vm842_vm5 = vcmp.eq.s32.totalorder %v9648_v54, %v9633_v49  ;;  %v6657_v54 = vadd.s32 4294967232, %v9854_v58 }
 0x7d3   :  { %v7892_v17 = vpop.f32.mrb[20].mxu0  ;;  %v1263_v3 = vadd.f32 %v6675_v40, %v10384_v63  ;;  %vm1172_vm2 = vcmp.eq.s32.totalorder %v6701_v59, %v9633_v49 }
 0x7d4   :  { %v2783_v36 = vpop.f32.mrb[21].mxu0  ;;  %v6716_v45 = vsel %vm1172_vm2, 1.0, %v11484_v48  ;;  %vm844_vm2 = vcmp.eq.s32.totalorder %v9663_v62, %v9633_v49 }
 0x7d5   :  { %6888 = vmatmul.mubr.msk.f32.gmra.mrb[16].mxu1 %vm11529_vm9, %v7889_v46  ;;  %vm1014_vm9 = vcmp.eq.s32.totalorder %v6653_v39, %v9633_v49  ;;  %v1452_v39 = vmul.f32 0.25, %v1263_v3  ;;  %v6702_v3 = vadd.s32 4294967168, %v9841_v51 }
 0x7d6   :  { %3003 = vmatprep.mubr.f32.mxu1 %v11484_v48  ;;  %v6676_v41 = vsel %vm1014_vm9, 1.0, %v11484_v48  ;;  %vm843_vm9 = vcmp.eq.s32.totalorder %v9657_v57, %v9633_v49 }
 0x7d7   :  { %v7895_v60 = vpop.f32.mrb[22].mxu0 }
 0x7d8   :  { %v2793_v34 = vpop.f32.mrb[23].mxu0 }
 0x7d9   :  { %6889 = vmatmul.mubr.msk.f32.gmra.mrb[18].mxu1 %vm11530_vm10, %v2783_v36  ;;  %vm1170_vm10 = vcmp.eq.s32.totalorder %v6699_v25, %v9633_v49  ;;  %v1437_v36 = vmul.f32 0.25, %v6622_v50 }
 0x7da   :  { %3009 = vmatprep.mubr.f32.mxu1 %v11484_v48  ;;  %v6714_v46 = vsel %vm1170_vm10, 1.0, %v11484_v48  ;;  %vm1017_vm10 = vcmp.eq.s32.totalorder %v6656_v52, %v9633_v49  ;;  %v6705_v52 = vadd.s32 4294967168, %v9896_v0 }
 0x7db   :  { %v10349_v23 = vpop.f32.mrb[24].mxu0  ;;  %v10404_v31 = vpack.c.bf16 %v1437_v36, %v1436_v53  ;;  %v6679_v51 = vsel %vm1017_vm10, 1.0, %v11484_v48 }
 0x7dc   :  { %v10351_v37 = vpop.f32.mrb[25].mxu0 }
 0x7dd   :  { %6890 = vmatmul.mubr.msk.f32.gmra.mrb[20].mxu1 %vm11531_vm13, %v7892_v17  ;;  %v1264_v17 = vadd.f32 %v6714_v46, %v6676_v41  ;;  %vm1015_vm13 = vcmp.eq.s32.totalorder %v6654_v47, %v9633_v49  ;;  %v6624_v41 = vsel %vm842_vm5, 1.0, %v11484_v48 }
 0x7de   :  { %3015 = vmatprep.mubr.f32.mxu1 %v11484_v48  ;;  %v1439_v53 = vmul.f32 0.25, %v6624_v41  ;;  %v6659_v41 = vadd.s32 4294967232, %v9896_v0 }
 0x7df   :  { %v10355_v11 = vpop.f32.mrb[26].mxu0  ;;  %v1453_v25 = vmul.f32 0.25, %v1264_v17 }
 0x7e0   :  { %v10357_v43 = vpop.f32.mrb[27].mxu0 }
 0x7e1   :  { %6891 = vmatmul.mubr.msk.f32.gmra.mrb[22].mxu1 %vm11532_vm14, %v2793_v34  ;;  %vm1016_vm14 = vcmp.eq.s32.totalorder %v6655_v42, %v9633_v49  ;;  %v6700_v34 = vadd.s32 4294967168, %v9805_v44  ;;  %v10413_v47 = vpack.c.bf16 %v1453_v25, %v1452_v39  ;;  %v6623_v42 = vsel %vm841_vm8, 1.0, %v11484_v48 }
 0x7e2   :  { %3021 = vmatprep.mubr.f32.mxu1 %v11484_v48  ;;  %v6678_v26 = vsel %vm1016_vm14, 1.0, %v11484_v48  ;;  %v1438_v46 = vmul.f32 0.25, %v6623_v42  ;;  %vm1173_vm14 = vcmp.eq.s32.totalorder %v6702_v3, %v9633_v49  ;;  %v6625_v39 = vsel %vm843_vm9, 1.0, %v11484_v48 }
 0x7e3   :  { %v10361_v9 = vpop.f32.mrb[28].mxu0  ;;  %11534 = vst [vmem:[#allocation87_spill] sm:$0xff] %v10413_v47  ;;  %v1266_v40 = vadd.f32 %v6716_v45, %v6678_v26  ;;  %8329 = vmatprep.subr.bf16.mxu1 %v10413_v47  ;;  %v6626_v45 = vsel %vm844_vm2, 1.0, %v11484_v48  ;;  %v1440_v42 = vmul.f32 0.25, %v6625_v39  ;;  %vm845_vm8 = vcmp.eq.s32.totalorder %v9907_v4, %v9633_v49 }
 0x7e4   :  { %v10363_v20 = vpop.f32.mrb[29].mxu0  ;;  %8331 = vmatpush3.bf16.msra.mxu1 %v10404_v31  ;;  %v10427_v26 = vpack.c.bf16 %v1439_v53, %v1438_v46  ;;  %v6704_v46 = vadd.s32 4294967168, %v9883_v61  ;;  %vm1020_vm9 = vcmp.eq.s32.totalorder %v6659_v41, %v9633_v49  ;;  %v6706_v39 = vadd.s32 4294967168, %v9931_v8 }
 0x7e5   :  { %6892 = vmatmul.mubr.msk.f32.gmra.mrb[24].mxu1 %vm11533_vm15, %v7895_v60  ;;  %v6677_v60 = vsel %vm1015_vm13, 1.0, %v11484_v48  ;;  %vm1171_vm15 = vcmp.eq.s32.totalorder %v6700_v34, %v9633_v49  ;;  %v1455_v36 = vmul.f32 0.25, %v1266_v40  ;;  %v6703_v34 = vadd.s32 4294967168, %v9854_v58 }
 0x7e6   :  { %v6715_v44 = vsel %vm1171_vm15, 1.0, %v11484_v48  ;;  %vm1018_vm13 = vcmp.eq.s32.totalorder %v6657_v54, %v9633_v49  ;;  %v6717_v58 = vsel %vm1173_vm14, 1.0, %v11484_v48  ;;  %v6658_v40 = vadd.s32 4294967232, %v9883_v61 }
 0x7e7   :  { %v10366_v14 = vpop.f32.mrb[30].mxu0  ;;  %v1265_v50 = vadd.f32 %v6715_v44, %v6677_v60  ;;  %v6680_v59 = vsel %vm1018_vm13, 1.0, %v11484_v48  ;;  %vm1174_vm15 = vcmp.eq.s32.totalorder %v6703_v34, %v9633_v49  ;;  %v1267_v25 = vadd.f32 %v6717_v58, %v6679_v51 }
 0x7e8   :  { %v10368_v24 = vpop.f32.mrb[31].mxu0  ;;  %v6718_v57 = vsel %vm1174_vm15, 1.0, %v11484_v48  ;;  %vm1019_vm5 = vcmp.eq.s32.totalorder %v6658_v40, %v9633_v49  ;;  %vm1175_vm10 = vcmp.eq.s32.totalorder %v6704_v46, %v9633_v49  ;;  %v6682_v61 = vsel %vm1020_vm9, 1.0, %v11484_v48 }
 0x7e9   :  { %v1454_v17 = vmul.f32 0.25, %v1265_v50  ;;  %v1268_v44 = vadd.f32 %v6718_v57, %v6680_v59  ;;  %v1441_v50 = vmul.f32 0.25, %v6626_v45  ;;  %v1456_v53 = vmul.f32 0.25, %v1267_v25 }
 0x7ea   :  { %vm1176_vm13 = vcmp.eq.s32.totalorder %v6705_v52, %v9633_v49  ;;  %v6719_v0 = vsel %vm1175_vm10, 1.0, %v11484_v48  ;;  %vm846_vm14 = vcmp.eq.s32.totalorder %v9920_v5, %v9633_v49  ;;  %v6707_v25 = vadd.s32 4294967168, %v9944_v10 }
 0x7eb   :  { %v10370_v55 = vpop.f32.mrb[32].mxu0  ;;  %v10432_v60 = vpack.c.bf16 %v1455_v36, %v1454_v17  ;;  %v1457_v62 = vmul.f32 0.25, %v1268_v44  ;;  %v10451_v54 = vpack.c.bf16 %v1441_v50, %v1440_v42  ;;  %v6681_v17 = vsel %vm1019_vm5, 1.0, %v11484_v48 }
 0x7ec   :  { %v10372_v38 = vpop.f32.mrb[33].mxu0  ;;  %v6720_v4 = vsel %vm1176_vm13, 1.0, %v11484_v48  ;;  %v6627_v36 = vsel %vm845_vm8, 1.0, %v11484_v48  ;;  %v1269_v34 = vadd.f32 %v6719_v0, %v6681_v17  ;;  %v6628_v59 = vsel %vm846_vm14, 1.0, %v11484_v48 }
 0x7ed   :  { %8333 = vmatprep.subr.bf16.mxu1 %v10432_v60  ;;  %v10456_v3 = vpack.c.bf16 %v1457_v62, %v1456_v53  ;;  %v1270_v51 = vadd.f32 %v6720_v4, %v6682_v61  ;;  %v1442_v58 = vmul.f32 0.25, %v6627_v36  ;;  %v1443_v57 = vmul.f32 0.25, %v6628_v59 }
 0x7ee   :  { %8335 = vmatpush3.bf16.msra.mxu1 %v10427_v26  ;;  %v6753_v44 = vadd.s32 4294967104, %v9944_v10  ;;  %v1458_v45 = vmul.f32 0.25, %v1269_v34  ;;  %vm847_vm15 = vcmp.eq.s32.totalorder %v9955_v12, %v9633_v49  ;;  %vm848_vm2 = vcmp.eq.s32.totalorder %v9968_v13, %v9633_v49 }
 0x7ef   :  { %v10374_v33 = vpop.f32.mrb[34].mxu0  ;;  %8337 = vmatprep.subr.bf16.mxu1 %v10456_v3  ;;  %v1459_v5 = vmul.f32 0.25, %v1270_v51  ;;  %v10476_v42 = vpack.c.bf16 %v1443_v57, %v1442_v58  ;;  %vm1177_vm8 = vcmp.eq.s32.totalorder %v6706_v39, %v9633_v49  ;;  %vm1178_vm5 = vcmp.eq.s32.totalorder %v6707_v25, %v9633_v49 }
 0x7f0   :  { %v10376_v1 = vpop.f32.mrb[35].mxu0  ;;  %vm1334_vm9 = vcmp.eq.s32.totalorder %v6753_v44, %v9633_v49  ;;  %v6721_v10 = vsel %vm1177_vm8, 1.0, %v11484_v48  ;;  %v6722_v50 = vsel %vm1178_vm5, 1.0, %v11484_v48  ;;  %v6629_v46 = vsel %vm847_vm15, 1.0, %v11484_v48 }
 0x7f1   :  { %v10481_v8 = vpack.c.bf16 %v1459_v5, %v1458_v45  ;;  %v6760_v40 = vsel %vm1334_vm9, 1.0, %v11484_v48  ;;  %v1427_v12 = vadd.f32 %v6721_v10, %v10384_v63  ;;  %v6630_v53 = vsel %vm848_vm2, 1.0, %v11484_v48 }
 0x7f2   :  { %8339 = vmatpush3.bf16.msra.mxu1 %v10451_v54  ;;  %v1428_v41 = vadd.f32 %v6760_v40, %v6722_v50  ;;  %v6645_v62 = vadd.s32 4294967232, %v9968_v13  ;;  %v1099_v52 = vadd.f32 %v6629_v46, %v10384_v63  ;;  %v6708_v17 = vadd.s32 4294967168, %v9979_v15 }
 0x7f3   :  { %8341 = vmatprep.subr.bf16.mxu1 %v10481_v8  ;;  %v6709_v61 = vadd.s32 4294967168, %v9992_v16  ;;  %v1460_v0 = vmul.f32 0.25, %v1427_v12  ;;  %v6754_v36 = vadd.s32 4294967104, %v9979_v15  ;;  %v6755_v34 = vadd.s32 4294967104, %v9992_v16  ;;  %v11535_v12 = vld [vmem:[#allocation66_spill] sm:$0xff] }
 0x7f4   :  { %v1461_v4 = vmul.f32 0.25, %v1428_v41  ;;  %vm1006_vm10 = vcmp.eq.s32.totalorder %v6645_v62, %v9633_v49  ;;  %v1444_v51 = vmul.f32 0.25, %v1099_v52  ;;  %vm1179_vm13 = vcmp.eq.s32.totalorder %v6708_v17, %v9633_v49 }
 0x7f5   :  { %vm1180_vm14 = vcmp.eq.s32.totalorder %v6709_v61, %v9633_v49  ;;  %v6668_v63 = vsel %vm1006_vm10, 1.0, %v11484_v48  ;;  %v6723_v59 = vsel %vm1179_vm13, 1.0, %v11484_v48  ;;  %vm1335_vm15 = vcmp.eq.s32.totalorder %v6754_v36, %v9633_v49 }
 0x7f6   :  { %8343 = vmatpush3.bf16.msra.mxu1 %v10476_v42  ;;  %v10500_v13 = vpack.c.bf16 %v1461_v4, %v1460_v0  ;;  %v6724_v58 = vsel %vm1180_vm14, 1.0, %v11484_v48  ;;  %v1100_v57 = vadd.f32 %v6668_v63, %v6630_v53  ;;  %vm1336_vm2 = vcmp.eq.s32.totalorder %v6755_v34, %v9633_v49  ;;  %v11538_v34 = vld [vmem:[#allocation68_spill] sm:$0xff] }
 0x7f7   :  { %vm849_vm8 = vcmp.eq.s32.totalorder %v10003_v18, %v9633_v49  ;;  %v6761_v15 = vsel %vm1335_vm15, 1.0, %v11484_v48  ;;  %v6762_v16 = vsel %vm1336_vm2, 1.0, %v11484_v48  ;;  %vm850_vm5 = vcmp.eq.s32.totalorder %v10016_v19, %v9633_v49 }
 0x7f8   :  { %8345 = vmatprep.subr.bf16.mxu1 %v10500_v13  ;;  %v6631_v39 = vsel %vm849_vm8, 1.0, %v11484_v48  ;;  %v1445_v25 = vmul.f32 0.25, %v1100_v57  ;;  %v1429_v44 = vadd.f32 %v6761_v15, %v6723_v59  ;;  %v1430_v45 = vadd.f32 %v6762_v16, %v6724_v58 }
 0x7f9   :  { %v6632_v5 = vsel %vm850_vm5, 1.0, %v11484_v48  ;;  %v6646_v10 = vadd.s32 4294967232, %v10003_v18  ;;  %v6647_v50 = vadd.s32 4294967232, %v10016_v19  ;;  %v6710_v40 = vadd.s32 4294967168, %v10027_v22 }
 0x7fa   :  { %v6711_v41 = vadd.s32 4294967168, %v11535_v12  ;;  %v10520_v46 = vpack.c.bf16 %v1445_v25, %v1444_v51  ;;  %v1462_v53 = vmul.f32 0.25, %v1429_v44  ;;  %v1463_v62 = vmul.f32 0.25, %v1430_v45  ;;  %v11539_v51 = vld [vmem:[#allocation69_spill] sm:$0xff] }
 0x7fb   :  { %v6756_v52 = vadd.s32 4294967104, %v10027_v22  ;;  %vm1007_vm9 = vcmp.eq.s32.totalorder %v6646_v10, %v9633_v49  ;;  %vm1008_vm10 = vcmp.eq.s32.totalorder %v6647_v50, %v9633_v49  ;;  %vm1181_vm13 = vcmp.eq.s32.totalorder %v6710_v40, %v9633_v49  ;;  %v11541_v40 = vld [vmem:[#allocation71_spill] sm:$0xff] }
 0x7fc   :  { %11536 = vst [vmem:[#allocation66_spill] sm:$0xff] %v10520_v46  ;;  %vm1182_vm14 = vcmp.eq.s32.totalorder %v6711_v41, %v9633_v49  ;;  %8347 = vmatpush3.bf16.msra.mxu1 %v10520_v46  ;;  %v10528_v18 = vpack.c.bf16 %v1463_v62, %v1462_v53  ;;  %v6669_v19 = vsel %vm1007_vm9, 1.0, %v11484_v48  ;;  %v6670_v17 = vsel %vm1008_vm10, 1.0, %v11484_v48  ;;  %v11542_v41 = vld [vmem:[#allocation72_spill] sm:$0xff] }
 0x7fd   :  { %v6725_v61 = vsel %vm1181_vm13, 1.0, %v11484_v48  ;;  %v1101_v0 = vadd.f32 %v6669_v19, %v6631_v39  ;;  %v1102_v22 = vadd.f32 %v6670_v17, %v6632_v5  ;;  %v6726_v4 = vsel %vm1182_vm14, 1.0, %v11484_v48 }
 0x7fe   :  { %11537 = vst [vmem:[#allocation88_spill] sm:$0xff] %v10528_v18  ;;  %v6757_v36 = vadd.s32 4294967104, %v11535_v12  ;;  %8349 = vmatprep.subr.bf16.mxu1 %v10528_v18  ;;  %vm1337_vm15 = vcmp.eq.s32.totalorder %v6756_v52, %v9633_v49  ;;  %vm851_vm2 = vcmp.eq.s32.totalorder %v11538_v34, %v9633_v49  ;;  %vm852_vm8 = vcmp.eq.s32.totalorder %v11539_v51, %v9633_v49 }
 0x7ff   :  { %v6648_v63 = vadd.s32 4294967232, %v11538_v34  ;;  %v1446_v59 = vmul.f32 0.25, %v1101_v0  ;;  %v1447_v58 = vmul.f32 0.25, %v1102_v22  ;;  %v6763_v57 = vsel %vm1337_vm15, 1.0, %v11484_v48 }
 0x800   :  { %vm1338_vm5 = vcmp.eq.s32.totalorder %v6757_v36, %v9633_v49  ;;  %v1431_v16 = vadd.f32 %v6763_v57, %v6725_v61  ;;  %v6633_v39 = vsel %vm851_vm2, 1.0, %v11484_v48  ;;  %v6634_v25 = vsel %vm852_vm8, 1.0, %v11484_v48 }
 0x801   :  { %v6764_v15 = vsel %vm1338_vm5, 1.0, %v11484_v48  ;;  %v10547_v44 = vpack.c.bf16 %v1447_v58, %v1446_v59  ;;  %v6649_v5 = vadd.s32 4294967232, %v11539_v51  ;;  %vm1009_vm9 = vcmp.eq.s32.totalorder %v6648_v63, %v9633_v49 }
 0x802   :  { %v1432_v45 = vadd.f32 %v6764_v15, %v6726_v4  ;;  %v1464_v10 = vmul.f32 0.25, %v1431_v16  ;;  %v6671_v50 = vsel %vm1009_vm9, 1.0, %v11484_v48  ;;  %v6712_v12 = vadd.s32 4294967168, %v11541_v40 }
 0x803   :  { %11540 = vst [vmem:[#allocation68_spill] sm:$0xff] %v10547_v44  ;;  %v6713_v53 = vadd.s32 4294967168, %v11542_v41  ;;  %8351 = vmatpush3.bf16.msra.mxu1 %v10547_v44  ;;  %vm1010_vm10 = vcmp.eq.s32.totalorder %v6649_v5, %v9633_v49  ;;  %v1103_v52 = vadd.f32 %v6671_v50, %v6633_v39  ;;  %v6758_v19 = vadd.s32 4294967104, %v11541_v40 }
 0x804   :  { %v1465_v62 = vmul.f32 0.25, %v1432_v45  ;;  %v6672_v17 = vsel %vm1010_vm10, 1.0, %v11484_v48  ;;  %vm1183_vm13 = vcmp.eq.s32.totalorder %v6712_v12, %v9633_v49  ;;  %v6759_v61 = vadd.s32 4294967104, %v11542_v41 }
 0x805   :  { %vm1184_vm14 = vcmp.eq.s32.totalorder %v6713_v53, %v9633_v49  ;;  %v1104_v22 = vadd.f32 %v6672_v17, %v6634_v25  ;;  %v1448_v4 = vmul.f32 0.25, %v1103_v52  ;;  %v6727_v36 = vsel %vm1183_vm13, 1.0, %v11484_v48 }
 0x806   :  { %v10561_v0 = vpack.c.bf16 %v1465_v62, %v1464_v10  ;;  %v6728_v34 = vsel %vm1184_vm14, 1.0, %v11484_v48  ;;  %vm1339_vm15 = vcmp.eq.s32.totalorder %v6758_v19, %v9633_v49  ;;  %vm1340_vm2 = vcmp.eq.s32.totalorder %v6759_v61, %v9633_v49 }
 0x807   :  { %v1449_v51 = vmul.f32 0.25, %v1104_v22  ;;  %v6765_v63 = vsel %vm1339_vm15, 1.0, %v11484_v48  ;;  %v6766_v59 = vsel %vm1340_vm2, 1.0, %v11484_v48  ;;  %vm11547_vm8 = vcmask 392192  }
 0x808   :  { %11543 = vst [vmem:[#allocation69_spill] sm:$0xff] %v10561_v0  ;;  %8353 = vmatprep.subr.bf16.mxu1 %v10561_v0  ;;  %v1433_v58 = vadd.f32 %v6765_v63, %v6727_v36  ;;  %v1434_v57 = vadd.f32 %v6766_v59, %v6728_v34  ;;  %vm11549_vm5 = vmmov %vm11547_vm8 }
 0x809   :  { %v10570_v15 = vpack.c.bf16 %v1449_v51, %v1448_v4 }
 0x80a   :  { %v1466_v16 = vmul.f32 0.25, %v1433_v58  ;;  %v1467_v39 = vmul.f32 0.25, %v1434_v57 }
 0x80b   :  { %11544 = vst [vmem:[#allocation71_spill] sm:$0xff] %v10570_v15  ;;  %8355 = vmatpush3.bf16.msra.mxu1 %v10570_v15 }
 0x80c   :  { %v10573_v25 = vpack.c.bf16 %v1467_v39, %v1466_v16 }
 0x80e   :  { %11545 = vst [vmem:[#allocation72_spill] sm:$0xff] %v10573_v25  ;;  %8357 = vmatprep.subr.bf16.mxu1 %v10573_v25 }
 0x8a4   :  { %v2993_v45 = vpop.f32.mrb[14].mxu1 }
 0x8a5   :  { %v3028_v5 = vmul.f32 %v2993_v45, %v10349_v23  ;;  %v2995_v10 = vpop.f32.mrb[15].mxu1 }
 0x8a6   :  { %v3029_v50 = vmul.f32 %v2995_v10, %v10351_v37 }
 0x8a8   :  { %v2999_v40 = vpop.f32.mrb[16].mxu1 }
 0x8a9   :  { %v3030_v12 = vmul.f32 %v2999_v40, %v10355_v11  ;;  %v3001_v41 = vpop.f32.mrb[17].mxu1 }
 0x8aa   :  { %v3031_v53 = vmul.f32 %v3001_v41, %v10357_v43 }
 0x8ab   :  { %v8318_v62 = vpack.c.bf16 %v3030_v12, %v3028_v5 }
 0x8ac   :  { %v8316_v52 = vpack.c.bf16 %v3031_v53, %v3029_v50  ;;  %v3005_v19 = vpop.f32.mrb[18].mxu1 }
 0x8ad   :  { %v3032_v17 = vmul.f32 %v3005_v19, %v10361_v9  ;;  %v3007_v61 = vpop.f32.mrb[19].mxu1  ;;  %v6896_v19 = vld [vmem:[%s11416_s29 + $0x88] sm:$0xff] }
 0x8ae   :  { %v3033_v22 = vmul.f32 %v3007_v61, %v10363_v20  ;;  %8317 = vmatprep.subr.bf16.mxu0 %v8316_v52  ;;  %v11554_v52 = vld [vmem:[#allocation56_spill] sm:$0xff]  ;;  %v6895_v61 = vld [vmem:[%s11416_s29 + $0x80] sm:$0xff] }
 0x8af   :  { %8319 = vmatpush1.bf16.msra.mxu0 %v8318_v62 }
 0x8b0   :  { %v3011_v23 = vpop.f32.mrb[20].mxu1 }
 0x8b1   :  { %v3034_v4 = vmul.f32 %v3011_v23, %v10366_v14  ;;  %v3013_v37 = vpop.f32.mrb[21].mxu1  ;;  %v6897_v23 = vld [vmem:[%s11416_s29 + $0x90] sm:$0xff] }
 0x8b2   :  { %v3035_v36 = vmul.f32 %v3013_v37, %v10368_v24  ;;  %v11546_v24 = vld [vmem:[#allocation52_spill] sm:$0xff]  ;;  %v6902_v37 = vld [vmem:[%s11416_s29 + $0xb8] sm:$0xff] }
 0x8b3   :  { %v8322_v11 = vpack.c.bf16 %v3034_v4, %v3032_v17  ;;  %v6898_v17 = vld [vmem:[%s11416_s29 + $0x98] sm:$0xff]  ;;  %v6900_v4 = vld [vmem:[%s11416_s29 + $0xa8] sm:$0xff] }
 0x8b4   :  { %v8320_v34 = vpack.c.bf16 %v3035_v36, %v3033_v22  ;;  %v3017_v51 = vpop.f32.mrb[22].mxu1  ;;  %v8360_v22 = vpack.c.bf16 %v6898_v17, %v6896_v19  ;;  %v8362_v36 = vpack.c.bf16 %v6897_v23, %v6895_v61  ;;  %v6906_v19 = vld [vmem:[%s11416_s29 + $0xd8] sm:$0xff]  ;;  %v6903_v61 = vld [vmem:[%s11416_s29 + $0xc0] sm:$0xff] }
 0x8b5   :  { %v3036_v43 = vmul.f32 %v3017_v51, %v10370_v55  ;;  %v3019_v63 = vpop.f32.mrb[23].mxu1  ;;  %v11548_v55 = vld [vmem:[#allocation53_spill] sm:$0xff] }
 0x8b6   :  { %v3037_v59 = vmul.f32 %v3019_v63, %v10372_v38  ;;  %8321 = vmatprep.subr.bf16.mxu0 %v8320_v34  ;;  %v11550_v38 = vld [vmem:[#allocation74_spill] sm:$0xff]  ;;  %v6901_v51 = vld [vmem:[%s11416_s29 + $0xb0] sm:$0xff] }
 0x8b7   :  { %8323 = vmatpush1.bf16.msra.mxu0 %v8322_v11  ;;  %v6650_v39 = vadd.s32 4294967232, %v11550_v38  ;;  %vm853_vm9 = vcmp.eq.s32.totalorder %v11550_v38, %v9633_v49  ;;  %v8364_v11 = vpack.c.bf16 %v6902_v37, %v6900_v4  ;;  %v6899_v34 = vld [vmem:[%s11416_s29 + $0xa0] sm:$0xff]  ;;  %v11560_v38 = vld [vmem:[#allocation61_spill] sm:$0xff]  ;;  %v6908_v4 = vld [vmem:[%s11416_s29 + $0xe8] sm:$0xff] }
 0x8b8   :  { %v3023_v9 = vpop.f32.mrb[24].mxu1  ;;  %vm11561_vm2 = vnez %v11560_v38  ;;  %v6910_v37 = vld [vmem:[%s11416_s29 + $0xf8] sm:$0xff] }
 0x8b9   :  { %v3038_v20 = vmul.f32 %v3023_v9, %v10374_v33  ;;  %v3025_v58 = vpop.f32.mrb[25].mxu1  ;;  %v11551_v33 = vld [vmem:[#allocation75_spill] sm:$0xff]  ;;  %vm1011_vm13 = vcmp.eq.s32.totalorder %v6650_v39, %v9633_v49  ;;  %v11562_v39 = vld [vmem:[#allocation62_spill] sm:$0xff] }
 0x8ba   :  { %v3039_v57 = vmul.f32 %v3025_v58, %v10376_v1  ;;  %v6651_v45 = vadd.s32 4294967232, %v11551_v33  ;;  %vm854_vm10 = vcmp.eq.s32.totalorder %v11551_v33, %v9633_v49  ;;  %v6635_v1 = vsel %vm853_vm9, 1.0, %v11484_v48  ;;  %v11564_v33 = vld [vmem:[#allocation63_spill] sm:$0xff]  ;;  %v4648_v38 = vld [vmem:[#allocation25 + $0x4] sm:$0x3] }
 0x8bb   :  { %v8326_v14 = vpack.c.bf16 %v3038_v20, %v3036_v43  ;;  %v6636_v5 = vsel %vm854_vm10, 1.0, %v11484_v48  ;;  %v6673_v10 = vsel %vm1011_vm13, 1.0, %v11484_v48  ;;  %v8366_v43 = vpack.c.bf16 %v6901_v51, %v6899_v34  ;;  %v6909_v34 = vld [vmem:[%s11416_s29 + $0xf0] sm:$0xff]  ;;  %v7129_v20 = vld [vmem:[%s11474_s3 + $0x8] sm:$0xf] }
 0x8bc   :  { %v8324_v16 = vpack.c.bf16 %v3039_v57, %v3037_v59  ;;  %vm1012_vm14 = vcmp.eq.s32.totalorder %v6651_v45, %v9633_v49  ;;  %v1105_v40 = vadd.f32 %v6673_v10, %v6635_v1  ;;  %v11553_v49 = vmov 1.0|1.0   ;;  %v11566_v45 = vld [vmem:[#allocation64_spill] sm:$0xff]  ;;  %v11568_v1 = vld [vmem:[#allocation65_spill] sm:$0xff]  ;;  %v11572_v10 = vld [vmem:[#allocation70_spill] sm:$0xff] }
 0x8bd   :  { %v6674_v50 = vsel %vm1012_vm14, 1.0, %v11484_v48  ;;  %vm11567_vm9 = vnez %v11566_v45  ;;  %vm11569_vm10 = vnez %v11568_v1  ;;  %vm11573_vm14 = vnez %v11572_v10  ;;  %v7000_v10 = vld [vmem:[%s9486_s15 + $0x28] sm:$0xff]  ;;  %v4552_v57 = vld [vmem:[#allocation23 + $0x4] sm:$0x3] }
 0x8be   :  { %8325 = vmatprep.subr.bf16.mxu0 %v8324_v16  ;;  %v1106_v12 = vadd.f32 %v6674_v50, %v6636_v5  ;;  %v1450_v41 = vmul.f32 0.25, %v1105_v40  ;;  %v11558_v16 = vld [vmem:[#allocation60_spill] sm:$0xff]  ;;  %v11570_v5 = vld [vmem:[#allocation67_spill] sm:$0xff]  ;;  %v11574_v50 = vld [vmem:[#allocation73_spill] sm:$0xff] }
 0x8bf   :  { %8327 = vmatpush1.bf16.msra.mxu0 %v8326_v14  ;;  %vm11559_vm15 = vnez %v11558_v16  ;;  %vm11571_vm13 = vnez %v11570_v5  ;;  %vm11575_vm12 = vnez %v11574_v50  ;;  %v11675_v14 = vld [vmem:[#allocation79_spill] sm:$0xff] }
 0x8c0   :  { %v1451_v53 = vmul.f32 0.25, %v1106_v12  ;;  %8361 = vmatprep.subr.bf16.mxu0 %v8360_v22  ;;  %v6905_v22 = vld [vmem:[%s11416_s29 + $0xd0] sm:$0xff]  ;;  %v4557_v16 = vrot.slane %v4552_v57, %v11675_v14 }
 0x8c1   :  { %v8370_v23 = vpack.c.bf16 %v6905_v22, %v6903_v61  ;;  %v11581_v22 = vld [vmem:[#allocation55_spill] sm:$0xff] }
 0x8c2   :  { %6893 = vmatmul.mubr.msk.f32.vlgmr.msra.gmra.mrb[36].mxu0 %vm11547_vm8, %v11546_v24  ;;  %v10606_v62 = vpack.c.bf16 %v1451_v53, %v1450_v41  ;;  %vm11563_vm8 = vnez %v11562_v39  ;;  %v11578_v41 = vld [vmem:[#allocation78_spill] sm:$0xff]  ;;  %v6904_v53 = vld [vmem:[%s11416_s29 + $0xc8] sm:$0xff] }
 0x8c3   :  { %3110 = vmatprep.mubr.f32.mxu0 %v11484_v48  ;;  %8363 = vmatpush1.bf16.msra.mxu0 %v8362_v36  ;;  %v8368_v17 = vpack.c.bf16 %v6906_v19, %v6904_v53  ;;  %v8372_v36 = vpack.c.bf16 %v6910_v37, %v6908_v4  ;;  %v6989_v37 = vld [vmem:[%s11474_s3 + $0x4] sm:$0xf]  ;;  %v4740_v39 = vld [vmem:[#allocation26 + $0x4] sm:$0x3] }
 0x8c4   :  { %11552 = vst [vmem:[#allocation52_spill] sm:$0xff] %v10606_v62  ;;  %8359 = vmatpush3.bf16.msra.mxu1 %v10606_v62  ;;  %8365 = vmatprep.subr.bf16.mxu0 %v8364_v11  ;;  %v6907_v11 = vld [vmem:[%s11416_s29 + $0xe0] sm:$0xff] }
 0x8c5   :  { %8377 = vmatprep.subr.msk.bf16.mxu1 %vm9818_vm7, %v11553_v49  ;;  %v8374_v51 = vpack.c.bf16 %v6909_v34, %v6907_v11  ;;  %v11587_v11 = vld [vmem:[#allocation79_spill] sm:$0xff] }
 0x8c6   :  { %6894 = vmatmul.mubr.msk.f32.gmra.mrb[38].mxu0 %vm11549_vm5, %v11548_v55  ;;  %vm11565_vm5 = vnez %v11564_v33  ;;  %v11676_v33 = vld [vmem:[#allocation80_spill] sm:$0xff] }
 0x8c7   :  { %3294 = vmatprep.mubr.f32.mxu0 %v11484_v48  ;;  %8367 = vmatpush1.bf16.msra.mxu0 %v8366_v43 }
 0x8c8   :  { %8369 = vmatprep.subr.bf16.mxu0 %v8368_v17 }
 0x8cb   :  { %8371 = vmatpush1.bf16.msra.mxu0 %v8370_v23 }
 0x8cc   :  { %8373 = vmatprep.subr.bf16.mxu0 %v8372_v36  ;;  %v3212_v36 = vld [vmem:[#allocation23 + $0x2] sm:$0x3] }
 0x8cd   :  { %v3217_v34 = vrot.slane %v3212_v36, %v11587_v11 }
 0x8cf   :  { %8375 = vmatpush1.bf16.msra.mxu0 %v8374_v51  ;;  %v3308_v51 = vld [vmem:[#allocation25 + $0x2] sm:$0x3] }
 0x8d0   :  { %8409 = vmatprep.subr.msk.bf16.mxu0 %vm9818_vm7, %v11553_v49 }
 0x995   :  { %v3106_v63 = vpop.f32.mrb[36].mxu0 }
 0x996   :  { %v3108_v59 = vpop.f32.mrb[37].mxu0 }
 0x997   :  { %3181 = vmatprep.mubr.f32.mxu1 %v3108_v59 }
 0x998   :  { %3182 = vmatmul.mubr.f32.vlgmr.msra.gmra.mrb[26].mxu1 %v3106_v63 }
 0x999   :  { %v3112_v9 = vpop.f32.mrb[38].mxu0  ;;  %8379 = vmatpush3.bf16.msk.msra.mxu1 %vm9836_vm0, %v11553_v49 }
 0x99a   :  { %v3114_v58 = vpop.f32.mrb[39].mxu0  ;;  %8381 = vmatprep.subr.msk.bf16.mxu1 %vm9860_vm6, %v11553_v49 }
 0x99b   :  { %3186 = vmatprep.mubr.f32.mxu1 %v3114_v58 }
 0x99c   :  { %3187 = vmatmul.mubr.f32.gmra.mrb[28].mxu1 %v3112_v9  ;;  %v11579_v9 = vld [vmem:[#allocation54_spill] sm:$0xff] }
 0x99d   :  { %8383 = vmatpush3.bf16.msk.msra.mxu1 %vm9878_vm4, %v11553_v49 }
 0x99e   :  { %8385 = vmatprep.subr.msk.bf16.mxu1 %vm11559_vm15, %v11553_v49 }
 0x9a1   :  { %8387 = vmatpush3.bf16.msk.msra.mxu1 %vm11561_vm2, %v11553_v49 }
 0x9a2   :  { %8389 = vmatprep.subr.msk.bf16.mxu1 %vm11563_vm8, %v11553_v49 }
 0x9a5   :  { %8391 = vmatpush3.bf16.msk.msra.mxu1 %vm11565_vm5, %v11553_v49 }
 0x9a6   :  { %8393 = vmatprep.subr.msk.bf16.mxu1 %vm11567_vm9, %v11553_v49 }
 0x9a9   :  { %8395 = vmatpush3.bf16.msk.msra.mxu1 %vm11569_vm10, %v11553_v49 }
 0x9aa   :  { %8397 = vmatprep.subr.msk.bf16.mxu1 %vm11571_vm13, %v11553_v49 }
 0x9ad   :  { %8399 = vmatpush3.bf16.msk.msra.mxu1 %vm11573_vm14, %v11553_v49 }
 0x9ae   :  { %8401 = vmatprep.subr.msk.bf16.mxu1 %vm11575_vm12, %v11553_v49 }
 0x9b1   :  { %8403 = vmatpush3.bf16.msk.msra.mxu1 %vm10118_vm3, %v11553_v49 }
 0x9b2   :  { %8405 = vmatprep.subr.msk.bf16.mxu1 %vm10136_vm1, %v11553_v49 }
 0x9b5   :  { %8407 = vmatpush3.bf16.msk.msra.mxu1 %vm10146_vm11, %v11553_v49  ;;  %vm11583_vm11 = vcmask 523264  }
 0x9b6   :  { %vm11584_vm7 = vmmov %vm11583_vm11 }
 0xa6b   :  { %v7378_v43 = vpop.f32.mrb[26].mxu1 }
 0xa6c   :  { %v7379_v63 = vpop.f32.mrb[27].mxu1 }
 0xa6d   :  { %v7380_v59 = vadd.f32 %v7379_v63, %v7378_v43  ;;  %v3400_v43 = vld [vmem:[#allocation26 + $0x2] sm:$0x3]  ;;  %v11588_v63 = vld [vmem:[#allocation80_spill] sm:$0xff] }
 0xa6f   :  { %v10677_v58 = vadd.f32 %v7380_v59, %v11579_v9  ;;  %v7381_v53 = vpop.f32.mrb[28].mxu1  ;;  %v3221_v59 = vrot.slane %v3212_v36, %v11588_v63 }
 0xa70   :  { %v7382_v19 = vpop.f32.mrb[29].mxu1 }
 0xa71   :  { %11580 = vst [vmem:[#allocation53_spill] sm:$0xff] %v10677_v58  ;;  %v11362_v17 = vmax.f32 %v10677_v58, 0.0  ;;  %v7383_v61 = vadd.f32 %v7382_v19, %v7381_v53  ;;  %v3317_v53 = vrot.slane %v3308_v51, %v11588_v63  ;;  %v3409_v19 = vrot.slane %v3400_v43, %v11588_v63 }
 0xa73   :  { %v10681_v23 = vadd.f32 %v7383_v61, %v11581_v22  ;;  %6911 = vmatmul.mubr.msk.f32.vlgmr.msra.gmra.mrb[40].mxu0 %vm11583_vm11, %v11362_v17  ;;  %vm11586_vm11 = vcmask 1043456   ;;  %v3313_v22 = vrot.slane %v3308_v51, %v11587_v11 }
 0xa74   :  { %3300 = vmatprep.mubr.f32.mxu0 %v11484_v48  ;;  %8411 = vmatpush3.bf16.msk.msra.mxu0 %vm9836_vm0, %v11553_v49 }
 0xa75   :  { %11582 = vst [vmem:[#allocation74_spill] sm:$0xff] %v10681_v23  ;;  %v11361_v4 = vmax.f32 %v10681_v23, 0.0  ;;  %8413 = vmatprep.subr.msk.bf16.mxu0 %vm9860_vm6, %v11553_v49 }
 0xa77   :  { %6912 = vmatmul.mubr.msk.f32.gmra.mrb[42].mxu0 %vm11584_vm7, %v11361_v4  ;;  %vm11585_vm7 = vnez %v11578_v41  ;;  %v3405_v4 = vrot.slane %v3400_v43, %v11587_v11  ;;  %v6999_v11 = vld [vmem:[%s9486_s15 + $0x20] sm:$0xff] }
 0xa78   :  { %8415 = vmatpush3.bf16.msk.msra.mxu0 %vm9878_vm4, %v11553_v49 }
 0xa79   :  { %8417 = vmatprep.subr.msk.bf16.mxu0 %vm11559_vm15, %v11553_v49 }
 0xa7c   :  { %8419 = vmatpush3.bf16.msk.msra.mxu0 %vm11561_vm2, %v11553_v49 }
 0xa7d   :  { %8421 = vmatprep.subr.msk.bf16.mxu0 %vm11563_vm8, %v11553_v49 }
 0xa80   :  { %8423 = vmatpush3.bf16.msk.msra.mxu0 %vm11565_vm5, %v11553_v49 }
 0xa81   :  { %8425 = vmatprep.subr.msk.bf16.mxu0 %vm11567_vm9, %v11553_v49 }
 0xa84   :  { %8427 = vmatpush3.bf16.msk.msra.mxu0 %vm11569_vm10, %v11553_v49 }
 0xa85   :  { %8429 = vmatprep.subr.msk.bf16.mxu0 %vm11571_vm13, %v11553_v49 }
 0xa88   :  { %8431 = vmatpush3.bf16.msk.msra.mxu0 %vm11573_vm14, %v11553_v49 }
 0xa89   :  { %8433 = vmatprep.subr.msk.bf16.mxu0 %vm11575_vm12, %v11553_v49 }
 0xa8c   :  { %8435 = vmatpush3.bf16.msk.msra.mxu0 %vm10118_vm3, %v11553_v49 }
 0xa8d   :  { %8437 = vmatprep.subr.msk.bf16.mxu0 %vm10136_vm1, %v11553_v49 }
 0xa90   :  { %8439 = vmatpush3.bf16.msk.msra.mxu0 %vm11585_vm7, %v11553_v49  ;;  %vm11589_vm7 = vcmask 130048  }
 0xa91   :  { %7922 = vmatprep.subr.msk.mxu0 %vm11586_vm11, %v6989_v37 }
 0xb46   :  { %v3296_v9 = vpop.f32.mrb[40].mxu0 }
 0xb47   :  { %v10742_v61 = vadd.f32 %v3296_v9, %v3217_v34  ;;  %v3298_v17 = vpop.f32.mrb[41].mxu0 }
 0xb48   :  { %v10746_v23 = vadd.f32 %v3298_v17, %v3221_v59 }
 0xb49   :  { %v3320_v36 = vmul.f32 %v3313_v22, %v10742_v61  ;;  %v3412_v40 = vmul.f32 %v3405_v4, %v10742_v61 }
 0xb4a   :  { %v3302_v58 = vpop.f32.mrb[42].mxu0  ;;  %v3321_v41 = vmul.f32 %v3317_v53, %v10746_v23  ;;  %v3413_v12 = vmul.f32 %v3409_v19, %v10746_v23 }
 0xb4b   :  { %v10752_v50 = vadd.f32 %v3302_v58, %v3217_v34  ;;  %v3304_v9 = vpop.f32.mrb[43].mxu0  ;;  %v10778_v34 = vld [vmem:[%s11483_s30 + $0x10] sm:$0xff] }
 0xb4c   :  { %v10754_v63 = vadd.f32 %v3304_v9, %v3221_v59  ;;  %3388 = vmatprep.mubr.f32.mxu1 %v3321_v41  ;;  %3480 = vmatprep.mubr.f32.mxu0 %v3413_v12  ;;  %11594 = vst [vmem:[#allocation57_spill] sm:$0xff] %v10778_v34  ;;  %v10788_v59 = vld [vmem:[%s11483_s30 + $0x20] sm:$0xff] }
 0xb4d   :  { %3389 = vmatmul.mubr.f32.vlgmr.msra.gmra.mrb[30].mxu1 %v3320_v36  ;;  %3481 = vmatmul.mubr.f32.vlgmr.msra.gmra.mrb[44].mxu0 %v3412_v40  ;;  %v3322_v12 = vmul.f32 %v3313_v22, %v10752_v50  ;;  %v3414_v41 = vmul.f32 %v3405_v4, %v10752_v50  ;;  %v10768_v40 = vld [vmem:[%s11483_s30] sm:$0xff]  ;;  %v10783_v4 = vld [vmem:[%s11483_s30 + $0x18] sm:$0xff]  ;;  %11598 = vst [vmem:[#allocation59_spill] sm:$0xff] %v10788_v59 }
 0xb4e   :  { %v3323_v51 = vmul.f32 %v3317_v53, %v10754_v63  ;;  %v3415_v43 = vmul.f32 %v3409_v19, %v10754_v63  ;;  %7923 = vmatpush3.msk.msra.mxu0 %vm11586_vm11, %v6989_v37  ;;  %11590 = vst [vmem:[#allocation75_spill] sm:$0xff] %v10768_v40  ;;  %vm11591_vm11 = vcmask 31744   ;;  %v10773_v37 = vld [vmem:[%s11483_s30 + $0x8] sm:$0xff]  ;;  %11596 = vst [vmem:[#allocation58_spill] sm:$0xff] %v10783_v4  ;;  %v11602_v19 = vld [vmem:[#allocation81_spill] sm:$0xff] }
 0xb4f   :  { %11592 = vst [vmem:[#allocation56_spill] sm:$0xff] %v10773_v37  ;;  %vm11593_vm1 = vmmov %vm11591_vm11  ;;  %v10793_v53 = vld [vmem:[%s11483_s30 + $0x28] sm:$0xff] }
 0xb50   :  { %3393 = vmatprep.mubr.f32.mxu1 %v3323_v51  ;;  %3485 = vmatprep.mubr.f32.mxu0 %v3415_v43  ;;  %vm11595_vm3 = vmmov %vm11593_vm1  ;;  %11600 = vst [vmem:[#allocation60_spill] sm:$0xff] %v10793_v53 }
 0xb51   :  { %3394 = vmatmul.mubr.f32.gmra.mrb[32].mxu1 %v3322_v12  ;;  %3486 = vmatmul.mubr.f32.gmra.mrb[46].mxu0 %v3414_v41  ;;  %vm11597_vm12 = vmmov %vm11593_vm1 }
 0xb52   :  { %7900 = vmatprep.mubr.msk.f32.mxu1 %vm11589_vm7, %v10200_v27  ;;  %7924 = vmatprep.mubr.msk.f32.mxu0 %vm11591_vm11, %v10768_v40  ;;  %vm11599_vm7 = vmmov %vm11593_vm1 }
 0xb53   :  { %vm11601_vm11 = vmmov %vm11593_vm1 }
 0xb55   :  { %7925 = vmatmul.mubr.msk.f32.vlgmr.msra.gmra.mrb[48].mxu0 %vm11593_vm1, %v10773_v37  ;;  %vm11603_vm1 = vcmask 392192  }
 0xb56   :  { %7927 = vmatprep.mubr.msk.f32.mxu0 %vm11595_vm3, %v10778_v34  ;;  %vm11604_vm3 = vcmask 130048  }
 0xb59   :  { %7928 = vmatmul.mubr.msk.f32.gmra.mrb[50].mxu0 %vm11597_vm12, %v10783_v4  ;;  %vm11605_vm12 = vmmov %vm11604_vm3 }
 0xb5a   :  { %7930 = vmatprep.mubr.msk.f32.mxu0 %vm11599_vm7, %v10788_v59  ;;  %vm11606_vm7 = vmmov %vm11604_vm3 }
 0xb5d   :  { %7931 = vmatmul.mubr.msk.f32.gmra.mrb[52].mxu0 %vm11601_vm11, %v10793_v53  ;;  %vm11607_vm11 = vmmov %vm11604_vm3 }
 0xb5e   :  { %7962 = vmatprep.mubr.msk.f32.mxu0 %vm11603_vm1, %v11602_v19  ;;  %vm11608_vm1 = vmmov %vm11604_vm3 }
 0xb5f   :  { %vm11611_vm14 = vmmov %vm11608_vm1 }
 0xc20   :  { %v7416_v22 = vpop.f32.mrb[30].mxu1  ;;  %v7454_v36 = vpop.f32.mrb[44].mxu0 }
 0xc21   :  { %v7417_v9 = vpop.f32.mrb[31].mxu1  ;;  %v7455_v51 = vpop.f32.mrb[45].mxu0 }
 0xc22   :  { %v7418_v43 = vadd.f32 %v7417_v9, %v7416_v22  ;;  %v7456_v12 = vadd.f32 %v7455_v51, %v7454_v36  ;;  %v8448_v22 = vpack.c.bf16 %v7000_v10, %v6999_v11  ;;  %v7002_v10 = vld [vmem:[%s9486_s15 + $0x38] sm:$0xff]  ;;  %v6991_v11 = vld [vmem:[%s9481_s14 + $0x1] ss:$0 sm:$0xff] }
 0xc24   :  { %v7419_v41 = vpop.f32.mrb[32].mxu1  ;;  %v7457_v17 = vpop.f32.mrb[46].mxu0 }
 0xc25   :  { %v7420_v58 = vpop.f32.mrb[33].mxu1  ;;  %v7458_v59 = vpop.f32.mrb[47].mxu0 }
 0xc26   :  { %v7421_v4 = vadd.f32 %v7420_v58, %v7419_v41  ;;  %v7459_v34 = vadd.f32 %v7458_v59, %v7457_v17 }
 0xc28   :  { %v8444_v37 = vpack.c.bf16 %v7421_v4, %v7418_v43  ;;  %v8440_v40 = vpack.c.bf16 %v7459_v34, %v7456_v12  ;;  %v7926_v53 = vpop.f32.mrb[48].mxu0  ;;  %v11614_v43 = vld [vmem:[#allocation83_spill] sm:$0xff] }
 0xc29   :  { %v3760_v19 = vpop.f32.mrb[49].mxu0  ;;  %v3766_v51 = vadd.f32 %v7926_v53, %v6991_v11  ;;  %v11616_v12 = vld [vmem:[#allocation51_spill] sm:$0xff] }
 0xc2a   :  { %8441 = vmatprep.subr.bf16.mxu1 %v8440_v40 }
 0xc2b   :  { %8443 = vmatpush3.bf16.msra.mxu1 %v8440_v40  ;;  %v7001_v40 = vld [vmem:[%s9486_s15 + $0x30] sm:$0xff] }
 0xc2c   :  { %8445 = vmatprep.subr.bf16.mxu1 %v8444_v37  ;;  %v7929_v36 = vpop.f32.mrb[50].mxu0  ;;  %v8452_v34 = vpack.c.bf16 %v7002_v10, %v7001_v40 }
 0xc2d   :  { %v3770_v9 = vpop.f32.mrb[51].mxu0  ;;  %v3776_v40 = vadd.f32 %v7929_v36, %v6991_v11  ;;  %v7010_v36 = vld [vmem:[%s9491_s23 + $0x1] ss:$0 sm:$0xff] }
 0xc2e   :  { %7901 = vmatmul.mubr.msk.f32.vlgmr.msra.gmra.mrb[34].mxu1 %vm11604_vm3, %v10226_v7  ;;  %vm11609_vm3 = vmmov %vm11608_vm1  ;;  %v3771_v59 = vadd.f32 %v6991_v11, %v3770_v9  ;;  %v11620_v9 = vld [vmem:[#allocation84_spill] sm:$0xff] }
 0xc2f   :  { %7903 = vmatprep.mubr.msk.f32.mxu1 %vm11605_vm12, %v10229_v35  ;;  %8447 = vmatpush3.bf16.msra.mxu1 %v8444_v37  ;;  %vm11610_vm12 = vmmov %vm11608_vm1  ;;  %v3761_v37 = vadd.f32 %v6991_v11, %v3760_v19  ;;  %v3792_v53 = vmax.f32 %v3776_v40, 0.0 }
 0xc30   :  { %8449 = vmatprep.subr.bf16.mxu1 %v8448_v22  ;;  %v7932_v17 = vpop.f32.mrb[52].mxu0  ;;  %v3791_v41 = vmax.f32 %v3771_v59, 0.0 }
 0xc31   :  { %v3780_v58 = vpop.f32.mrb[53].mxu0  ;;  %v3789_v4 = vmax.f32 %v3761_v37, 0.0 }
 0xc32   :  { %7904 = vmatmul.mubr.msk.f32.gmra.mrb[36].mxu1 %vm11606_vm7, %v10239_v32  ;;  %vm11612_vm7 = vmmov %vm11608_vm1  ;;  %v3781_v19 = vadd.f32 %v6991_v11, %v3780_v58 }
 0xc33   :  { %7906 = vmatprep.mubr.msk.f32.mxu1 %vm11607_vm11, %v10242_v29  ;;  %vm11613_vm11 = vmmov %vm11608_vm1 }
 0xc34   :  { %v3793_v10 = vmax.f32 %v3781_v19, 0.0 }
 0xc36   :  { %7907 = vmatmul.mubr.msk.f32.gmra.mrb[38].mxu1 %vm11608_vm1, %v10250_v30  ;;  %vm11615_vm1 = vcmask 1043456  }
 0xc37   :  { %7913 = vmatprep.mubr.msk.f32.mxu1 %vm11609_vm3, %v9654_v56 }
 0xc3a   :  { %7914 = vmatmul.mubr.msk.f32.vlgmr.msra.gmra.mrb[34].mxu1 %vm11610_vm12, %v9672_v2 }
 0xc3b   :  { %7916 = vmatprep.mubr.msk.f32.mxu1 %vm11611_vm14, %v9682_v6  ;;  %8451 = vmatpush3.bf16.msra.mxu1 %v8448_v22  ;;  %vm11617_vm14 = vcmask 261120   ;;  %v3790_v22 = vmax.f32 %v3766_v51, 0.0 }
 0xc3c   :  { %8453 = vmatprep.subr.bf16.mxu1 %v8452_v34  ;;  %vm11618_vm12 = vmmov %vm11617_vm14 }
 0xc3e   :  { %7917 = vmatmul.mubr.msk.f32.gmra.mrb[36].mxu1 %vm11612_vm7, %v9705_v21  ;;  %vm11619_vm7 = vmmov %vm11618_vm12 }
 0xc3f   :  { %7919 = vmatprep.mubr.msk.f32.mxu1 %vm11613_vm11, %v9716_v28  ;;  %8455 = vmatpush3.bf16.msra.mxu1 %v8452_v34  ;;  %vm11621_vm11 = vmmov %vm11615_vm1  ;;  %v3786_v34 = vadd.f32 %v7932_v17, %v6991_v11 }
 0xc40   :  { %7025 = vmatprep.subr.msk.mxu1 %vm11615_vm1, %v11614_v43  ;;  %vm11622_vm1 = vmmov %vm11619_vm7 }
 0xc41   :  { %v3794_v37 = vmax.f32 %v3786_v34, 0.0 }
 0xc42   :  { %7920 = vmatmul.mubr.msk.f32.gmra.mrb[38].mxu1 %vm11609_vm3, %v11616_v12  ;;  %vm11623_vm3 = vmmov %vm11622_vm1 }
 0xc43   :  { %7941 = vmatprep.mubr.msk.f32.mxu1 %vm11617_vm14, %v3789_v4  ;;  %vm11624_vm14 = vmmov %vm11622_vm1 }
 0xc46   :  { %7942 = vmatmul.mubr.msk.f32.vlgmr.msra.gmra.mrb[34].mxu1 %vm11618_vm12, %v3790_v22 }
 0xc47   :  { %7944 = vmatprep.mubr.msk.f32.mxu1 %vm11619_vm7, %v3791_v41  ;;  %7026 = vmatpush1.msk.msra.mxu1 %vm11621_vm11, %v11620_v9 }
 0xc48   :  { %8489 = vmatprep.subr.bf16.mxu1 %v10413_v47 }
 0xc4a   :  { %7945 = vmatmul.mubr.msk.f32.gmra.mrb[36].mxu1 %vm11622_vm1, %v3792_v53 }
 0xc4b   :  { %7947 = vmatprep.mubr.msk.f32.mxu1 %vm11623_vm3, %v3793_v10 }
 0xc4e   :  { %7948 = vmatmul.mubr.msk.f32.gmra.mrb[38].mxu1 %vm11624_vm14, %v3794_v37 }
 0xc4f   :  { %4331 = vmatprep.mubr.f32.mxu1 %v11484_v48 }
 0xd19   :  { %v7943_v58 = vpop.f32.mrb[34].mxu1 }
 0xd1a   :  { %v3928_v4 = vadd.f32 %v7943_v58, %v7010_v36  ;;  %v3884_v59 = vpop.f32.mrb[35].mxu1 }
 0xd1b   :  { %v3927_v51 = vadd.f32 %v7010_v36, %v3884_v59 }
 0xd1c   :  { %vm3934_vm12 = vcmp.ge.f32.partialorder %v3928_v4, 0.0  ;;  %v3940_v41 = vmul.f32 0.2, %v3928_v4 }
 0xd1d   :  { %vm3933_vm7 = vcmp.ge.f32.partialorder %v3927_v51, 0.0  ;;  %v3939_v17 = vmul.f32 0.2, %v3927_v51  ;;  %v7946_v11 = vpop.f32.mrb[36].mxu1 }
 0xd1e   :  { %v3930_v19 = vadd.f32 %v7946_v11, %v7010_v36  ;;  %v3894_v22 = vpop.f32.mrb[37].mxu1  ;;  %v3946_v40 = vsel %vm3934_vm12, %v3928_v4, %v3940_v41  ;;  %vm11626_vm12 = vcmask 392192  }
 0xd1f   :  { %v3929_v53 = vadd.f32 %v7010_v36, %v3894_v22  ;;  %v3945_v10 = vsel %vm3933_vm7, %v3927_v51, %v3939_v17  ;;  %v11625_v22 = vld [vmem:[#allocation82_spill] sm:$0xff]  ;;  %vm11627_vm7 = vcmask 130048  }
 0xd20   :  { %vm3936_vm11 = vcmp.ge.f32.partialorder %v3930_v19, 0.0  ;;  %v3942_v34 = vmul.f32 0.2, %v3930_v19  ;;  %v8456_v37 = vpack.c.bf16 %v3946_v40, %v3945_v10 }
 0xd21   :  { %vm3935_vm1 = vcmp.ge.f32.partialorder %v3929_v53, 0.0  ;;  %v3941_v47 = vmul.f32 0.2, %v3929_v53  ;;  %v7949_v9 = vpop.f32.mrb[38].mxu1 }
 0xd22   :  { %v3932_v43 = vadd.f32 %v7949_v9, %v7010_v36  ;;  %v3904_v58 = vpop.f32.mrb[39].mxu1  ;;  %8457 = vmatprep.subr.bf16.mxu0 %v8456_v37  ;;  %v3948_v59 = vsel %vm3936_vm11, %v3930_v19, %v3942_v34  ;;  %vm11630_vm11 = vcmask 31744  }
 0xd23   :  { %v3931_v5 = vadd.f32 %v7010_v36, %v3904_v58  ;;  %8459 = vmatpush3.bf16.msra.mxu0 %v8456_v37  ;;  %v3947_v1 = vsel %vm3935_vm1, %v3929_v53, %v3941_v47  ;;  %v11628_v47 = vld [vmem:[#allocation85_spill] sm:$0xff]  ;;  %vm11631_vm1 = vmmov %vm11630_vm11 }
 0xd24   :  { %vm3938_vm3 = vcmp.ge.f32.partialorder %v3932_v43, 0.0  ;;  %v3944_v45 = vmul.f32 0.2, %v3932_v43  ;;  %v8460_v11 = vpack.c.bf16 %v3948_v59, %v3947_v1  ;;  %v11629_v1 = vld [vmem:[#allocation86_spill] sm:$0xff] }
 0xd25   :  { %vm3937_vm14 = vcmp.ge.f32.partialorder %v3931_v5, 0.0  ;;  %v3943_v4 = vmul.f32 0.2, %v3931_v5 }
 0xd26   :  { %8461 = vmatprep.subr.bf16.mxu0 %v8460_v11  ;;  %v3950_v51 = vsel %vm3938_vm3, %v3932_v43, %v3944_v45  ;;  %vm11632_vm3 = vmmov %vm11631_vm1 }
 0xd27   :  { %8463 = vmatpush3.bf16.msra.mxu0 %v8460_v11  ;;  %v3949_v41 = vsel %vm3937_vm14, %v3931_v5, %v3943_v4  ;;  %vm11633_vm14 = vmmov %vm11631_vm1 }
 0xd28   :  { %v8464_v17 = vpack.c.bf16 %v3950_v51, %v3949_v41 }
 0xd2a   :  { %8465 = vmatprep.subr.bf16.mxu0 %v8464_v17 }
 0xd2b   :  { %8467 = vmatpush3.bf16.msra.mxu0 %v8464_v17 }
 0xd2e   :  { %7963 = vmatmul.mubr.msk.f32.vlgmr.msra.gmra.mrb[54].mxu0 %vm11626_vm12, %v11625_v22  ;;  %vm11635_vm12 = vmmov %vm11627_vm7 }
 0xd2f   :  { %7969 = vmatprep.mubr.msk.f32.mxu0 %vm11627_vm7, %v9654_v56 }
 0xe01   :  { %v7964_v9 = vpop.f32.mrb[54].mxu0 }
 0xe02   :  { %v4023_v36 = vadd.f32 %v7964_v9, %v11628_v47  ;;  %v4017_v19 = vpop.f32.mrb[55].mxu0 }
 0xe03   :  { %v4018_v40 = vadd.f32 %v4017_v19, %v11629_v1 }
 0xe04   :  { %v4027_v53 = vsel %vm11630_vm11, %v4023_v36, -inf  ;;  %vm11637_vm11 = vmmov %vm11627_vm7 }
 0xe05   :  { %v4026_v45 = vsel %vm11631_vm1, %v4018_v40, -inf  ;;  %vm11638_vm1 = vmmov %vm11627_vm7 }
 0xe06   :  { %v4028_v5 = vmax.f32 %v4026_v45, %v4027_v53 }
 0xe08   :  { %v4029_v43 = vrot.slane %v4028_v5, 4 }
 0xe0a   :  { %v4030_v10 = vmax.f32 %v4028_v5, %v4029_v43 }
 0xe0c   :  { %v4031_v34 = vrot.slane %v4030_v10, 2 }
 0xe0e   :  { %v4032_v37 = vmax.f32 %v4030_v10, %v4031_v34 }
 0xe10   :  { %v4033_v58 = vrot.slane %v4032_v37, 1 }
 0xe12   :  { %v4034_v59 = vmax.f32 %v4032_v37, %v4033_v58 }
 0xe14   :  { %v4035_v11 = vsub.f32 %v4018_v40, %v4034_v59  ;;  %v4036_v4 = vsub.f32 %v4023_v36, %v4034_v59  ;;  %v11634_v59 = vpack.c.bf16 %v10754_v63, %v10746_v23 }
 0xe16   :  { %v4037_v51 = vmul.f32 1.442695, %v4035_v11  ;;  %v4039_v41 = vmul.f32 1.442695, %v4036_v4 }
 0xe18   :  { %8877 = vpow2.f32 %v4037_v51 }
 0xe19   :  { %8879 = vpow2.f32 %v4039_v41 }
 0xe22   :  { %v8878_v17 = vpop.eup %8877 }
 0xe23   :  { %v8880_v9 = vpop.eup %8879  ;;  %v4041_v19 = vsel %vm11632_vm3, %v8878_v17, 0.0  ;;  %vm11639_vm3 = vmmov %vm11638_vm1 }
 0xe24   :  { %v4042_v1 = vsel %vm11633_vm14, %v8880_v9, 0.0  ;;  %vm11640_vm14 = vmmov %vm11638_vm1 }
 0xe25   :  { %v4043_v47 = vadd.f32 %v4042_v1, %v4041_v19 }
 0xe27   :  { %v4044_v53 = vrot.slane %v4043_v47, 4 }
 0xe29   :  { %v4045_v45 = vadd.f32 %v4044_v53, %v4043_v47  ;;  %v11636_v47 = vpack.c.bf16 %v10752_v50, %v10742_v61 }
 0xe2b   :  { %v4046_v5 = vrot.slane %v4045_v45, 2 }
 0xe2d   :  { %v4047_v43 = vadd.f32 %v4046_v5, %v4045_v45 }
 0xe2f   :  { %v4048_v10 = vrot.slane %v4047_v43, 1 }
 0xe31   :  { %v4049_v34 = vadd.f32 %v4048_v10, %v4047_v43 }
 0xe33   :  { %8881 = vrcp.f32 %v4049_v34 }
 0xe3d   :  { %v8882_v40 = vpop.eup %8881 }
 0xe3e   :  { %v4051_v36 = vmul.f32 %v8882_v40, %v8878_v17  ;;  %v4052_v37 = vmul.f32 %v8882_v40, %v8880_v9 }
 0xe40   :  { %v8468_v58 = vpack.c.bf16 %v4052_v37, %v4051_v36 }
 0xe42   :  { %8469 = vmatprep.subr.bf16.mxu0 %v8468_v58 }
 0xe43   :  { %8471 = vmatpush3.bf16.msra.mxu0 %v8468_v58 }
 0xe44   :  { %8473 = vmatprep.subr.bf16.mxu0 %v11634_v59 }
 0xe46   :  { %7970 = vmatmul.mubr.msk.f32.vlgmr.msra.gmra.mrb[56].mxu0 %vm11635_vm12, %v9672_v2  ;;  %vm11641_vm12 = vmmov %vm11638_vm1 }
 0xe47   :  { %7972 = vmatprep.mubr.msk.f32.mxu0 %vm11627_vm7, %v9682_v6  ;;  %8475 = vmatpush1.bf16.msra.mxu0 %v11636_v47  ;;  %vm11642_vm7 = vmmov %vm11638_vm1 }
 0xe4a   :  { %7973 = vmatmul.mubr.msk.f32.gmra.mrb[58].mxu0 %vm11637_vm11, %v9705_v21  ;;  %vm11643_vm11 = vmmov %vm11638_vm1 }
 0xe4b   :  { %7975 = vmatprep.mubr.msk.f32.mxu0 %vm11638_vm1, %v9716_v28 }
 0xe4e   :  { %7976 = vmatmul.mubr.msk.f32.gmra.mrb[60].mxu0 %vm11639_vm3, %v11616_v12  ;;  %vm11644_vm3 = vmmov %vm11638_vm1 }
 0xe4f   :  { %4212 = vmatprep.mubr.f32.mxu0 %v11484_v48 }
 0xe52   :  { %7019 = vmatmul.mubr.msk.f32.vlgmr.msra.gmra.mrb[62].mxu0 %vm11640_vm14, %v10200_v27  ;;  %vm11645_vm14 = vcmask 31744  }
 0xe53   :  { %4218 = vmatprep.mubr.f32.mxu0 %v11484_v48 }
 0xe56   :  { %7020 = vmatmul.mubr.msk.f32.gmra.mrb[64].mxu0 %vm11641_vm12, %v10226_v7  ;;  %vm11646_vm12 = vmmov %vm11645_vm14 }
 0xe57   :  { %4224 = vmatprep.mubr.f32.mxu0 %v11484_v48 }
 0xe5a   :  { %7021 = vmatmul.mubr.msk.f32.gmra.mrb[66].mxu0 %vm11642_vm7, %v10229_v35  ;;  %vm11647_vm7 = vmmov %vm11646_vm12 }
 0xe5b   :  { %4230 = vmatprep.mubr.f32.mxu0 %v11484_v48 }
 0xe5e   :  { %7022 = vmatmul.mubr.msk.f32.gmra.mrb[68].mxu0 %vm11643_vm11, %v10239_v32  ;;  %vm11648_vm11 = vmmov %vm11647_vm7 }
 0xe5f   :  { %4236 = vmatprep.mubr.f32.mxu0 %v11484_v48 }
 0xe62   :  { %7023 = vmatmul.mubr.msk.f32.gmra.mrb[70].mxu0 %vm11638_vm1, %v10242_v29  ;;  %vm11649_vm1 = vmmov %vm11647_vm7 }
 0xe63   :  { %4242 = vmatprep.mubr.f32.mxu0 %v11484_v48 }
 0xe66   :  { %7024 = vmatmul.mubr.msk.f32.gmra.mrb[72].mxu0 %vm11644_vm3, %v10250_v30  ;;  %vm11650_vm3 = vmmov %vm11649_vm1 }
 0xe67   :  { %4444 = vmatprep.mubr.f32.mxu0 %v11484_v48 }
 0xf19   :  { %v7971_v50 = vpop.f32.mrb[56].mxu0 }
 0xf1a   :  { %v4119_v23 = vpop.f32.mrb[57].mxu0 }
 0xf1b   :  { %7027 = vmatmul.mubr.msk.f32.vlgmr.msra.gmra.mrb[40].mxu1 %vm11645_vm14, %v4119_v23  ;;  %vm11651_vm14 = vnez %v11554_v52 }
 0xf1c   :  { %4337 = vmatprep.mubr.f32.mxu1 %v11484_v48  ;;  %8491 = vmatpush3.bf16.msra.mxu1 %v10404_v31 }
 0xf1d   :  { %v7974_v63 = vpop.f32.mrb[58].mxu0  ;;  %8493 = vmatprep.subr.bf16.mxu1 %v10432_v60 }
 0xf1e   :  { %v4129_v61 = vpop.f32.mrb[59].mxu0 }
 0xf1f   :  { %7028 = vmatmul.mubr.msk.f32.gmra.mrb[42].mxu1 %vm11646_vm12, %v7971_v50  ;;  %vm11652_vm12 = vcmask 392192  }
 0xf20   :  { %4343 = vmatprep.mubr.f32.mxu1 %v11484_v48  ;;  %8495 = vmatpush3.bf16.msra.mxu1 %v10427_v26 }
 0xf21   :  { %v7977_v1 = vpop.f32.mrb[60].mxu0  ;;  %8497 = vmatprep.subr.bf16.mxu1 %v10456_v3 }
 0xf22   :  { %v4139_v11 = vpop.f32.mrb[61].mxu0 }
 0xf23   :  { %7029 = vmatmul.mubr.msk.f32.gmra.mrb[44].mxu1 %vm11647_vm7, %v4129_v61  ;;  %vm11653_vm7 = vmmov %vm11652_vm12 }
 0xf24   :  { %4349 = vmatprep.mubr.f32.mxu1 %v11484_v48  ;;  %8499 = vmatpush3.bf16.msra.mxu1 %v10451_v54 }
 0xf25   :  { %v4214_v4 = vpop.f32.mrb[62].mxu0  ;;  %8501 = vmatprep.subr.bf16.mxu1 %v10481_v8 }
 0xf26   :  { %v4216_v51 = vpop.f32.mrb[63].mxu0 }
 0xf27   :  { %7030 = vmatmul.mubr.msk.f32.gmra.mrb[46].mxu1 %vm11648_vm11, %v7974_v63 }
 0xf28   :  { %4355 = vmatprep.mubr.f32.mxu1 %v11484_v48  ;;  %8503 = vmatpush3.bf16.msra.mxu1 %v10476_v42 }
 0xf29   :  { %v4220_v41 = vpop.f32.mrb[64].mxu0  ;;  %8505 = vmatprep.subr.bf16.mxu1 %v10500_v13 }
 0xf2a   :  { %v4222_v17 = vpop.f32.mrb[65].mxu0 }
 0xf2b   :  { %7031 = vmatmul.mubr.msk.f32.gmra.mrb[48].mxu1 %vm11649_vm1, %v4139_v11 }
 0xf2c   :  { %4361 = vmatprep.mubr.f32.mxu1 %v11484_v48  ;;  %8507 = vmatpush3.bf16.msra.mxu1 %v10520_v46 }
 0xf2d   :  { %v4226_v9 = vpop.f32.mrb[66].mxu0  ;;  %8509 = vmatprep.subr.bf16.mxu1 %v10528_v18 }
 0xf2e   :  { %v4228_v19 = vpop.f32.mrb[67].mxu0 }
 0xf2f   :  { %7032 = vmatmul.mubr.msk.f32.gmra.mrb[50].mxu1 %vm11650_vm3, %v7977_v1 }
 0xf30   :  { %8511 = vmatpush3.bf16.msra.mxu1 %v10547_v44 }
 0xf31   :  { %v4232_v53 = vpop.f32.mrb[68].mxu0  ;;  %8513 = vmatprep.subr.bf16.mxu1 %v10561_v0 }
 0xf32   :  { %v4234_v45 = vpop.f32.mrb[69].mxu0 }
 0xf34   :  { %8515 = vmatpush3.bf16.msra.mxu1 %v10570_v15 }
 0xf35   :  { %v4238_v5 = vpop.f32.mrb[70].mxu0  ;;  %8517 = vmatprep.subr.bf16.mxu1 %v10573_v25 }
 0xf36   :  { %v4240_v43 = vpop.f32.mrb[71].mxu0 }
 0xf38   :  { %8519 = vmatpush3.bf16.msra.mxu1 %v10606_v62 }
 0xf39   :  { %v4244_v10 = vpop.f32.mrb[72].mxu0  ;;  %8537 = vmatprep.subr.msk.bf16.mxu1 %vm11651_vm14, %v11553_v49 }
 0xf3a   :  { %v4246_v34 = vpop.f32.mrb[73].mxu0 }
 0xfee   :  { %v4333_v40 = vpop.f32.mrb[40].mxu1 }
 0xfef   :  { %v4368_v36 = vmul.f32 %v4333_v40, %v4214_v4  ;;  %v4335_v37 = vpop.f32.mrb[41].mxu1 }
 0xff0   :  { %v4369_v58 = vmul.f32 %v4335_v37, %v4216_v51 }
 0xff2   :  { %v4339_v59 = vpop.f32.mrb[42].mxu1 }
 0xff3   :  { %v4370_v47 = vmul.f32 %v4339_v59, %v4220_v41  ;;  %v4341_v50 = vpop.f32.mrb[43].mxu1 }
 0xff4   :  { %v4371_v23 = vmul.f32 %v4341_v50, %v4222_v17 }
 0xff5   :  { %v8478_v63 = vpack.c.bf16 %v4370_v47, %v4368_v36  ;;  %v7041_v36 = vld [vmem:[%s11416_s29 + $0x130] sm:$0xff] }
 0xff6   :  { %v8476_v61 = vpack.c.bf16 %v4371_v23, %v4369_v58  ;;  %v4345_v1 = vpop.f32.mrb[44].mxu1 }
 0xff7   :  { %v4372_v11 = vmul.f32 %v4345_v1, %v4226_v9  ;;  %v4347_v25 = vpop.f32.mrb[45].mxu1  ;;  %v4657_v1 = vrot.slane %v4648_v38, %v11676_v33 }
 0xff8   :  { %v4373_v62 = vmul.f32 %v4347_v25, %v4228_v19  ;;  %8477 = vmatprep.subr.bf16.mxu0 %v8476_v61 }
 0xff9   :  { %8479 = vmatpush1.bf16.msra.mxu0 %v8478_v63  ;;  %v4561_v63 = vrot.slane %v4552_v57, %v11676_v33 }
 0xffa   :  { %v4351_v15 = vpop.f32.mrb[46].mxu1 }
 0xffb   :  { %v4374_v0 = vmul.f32 %v4351_v15, %v4232_v53  ;;  %v4353_v44 = vpop.f32.mrb[47].mxu1  ;;  %v7037_v53 = vld [vmem:[%s11416_s29 + $0x110] sm:$0xff] }
 0xffc   :  { %v4375_v18 = vmul.f32 %v4353_v44, %v4234_v45  ;;  %v7040_v45 = vld [vmem:[%s11416_s29 + $0x128] sm:$0xff] }
 0xffd   :  { %v8482_v46 = vpack.c.bf16 %v4374_v0, %v4372_v11  ;;  %v7035_v0 = vld [vmem:[%s11416_s29 + $0x100] sm:$0xff] }
 0xffe   :  { %v8480_v4 = vpack.c.bf16 %v4375_v18, %v4373_v62  ;;  %v4357_v40 = vpop.f32.mrb[48].mxu1  ;;  %v7038_v18 = vld [vmem:[%s11416_s29 + $0x118] sm:$0xff] }
 0xfff   :  { %v4376_v51 = vmul.f32 %v4357_v40, %v4238_v5  ;;  %v4359_v37 = vpop.f32.mrb[49].mxu1  ;;  %v7042_v5 = vld [vmem:[%s11416_s29 + $0x138] sm:$0xff]  ;;  %v11661_v40 = vld [vmem:[#allocation76_spill] sm:$0xff] }
0x1000   :  { %v4377_v41 = vmul.f32 %v4359_v37, %v4240_v43  ;;  %8481 = vmatprep.subr.bf16.mxu0 %v8480_v4  ;;  %v8522_v43 = vpack.c.bf16 %v7037_v53, %v7035_v0  ;;  %v11657_v11 = vld [vmem:[#allocation70_spill] sm:$0xff]  ;;  %v11659_v4 = vld [vmem:[#allocation73_spill] sm:$0xff]  ;;  %vm11662_vm3 = vnez %v11661_v40  ;;  %v4653_v40 = vrot.slane %v4648_v38, %v11675_v14 }
0x1001   :  { %8483 = vmatpush1.bf16.msra.mxu0 %v8482_v46  ;;  %v7036_v46 = vld [vmem:[%s11416_s29 + $0x108] sm:$0xff]  ;;  %vm11658_vm11 = vnez %v11657_v11  ;;  %vm11660_vm1 = vnez %v11659_v4  ;;  %v11665_v37 = vld [vmem:[#allocation78_spill] sm:$0xff]  ;;  %v4749_v11 = vrot.slane %v4740_v39, %v11676_v33 }
0x1002   :  { %v4363_v17 = vpop.f32.mrb[50].mxu1  ;;  %v8520_v62 = vpack.c.bf16 %v7038_v18, %v7036_v46  ;;  %v7050_v46 = vld [vmem:[%s11416_s29 + $0x178] sm:$0xff]  ;;  %v7047_v0 = vld [vmem:[%s11416_s29 + $0x160] sm:$0xff] }
0x1003   :  { %v4378_v25 = vmul.f32 %v4363_v17, %v4244_v10  ;;  %v4365_v9 = vpop.f32.mrb[51].mxu1  ;;  %v8524_v10 = vpack.c.bf16 %v7042_v5, %v7040_v45  ;;  %v7046_v17 = vld [vmem:[%s11416_s29 + $0x158] sm:$0xff] }
0x1004   :  { %v4379_v15 = vmul.f32 %v4365_v9, %v4246_v34  ;;  %v7039_v34 = vld [vmem:[%s11416_s29 + $0x120] sm:$0xff] }
0x1005   :  { %v8486_v19 = vpack.c.bf16 %v4378_v25, %v4376_v51  ;;  %v8526_v58 = vpack.c.bf16 %v7041_v36, %v7039_v34  ;;  %v11663_v51 = vld [vmem:[#allocation77_spill] sm:$0xff]  ;;  %v7043_v9 = vld [vmem:[%s11416_s29 + $0x140] sm:$0xff] }
0x1006   :  { %v8484_v44 = vpack.c.bf16 %v4379_v15, %v4377_v41  ;;  %v7044_v41 = vld [vmem:[%s11416_s29 + $0x148] sm:$0xff]  ;;  %v7045_v15 = vld [vmem:[%s11416_s29 + $0x150] sm:$0xff] }
0x1007   :  { %v8528_v25 = vpack.c.bf16 %v7046_v17, %v7044_v41 }
0x1008   :  { %8485 = vmatprep.subr.bf16.mxu0 %v8484_v44  ;;  %v7048_v44 = vld [vmem:[%s11416_s29 + $0x168] sm:$0xff] }
0x1009   :  { %8487 = vmatpush1.bf16.msra.mxu0 %v8486_v19  ;;  %v8530_v19 = vpack.c.bf16 %v7045_v15, %v7043_v9  ;;  %v8532_v18 = vpack.c.bf16 %v7050_v46, %v7048_v44 }
0x100a   :  { %8521 = vmatprep.subr.bf16.mxu0 %v8520_v62  ;;  %v7049_v62 = vld [vmem:[%s11416_s29 + $0x170] sm:$0xff] }
0x100b   :  { %v8534_v53 = vpack.c.bf16 %v7049_v62, %v7047_v0 }
0x100c   :  { %7033 = vmatmul.mubr.msk.f32.vlgmr.msra.gmra.mrb[74].mxu0 %vm11652_vm12, %v11546_v24  ;;  %vm11664_vm12 = vnez %v11663_v51 }
0x100d   :  { %4450 = vmatprep.mubr.f32.mxu0 %v11484_v48  ;;  %8523 = vmatpush1.bf16.msra.mxu0 %v8522_v43 }
0x100e   :  { %8525 = vmatprep.subr.bf16.mxu0 %v8524_v10  ;;  %v11667_v10 = vld [vmem:[#allocation53_spill] sm:$0xff] }
0x100f   :  { %v11668_v34 = vmax.f32 %v11667_v10, 0.0 }
0x1010   :  { %7034 = vmatmul.mubr.msk.f32.gmra.mrb[76].mxu0 %vm11653_vm7, %v11548_v55  ;;  %vm11666_vm7 = vnez %v11665_v37 }
0x1011   :  { %4634 = vmatprep.mubr.f32.mxu0 %v11484_v48  ;;  %8527 = vmatpush1.bf16.msra.mxu0 %v8526_v58 }
0x1012   :  { %8529 = vmatprep.subr.bf16.mxu0 %v8528_v25 }
0x1015   :  { %8531 = vmatpush1.bf16.msra.mxu0 %v8530_v19 }
0x1016   :  { %8533 = vmatprep.subr.bf16.mxu0 %v8532_v18 }
0x1019   :  { %8535 = vmatpush1.bf16.msra.mxu0 %v8534_v53 }
0x101a   :  { %8569 = vmatprep.subr.msk.bf16.mxu0 %vm11651_vm14, %v11553_v49 }
0x10df   :  { %v4446_v59 = vpop.f32.mrb[74].mxu0 }
0x10e0   :  { %v4448_v47 = vpop.f32.mrb[75].mxu0 }
0x10e1   :  { %4521 = vmatprep.mubr.f32.mxu1 %v4448_v47 }
0x10e2   :  { %4522 = vmatmul.mubr.f32.vlgmr.msra.gmra.mrb[52].mxu1 %v4446_v59 }
0x10e3   :  { %v4452_v50 = vpop.f32.mrb[76].mxu0  ;;  %8539 = vmatpush3.bf16.msk.msra.mxu1 %vm9836_vm0, %v11553_v49 }
0x10e4   :  { %v4454_v23 = vpop.f32.mrb[77].mxu0  ;;  %8541 = vmatprep.subr.msk.bf16.mxu1 %vm9860_vm6, %v11553_v49 }
0x10e5   :  { %4526 = vmatprep.mubr.f32.mxu1 %v4454_v23  ;;  %v11669_v23 = vld [vmem:[#allocation74_spill] sm:$0xff] }
0x10e6   :  { %4527 = vmatmul.mubr.f32.gmra.mrb[54].mxu1 %v4452_v50  ;;  %v11670_v41 = vmax.f32 %v11669_v23, 0.0  ;;  %v11687_v23 = vld [vmem:[#allocation59_spill] sm:$0xff] }
0x10e7   :  { %8543 = vmatpush3.bf16.msk.msra.mxu1 %vm9878_vm4, %v11553_v49 }
0x10e8   :  { %8545 = vmatprep.subr.msk.bf16.mxu1 %vm11559_vm15, %v11553_v49 }
0x10eb   :  { %8547 = vmatpush3.bf16.msk.msra.mxu1 %vm11561_vm2, %v11553_v49 }
0x10ec   :  { %8549 = vmatprep.subr.msk.bf16.mxu1 %vm11563_vm8, %v11553_v49 }
0x10ef   :  { %8551 = vmatpush3.bf16.msk.msra.mxu1 %vm11565_vm5, %v11553_v49 }
0x10f0   :  { %8553 = vmatprep.subr.msk.bf16.mxu1 %vm11567_vm9, %v11553_v49 }
0x10f3   :  { %8555 = vmatpush3.bf16.msk.msra.mxu1 %vm11569_vm10, %v11553_v49 }
0x10f4   :  { %8557 = vmatprep.subr.msk.bf16.mxu1 %vm11571_vm13, %v11553_v49 }
0x10f7   :  { %8559 = vmatpush3.bf16.msk.msra.mxu1 %vm11658_vm11, %v11553_v49 }
0x10f8   :  { %8561 = vmatprep.subr.msk.bf16.mxu1 %vm11660_vm1, %v11553_v49 }
0x10fb   :  { %8563 = vmatpush3.bf16.msk.msra.mxu1 %vm11662_vm3, %v11553_v49 }
0x10fc   :  { %8565 = vmatprep.subr.msk.bf16.mxu1 %vm11664_vm12, %v11553_v49 }
0x10ff   :  { %8567 = vmatpush3.bf16.msk.msra.mxu1 %vm11666_vm7, %v11553_v49  ;;  %vm11671_vm7 = vcmask 523264  }
0x1100   :  { %vm11672_vm14 = vmmov %vm11671_vm7 }
0x11b5   :  { %v7541_v45 = vpop.f32.mrb[52].mxu1 }
0x11b6   :  { %v7542_v5 = vpop.f32.mrb[53].mxu1 }
0x11b7   :  { %v7543_v43 = vadd.f32 %v7542_v5, %v7541_v45 }
0x11b9   :  { %v10985_v36 = vadd.f32 %v7543_v43, %v11668_v34  ;;  %v7544_v58 = vpop.f32.mrb[54].mxu1  ;;  %v11679_v34 = vld [vmem:[#allocation75_spill] sm:$0xff] }
0x11ba   :  { %v7545_v59 = vpop.f32.mrb[55].mxu1 }
0x11bb   :  { %v4532_v47 = vmax.f32 %v10985_v36, 0.0  ;;  %v7546_v50 = vadd.f32 %v7545_v59, %v7544_v58  ;;  %v11681_v58 = vld [vmem:[#allocation56_spill] sm:$0xff]  ;;  %v11683_v59 = vld [vmem:[#allocation57_spill] sm:$0xff] }
0x11bd   :  { %v10990_v17 = vadd.f32 %v7546_v50, %v11670_v41  ;;  %7051 = vmatmul.mubr.msk.f32.vlgmr.msra.gmra.mrb[78].mxu0 %vm11671_vm7, %v4532_v47  ;;  %v11685_v50 = vld [vmem:[#allocation58_spill] sm:$0xff]  ;;  %v11689_v41 = vld [vmem:[#allocation60_spill] sm:$0xff] }
0x11be   :  { %4640 = vmatprep.mubr.f32.mxu0 %v11484_v48  ;;  %8571 = vmatpush3.bf16.msk.msra.mxu0 %vm9836_vm0, %v11553_v49 }
0x11bf   :  { %v4533_v52 = vmax.f32 %v10990_v17, 0.0  ;;  %8573 = vmatprep.subr.msk.bf16.mxu0 %vm9860_vm6, %v11553_v49  ;;  %vm11674_vm6 = vcmask 1043456   ;;  %v6123_v17 = vld [vmem:[#allocation17 + $0xb0] sm:$0xff] }
0x11c0   :  { %vm11677_vm0 = vmmov %vm11674_vm6 }
0x11c1   :  { %7052 = vmatmul.mubr.msk.f32.gmra.mrb[80].mxu0 %vm11672_vm14, %v4533_v52 }
0x11c2   :  { %8575 = vmatpush3.bf16.msk.msra.mxu0 %vm9878_vm4, %v11553_v49  ;;  %vm11673_vm4 = vnez %v11665_v37 }
0x11c3   :  { %8577 = vmatprep.subr.msk.bf16.mxu0 %vm11559_vm15, %v11553_v49  ;;  %vm11678_vm15 = vcmask 130048  }
0x11c6   :  { %8579 = vmatpush3.bf16.msk.msra.mxu0 %vm11561_vm2, %v11553_v49  ;;  %vm11680_vm2 = vcmask 31744  }
0x11c7   :  { %8581 = vmatprep.subr.msk.bf16.mxu0 %vm11563_vm8, %v11553_v49  ;;  %vm11682_vm8 = vmmov %vm11680_vm2 }
0x11ca   :  { %8583 = vmatpush3.bf16.msk.msra.mxu0 %vm11565_vm5, %v11553_v49  ;;  %vm11684_vm5 = vmmov %vm11680_vm2 }
0x11cb   :  { %8585 = vmatprep.subr.msk.bf16.mxu0 %vm11567_vm9, %v11553_v49  ;;  %vm11686_vm9 = vmmov %vm11680_vm2 }
0x11ce   :  { %8587 = vmatpush3.bf16.msk.msra.mxu0 %vm11569_vm10, %v11553_v49  ;;  %vm11688_vm10 = vmmov %vm11680_vm2 }
0x11cf   :  { %8589 = vmatprep.subr.msk.bf16.mxu0 %vm11571_vm13, %v11553_v49  ;;  %vm11690_vm13 = vmmov %vm11680_vm2 }
0x11d2   :  { %8591 = vmatpush3.bf16.msk.msra.mxu0 %vm11658_vm11, %v11553_v49  ;;  %vm11692_vm11 = vcmask 392192  }
0x11d3   :  { %8593 = vmatprep.subr.msk.bf16.mxu0 %vm11660_vm1, %v11553_v49  ;;  %vm11693_vm1 = vmmov %vm11678_vm15 }
0x11d4   :  { %vm11696_vm7 = vmmov %vm11693_vm1 }
0x11d5   :  { %vm11697_vm14 = vmmov %vm11693_vm1 }
0x11d6   :  { %8595 = vmatpush3.bf16.msk.msra.mxu0 %vm11662_vm3, %v11553_v49  ;;  %vm11694_vm3 = vmmov %vm11693_vm1 }
0x11d7   :  { %8597 = vmatprep.subr.msk.bf16.mxu0 %vm11664_vm12, %v11553_v49  ;;  %vm11695_vm12 = vmmov %vm11693_vm1 }
0x11da   :  { %8599 = vmatpush3.bf16.msk.msra.mxu0 %vm11673_vm4, %v11553_v49  ;;  %v4745_v49 = vrot.slane %v4740_v39, %v11675_v14  ;;  %vm11698_vm4 = vmmov %vm11693_vm1 }
0x11db   :  { %8004 = vmatprep.subr.msk.mxu0 %vm11674_vm6, %v7129_v20  ;;  %vm11699_vm6 = vmmov %vm11693_vm1 }
0x1290   :  { %v4636_v61 = vpop.f32.mrb[78].mxu0 }
0x1291   :  { %v11051_v4 = vadd.f32 %v4636_v61, %v4557_v16  ;;  %v4638_v51 = vpop.f32.mrb[79].mxu0 }
0x1292   :  { %v11055_v37 = vadd.f32 %v4638_v51, %v4561_v63 }
0x1293   :  { %v4660_v19 = vmul.f32 %v4653_v40, %v11051_v4  ;;  %v4752_v44 = vmul.f32 %v4745_v49, %v11051_v4 }
0x1294   :  { %v4642_v25 = vpop.f32.mrb[80].mxu0  ;;  %v4661_v9 = vmul.f32 %v4657_v1, %v11055_v37  ;;  %v4753_v15 = vmul.f32 %v4749_v11, %v11055_v37 }
0x1295   :  { %v11061_v46 = vadd.f32 %v4642_v25, %v4557_v16  ;;  %v4644_v18 = vpop.f32.mrb[81].mxu0 }
0x1296   :  { %v11063_v0 = vadd.f32 %v4644_v18, %v4561_v63  ;;  %4728 = vmatprep.mubr.f32.mxu1 %v4661_v9  ;;  %4820 = vmatprep.mubr.f32.mxu0 %v4753_v15  ;;  %v7139_v15 = vld [vmem:[%s9486_s15 + $0x40] sm:$0xff] }
0x1297   :  { %v8634_v62 = vpack.c.bf16 %v11061_v46, %v11051_v4  ;;  %4729 = vmatmul.mubr.f32.vlgmr.msra.gmra.mrb[56].mxu1 %v4660_v19  ;;  %4821 = vmatmul.mubr.f32.vlgmr.msra.gmra.mrb[82].mxu0 %v4752_v44  ;;  %v4662_v43 = vmul.f32 %v4653_v40, %v11061_v46  ;;  %v4754_v10 = vmul.f32 %v4745_v49, %v11061_v46  ;;  %v7140_v19 = vld [vmem:[%s9486_s15 + $0x48] sm:$0xff] }
0x1298   :  { %v4663_v53 = vmul.f32 %v4657_v1, %v11063_v0  ;;  %v4755_v45 = vmul.f32 %v4749_v11, %v11063_v0  ;;  %8005 = vmatpush3.msk.msra.mxu0 %vm11677_vm0, %v7129_v20  ;;  %v8632_v5 = vpack.c.bf16 %v11063_v0, %v11055_v37  ;;  %v11691_v20 = vld [vmem:[#allocation81_spill] sm:$0xff]  ;;  %v8608_v18 = vpack.c.bf16 %v7140_v19, %v7139_v15  ;;  %vm11700_vm0 = vmmov %vm11693_vm1  ;;  %v11744_v37 = vld [vmem:[#allocation72_spill] sm:$0xff] }
0x1299   :  { %v11745_v0 = vld [vmem:[#allocation52_spill] sm:$0xff] }
0x129a   :  { %4733 = vmatprep.mubr.f32.mxu1 %v4663_v53  ;;  %4825 = vmatprep.mubr.f32.mxu0 %v4755_v45 }
0x129b   :  { %4734 = vmatmul.mubr.f32.gmra.mrb[58].mxu1 %v4662_v43  ;;  %4826 = vmatmul.mubr.f32.gmra.mrb[84].mxu0 %v4754_v10 }
0x129c   :  { %7982 = vmatprep.mubr.msk.f32.mxu1 %vm11678_vm15, %v10200_v27  ;;  %8006 = vmatprep.mubr.msk.f32.mxu0 %vm11680_vm2, %v11679_v34  ;;  %v7141_v34 = vld [vmem:[%s9486_s15 + $0x50] sm:$0xff]  ;;  %vm11701_vm15 = vmmov %vm11700_vm0 }
0x129d   :  { %vm11702_vm2 = vmmov %vm11700_vm0 }
0x129f   :  { %8007 = vmatmul.mubr.msk.f32.vlgmr.msra.gmra.mrb[86].mxu0 %vm11682_vm8, %v11681_v58  ;;  %v7142_v58 = vld [vmem:[%s9486_s15 + $0x58] sm:$0xff]  ;;  %vm11704_vm8 = vcmask 1043456   ;;  %s11756_s15 = sld [smem:[#allocation45_spill]] }
0x12a0   :  { %8009 = vmatprep.mubr.msk.f32.mxu0 %vm11684_vm5, %v11683_v59  ;;  %v7131_v59 = vld [vmem:[%s9481_s14 + $0x2] ss:$0 sm:$0xff]  ;;  %vm11705_vm5 = vmmov %vm11700_vm0  ;;  %s11752_s14 = sld [smem:[#allocation44_spill]] }
0x12a3   :  { %8010 = vmatmul.mubr.msk.f32.gmra.mrb[88].mxu0 %vm11686_vm9, %v11685_v50  ;;  %v8612_v50 = vpack.c.bf16 %v7142_v58, %v7141_v34  ;;  %vm11706_vm9 = vcmask 261120  }
0x12a4   :  { %8012 = vmatprep.mubr.msk.f32.mxu0 %vm11688_vm10, %v11687_v23  ;;  %vm11707_vm10 = vmmov %vm11706_vm9 }
0x12a7   :  { %8013 = vmatmul.mubr.msk.f32.gmra.mrb[90].mxu0 %vm11690_vm13, %v11689_v41  ;;  %vm11708_vm13 = vmmov %vm11706_vm9 }
0x12a8   :  { %8044 = vmatprep.mubr.msk.f32.mxu0 %vm11692_vm11, %v11691_v20  ;;  %vm11710_vm11 = vmmov %vm11704_vm8 }
0x136a   :  { %v7579_v57 = vpop.f32.mrb[56].mxu1  ;;  %v7617_v14 = vpop.f32.mrb[82].mxu0 }
0x136b   :  { %v7580_v16 = vpop.f32.mrb[57].mxu1  ;;  %v7618_v38 = vpop.f32.mrb[83].mxu0 }
0x136c   :  { %v7581_v39 = vadd.f32 %v7580_v16, %v7579_v57  ;;  %v7619_v33 = vadd.f32 %v7618_v38, %v7617_v14  ;;  %v11703_v14 = vld [vmem:[#allocation83_spill] sm:$0xff] }
0x136e   :  { %v7582_v63 = vpop.f32.mrb[58].mxu1  ;;  %v7620_v61 = vpop.f32.mrb[84].mxu0 }
0x136f   :  { %v7583_v1 = vpop.f32.mrb[59].mxu1  ;;  %v7621_v11 = vpop.f32.mrb[85].mxu0 }
0x1370   :  { %v7584_v40 = vadd.f32 %v7583_v1, %v7582_v63  ;;  %v7622_v49 = vadd.f32 %v7621_v11, %v7620_v61  ;;  %v11709_v61 = vld [vmem:[#allocation84_spill] sm:$0xff] }
0x1372   :  { %v8604_v51 = vpack.c.bf16 %v7584_v40, %v7581_v39  ;;  %v8600_v25 = vpack.c.bf16 %v7622_v49, %v7619_v33  ;;  %v8008_v9 = vpop.f32.mrb[86].mxu0  ;;  %v11711_v40 = vld [vmem:[#allocation87_spill] sm:$0xff] }
0x1373   :  { %v5100_v44 = vpop.f32.mrb[87].mxu0  ;;  %v5106_v57 = vadd.f32 %v8008_v9, %v7131_v59 }
0x1374   :  { %8601 = vmatprep.subr.bf16.mxu1 %v8600_v25  ;;  %v5101_v23 = vadd.f32 %v7131_v59, %v5100_v44 }
0x1375   :  { %8603 = vmatpush3.bf16.msra.mxu1 %v8600_v25  ;;  %v5130_v39 = vmax.f32 %v5106_v57, 0.0 }
0x1376   :  { %8605 = vmatprep.subr.bf16.mxu1 %v8604_v51  ;;  %v8011_v53 = vpop.f32.mrb[88].mxu0  ;;  %v5129_v41 = vmax.f32 %v5101_v23, 0.0 }
0x1377   :  { %v5110_v45 = vpop.f32.mrb[89].mxu0  ;;  %v5116_v33 = vadd.f32 %v8011_v53, %v7131_v59 }
0x1378   :  { %7983 = vmatmul.mubr.msk.f32.vlgmr.msra.gmra.mrb[60].mxu1 %vm11693_vm1, %v10226_v7  ;;  %v5111_v20 = vadd.f32 %v7131_v59, %v5110_v45  ;;  %vm11712_vm1 = vmmov %vm11706_vm9 }
0x1379   :  { %7985 = vmatprep.mubr.msk.f32.mxu1 %vm11694_vm3, %v10229_v35  ;;  %8607 = vmatpush3.bf16.msra.mxu1 %v8604_v51  ;;  %v5132_v1 = vmax.f32 %v5116_v33, 0.0  ;;  %vm11713_vm3 = vmmov %vm11712_vm1  ;;  %v7150_v51 = vld [vmem:[%s9491_s23 + $0x2] ss:$0 sm:$0xff]  ;;  %s11759_s23 = sld [smem:[#allocation47_spill]] }
0x137a   :  { %8609 = vmatprep.subr.bf16.mxu1 %v8608_v18  ;;  %v8014_v43 = vpop.f32.mrb[90].mxu0  ;;  %v5131_v16 = vmax.f32 %v5111_v20, 0.0 }
0x137b   :  { %v5120_v10 = vpop.f32.mrb[91].mxu0  ;;  %v5126_v11 = vadd.f32 %v8014_v43, %v7131_v59 }
0x137c   :  { %7986 = vmatmul.mubr.msk.f32.gmra.mrb[62].mxu1 %vm11695_vm12, %v10239_v32  ;;  %v5121_v38 = vadd.f32 %v7131_v59, %v5120_v10  ;;  %vm11714_vm12 = vmmov %vm11712_vm1 }
0x137d   :  { %7988 = vmatprep.mubr.msk.f32.mxu1 %vm11696_vm7, %v10242_v29  ;;  %v5134_v49 = vmax.f32 %v5126_v11, 0.0 }
0x137e   :  { %v5133_v63 = vmax.f32 %v5121_v38, 0.0 }
0x1380   :  { %7989 = vmatmul.mubr.msk.f32.gmra.mrb[64].mxu1 %vm11697_vm14, %v10250_v30 }
0x1381   :  { %7995 = vmatprep.mubr.msk.f32.mxu1 %vm11698_vm4, %v9654_v56 }
0x1384   :  { %7996 = vmatmul.mubr.msk.f32.vlgmr.msra.gmra.mrb[60].mxu1 %vm11699_vm6, %v9672_v2 }
0x1385   :  { %7998 = vmatprep.mubr.msk.f32.mxu1 %vm11700_vm0, %v9682_v6  ;;  %8611 = vmatpush3.bf16.msra.mxu1 %v8608_v18 }
0x1386   :  { %8613 = vmatprep.subr.bf16.mxu1 %v8612_v50 }
0x1388   :  { %7999 = vmatmul.mubr.msk.f32.gmra.mrb[62].mxu1 %vm11701_vm15, %v9705_v21 }
0x1389   :  { %8001 = vmatprep.mubr.msk.f32.mxu1 %vm11702_vm2, %v9716_v28  ;;  %8615 = vmatpush3.bf16.msra.mxu1 %v8612_v50  ;;  %vm11715_vm2 = vcmask 392192  }
0x138a   :  { %7165 = vmatprep.subr.msk.mxu1 %vm11704_vm8, %v11703_v14  ;;  %vm11716_vm8 = vmmov %vm11705_vm5 }
0x138c   :  { %8002 = vmatmul.mubr.msk.f32.gmra.mrb[64].mxu1 %vm11705_vm5, %v11616_v12  ;;  %vm11719_vm5 = vcmask 31744  }
0x138d   :  { %8023 = vmatprep.mubr.msk.f32.mxu1 %vm11706_vm9, %v5129_v41  ;;  %vm11720_vm9 = vmmov %vm11719_vm5 }
0x1390   :  { %8024 = vmatmul.mubr.msk.f32.vlgmr.msra.gmra.mrb[60].mxu1 %vm11707_vm10, %v5130_v39  ;;  %vm11721_vm10 = vmmov %vm11719_vm5 }
0x1391   :  { %8026 = vmatprep.mubr.msk.f32.mxu1 %vm11708_vm13, %v5131_v16  ;;  %7166 = vmatpush1.msk.msra.mxu1 %vm11710_vm11, %v11709_v61  ;;  %vm11722_vm13 = vmmov %vm11719_vm5 }
0x1392   :  { %8649 = vmatprep.subr.bf16.mxu1 %v11711_v40  ;;  %vm11723_vm11 = vmmov %vm11716_vm8 }
0x1394   :  { %8027 = vmatmul.mubr.msk.f32.gmra.mrb[62].mxu1 %vm11712_vm1, %v5132_v1  ;;  %vm11724_vm1 = vmmov %vm11716_vm8 }
0x1395   :  { %8029 = vmatprep.mubr.msk.f32.mxu1 %vm11713_vm3, %v5133_v63  ;;  %vm11725_vm3 = vmmov %vm11724_vm1 }
0x1398   :  { %8030 = vmatmul.mubr.msk.f32.gmra.mrb[64].mxu1 %vm11714_vm12, %v5134_v49  ;;  %v11717_v49 = vld [vmem:[#allocation85_spill] sm:$0xff]  ;;  %vm11726_vm12 = vmmov %vm11724_vm1 }
0x1399   :  { %5671 = vmatprep.mubr.f32.mxu1 %v11484_v48 }
0x1463   :  { %v8025_v25 = vpop.f32.mrb[60].mxu1 }
0x1464   :  { %v5268_v9 = vadd.f32 %v8025_v25, %v7150_v51  ;;  %v5224_v15 = vpop.f32.mrb[61].mxu1 }
0x1465   :  { %v5267_v19 = vadd.f32 %v7150_v51, %v5224_v15 }
0x1466   :  { %vm5274_vm7 = vcmp.ge.f32.partialorder %v5268_v9, 0.0  ;;  %v5280_v44 = vmul.f32 0.2, %v5268_v9 }
0x1467   :  { %vm5273_vm14 = vcmp.ge.f32.partialorder %v5267_v19, 0.0  ;;  %v5279_v18 = vmul.f32 0.2, %v5267_v19  ;;  %v8028_v53 = vpop.f32.mrb[62].mxu1 }
0x1468   :  { %v5270_v45 = vadd.f32 %v8028_v53, %v7150_v51  ;;  %v5234_v43 = vpop.f32.mrb[63].mxu1  ;;  %v5286_v10 = vsel %vm5274_vm7, %v5268_v9, %v5280_v44  ;;  %v11718_v9 = vld [vmem:[#allocation86_spill] sm:$0xff]  ;;  %vm11727_vm7 = vmmov %vm11724_vm1 }
0x1469   :  { %v5269_v34 = vadd.f32 %v7150_v51, %v5234_v43  ;;  %v5285_v58 = vsel %vm5273_vm14, %v5267_v19, %v5279_v18  ;;  %vm11728_vm14 = vmmov %vm11724_vm1 }
0x146a   :  { %vm5276_vm4 = vcmp.ge.f32.partialorder %v5270_v45, 0.0  ;;  %v5282_v59 = vmul.f32 0.2, %v5270_v45  ;;  %v8616_v50 = vpack.c.bf16 %v5286_v10, %v5285_v58 }
0x146b   :  { %vm5275_vm6 = vcmp.ge.f32.partialorder %v5269_v34, 0.0  ;;  %v5281_v23 = vmul.f32 0.2, %v5269_v34  ;;  %v8031_v41 = vpop.f32.mrb[64].mxu1 }
0x146c   :  { %v5272_v20 = vadd.f32 %v8031_v41, %v7150_v51  ;;  %v5244_v57 = vpop.f32.mrb[65].mxu1  ;;  %8617 = vmatprep.subr.bf16.mxu0 %v8616_v50  ;;  %v5288_v14 = vsel %vm5276_vm4, %v5270_v45, %v5282_v59  ;;  %vm11729_vm4 = vmmov %vm11724_vm1 }
0x146d   :  { %v5271_v16 = vadd.f32 %v7150_v51, %v5244_v57  ;;  %8619 = vmatpush3.bf16.msra.mxu0 %v8616_v50  ;;  %v5287_v38 = vsel %vm5275_vm6, %v5269_v34, %v5281_v23  ;;  %vm11730_vm6 = vmmov %vm11724_vm1 }
0x146e   :  { %vm5278_vm0 = vcmp.ge.f32.partialorder %v5272_v20, 0.0  ;;  %v5284_v39 = vmul.f32 0.2, %v5272_v20  ;;  %v8620_v33 = vpack.c.bf16 %v5288_v14, %v5287_v38 }
0x146f   :  { %vm5277_vm15 = vcmp.ge.f32.partialorder %v5271_v16, 0.0  ;;  %v5283_v63 = vmul.f32 0.2, %v5271_v16 }
0x1470   :  { %8621 = vmatprep.subr.bf16.mxu0 %v8620_v33  ;;  %v5290_v61 = vsel %vm5278_vm0, %v5272_v20, %v5284_v39  ;;  %vm11731_vm0 = vmmov %vm11724_vm1 }
0x1471   :  { %8623 = vmatpush3.bf16.msra.mxu0 %v8620_v33  ;;  %v5289_v1 = vsel %vm5277_vm15, %v5271_v16, %v5283_v63  ;;  %vm11732_vm15 = vmmov %vm11731_vm0 }
0x1472   :  { %v8624_v11 = vpack.c.bf16 %v5290_v61, %v5289_v1 }
0x1474   :  { %8625 = vmatprep.subr.bf16.mxu0 %v8624_v11 }
0x1475   :  { %8627 = vmatpush3.bf16.msra.mxu0 %v8624_v11 }
0x1478   :  { %8045 = vmatmul.mubr.msk.f32.vlgmr.msra.gmra.mrb[92].mxu0 %vm11715_vm2, %v11625_v22  ;;  %vm11733_vm2 = vmmov %vm11731_vm0 }
0x1479   :  { %8051 = vmatprep.mubr.msk.f32.mxu0 %vm11716_vm8, %v9654_v56  ;;  %vm11734_vm8 = vmmov %vm11719_vm5 }
0x154b   :  { %v8046_v40 = vpop.f32.mrb[92].mxu0 }
0x154c   :  { %v5363_v51 = vadd.f32 %v8046_v40, %v11717_v49  ;;  %v5357_v25 = vpop.f32.mrb[93].mxu0 }
0x154d   :  { %v5358_v15 = vadd.f32 %v5357_v25, %v11718_v9 }
0x154e   :  { %v5367_v19 = vsel %vm11719_vm5, %v5363_v51, -inf }
0x154f   :  { %v5366_v44 = vsel %vm11720_vm9, %v5358_v15, -inf  ;;  %vm11735_vm9 = vmmov %vm11719_vm5 }
0x1550   :  { %v5368_v18 = vmax.f32 %v5366_v44, %v5367_v19 }
0x1552   :  { %v5369_v53 = vrot.slane %v5368_v18, 4 }
0x1554   :  { %v5370_v45 = vmax.f32 %v5368_v18, %v5369_v53 }
0x1556   :  { %v5371_v43 = vrot.slane %v5370_v45, 2 }
0x1558   :  { %v5372_v10 = vmax.f32 %v5370_v45, %v5371_v43 }
0x155a   :  { %v5373_v34 = vrot.slane %v5372_v10, 1 }
0x155c   :  { %v5374_v22 = vmax.f32 %v5372_v10, %v5373_v34 }
0x155e   :  { %v5375_v58 = vsub.f32 %v5358_v15, %v5374_v22  ;;  %v5376_v59 = vsub.f32 %v5363_v51, %v5374_v22 }
0x1560   :  { %v5377_v56 = vmul.f32 1.442695, %v5375_v58  ;;  %v5379_v50 = vmul.f32 1.442695, %v5376_v59 }
0x1562   :  { %8883 = vpow2.f32 %v5377_v56 }
0x1563   :  { %8885 = vpow2.f32 %v5379_v50 }
0x156c   :  { %v8884_v23 = vpop.eup %8883 }
0x156d   :  { %v8886_v41 = vpop.eup %8885  ;;  %v5381_v20 = vsel %vm11721_vm10, %v8884_v23, 0.0  ;;  %vm11736_vm10 = vmmov %vm11719_vm5 }
0x156e   :  { %v5382_v57 = vsel %vm11722_vm13, %v8886_v41, 0.0  ;;  %vm11737_vm13 = vmmov %vm11719_vm5 }
0x156f   :  { %v5383_v14 = vadd.f32 %v5382_v57, %v5381_v20 }
0x1571   :  { %v5384_v16 = vrot.slane %v5383_v14, 4 }
0x1573   :  { %v5385_v38 = vadd.f32 %v5384_v16, %v5383_v14 }
0x1575   :  { %v5386_v39 = vrot.slane %v5385_v38, 2 }
0x1577   :  { %v5387_v33 = vadd.f32 %v5386_v39, %v5385_v38 }
0x1579   :  { %v5388_v63 = vrot.slane %v5387_v33, 1 }
0x157b   :  { %v5389_v61 = vadd.f32 %v5388_v63, %v5387_v33 }
0x157d   :  { %8887 = vrcp.f32 %v5389_v61  ;;  %v5946_v61 = vld [vmem:[#allocation17 + $0x40] sm:$0xff] }
0x1587   :  { %v8888_v1 = vpop.eup %8887 }
0x1588   :  { %v5391_v11 = vmul.f32 %v8888_v1, %v8884_v23  ;;  %v5392_v40 = vmul.f32 %v8888_v1, %v8886_v41  ;;  %v5947_v1 = vld [vmem:[#allocation17 + $0x48] sm:$0xff] }
0x158a   :  { %v8628_v49 = vpack.c.bf16 %v5392_v40, %v5391_v11  ;;  %v7175_v11 = vld [vmem:[#allocation11] ss:$0 sm:$0xff]  ;;  %v5880_v40 = vpop.permute.xlu0 %5879 }
0x158c   :  { %8629 = vmatprep.subr.bf16.mxu0 %v8628_v49 }
0x158d   :  { %8631 = vmatpush3.bf16.msra.mxu0 %v8628_v49 }
0x158e   :  { %8633 = vmatprep.subr.bf16.mxu0 %v8632_v5 }
0x1590   :  { %8052 = vmatmul.mubr.msk.f32.vlgmr.msra.gmra.mrb[94].mxu0 %vm11723_vm11, %v9672_v2  ;;  %vm11740_vm11 = vmmov %vm11719_vm5 }
0x1591   :  { %8054 = vmatprep.mubr.msk.f32.mxu0 %vm11724_vm1, %v9682_v6  ;;  %8635 = vmatpush1.bf16.msra.mxu0 %v8634_v62  ;;  %vm11746_vm1 = vcmask 392192  }
0x1594   :  { %8055 = vmatmul.mubr.msk.f32.gmra.mrb[96].mxu0 %vm11725_vm3, %v9705_v21  ;;  %vm11747_vm3 = vmmov %vm11746_vm1 }
0x1595   :  { %8057 = vmatprep.mubr.msk.f32.mxu0 %vm11726_vm12, %v9716_v28  ;;  %vm11748_vm12 = vcmask 523264  }
0x1598   :  { %8058 = vmatmul.mubr.msk.f32.gmra.mrb[98].mxu0 %vm11727_vm7, %v11616_v12  ;;  %vm11749_vm7 = vmmov %vm11748_vm12 }
0x1599   :  { %5552 = vmatprep.mubr.f32.mxu0 %v11484_v48 }
0x159c   :  { %7159 = vmatmul.mubr.msk.f32.vlgmr.msra.gmra.mrb[100].mxu0 %vm11728_vm14, %v10200_v27  ;;  %vm11750_vm14 = vmmov %vm11731_vm0 }
0x159d   :  { %5558 = vmatprep.mubr.f32.mxu0 %v11484_v48 }
0x15a0   :  { %7160 = vmatmul.mubr.msk.f32.gmra.mrb[102].mxu0 %vm11729_vm4, %v10226_v7  ;;  %vm11751_vm4 = vmmov %vm11731_vm0 }
0x15a1   :  { %5564 = vmatprep.mubr.f32.mxu0 %v11484_v48 }
0x15a4   :  { %7161 = vmatmul.mubr.msk.f32.gmra.mrb[104].mxu0 %vm11730_vm6, %v10229_v35  ;;  %vm11753_vm6 = vmmov %vm11749_vm7 }
0x15a5   :  { %5570 = vmatprep.mubr.f32.mxu0 %v11484_v48 }
0x15a8   :  { %7162 = vmatmul.mubr.msk.f32.gmra.mrb[106].mxu0 %vm11731_vm0, %v10239_v32  ;;  %vm11754_vm0 = vmmov %vm11753_vm6 }
0x15a9   :  { %5576 = vmatprep.mubr.f32.mxu0 %v11484_v48 }
0x15ac   :  { %7163 = vmatmul.mubr.msk.f32.gmra.mrb[108].mxu0 %vm11732_vm15, %v10242_v29  ;;  %vm11755_vm15 = vmmov %vm11754_vm0 }
0x15ad   :  { %5582 = vmatprep.mubr.f32.mxu0 %v11484_v48 }
0x15b0   :  { %7164 = vmatmul.mubr.msk.f32.gmra.mrb[110].mxu0 %vm11733_vm2, %v10250_v30  ;;  %v11738_v30 = vld [vmem:[#allocation66_spill] sm:$0xff]  ;;  %vm11757_vm2 = vmmov %vm11754_vm0 }
0x15b1   :  { %5784 = vmatprep.mubr.f32.mxu0 %v11484_v48 }
0x1663   :  { %v8053_v2 = vpop.f32.mrb[94].mxu0 }
0x1664   :  { %v5459_v6 = vpop.f32.mrb[95].mxu0 }
0x1665   :  { %7167 = vmatmul.mubr.msk.f32.vlgmr.msra.gmra.mrb[66].mxu1 %vm11734_vm8, %v5459_v6  ;;  %vm11758_vm8 = vmmov %vm11754_vm0 }
0x1666   :  { %5677 = vmatprep.mubr.f32.mxu1 %v11484_v48  ;;  %8651 = vmatpush3.bf16.msra.mxu1 %v10404_v31 }
0x1667   :  { %v8056_v21 = vpop.f32.mrb[96].mxu0  ;;  %8653 = vmatprep.subr.bf16.mxu1 %v10432_v60  ;;  %v11739_v60 = vld [vmem:[#allocation88_spill] sm:$0xff] }
0x1668   :  { %v5469_v28 = vpop.f32.mrb[97].mxu0 }
0x1669   :  { %7168 = vmatmul.mubr.msk.f32.gmra.mrb[68].mxu1 %vm11719_vm5, %v8053_v2  ;;  %vm11760_vm5 = vmmov %vm11754_vm0 }
0x166a   :  { %5683 = vmatprep.mubr.f32.mxu1 %v11484_v48  ;;  %8655 = vmatpush3.bf16.msra.mxu1 %v10427_v26 }
0x166b   :  { %v8059_v27 = vpop.f32.mrb[98].mxu0  ;;  %8657 = vmatprep.subr.bf16.mxu1 %v10456_v3  ;;  %v11741_v3 = vld [vmem:[#allocation68_spill] sm:$0xff] }
0x166c   :  { %v5479_v7 = vpop.f32.mrb[99].mxu0 }
0x166d   :  { %7169 = vmatmul.mubr.msk.f32.gmra.mrb[70].mxu1 %vm11735_vm9, %v5469_v28  ;;  %v5893_v28 = vmul.f32 %v7175_v11, %v5880_v40  ;;  %vm11761_vm9 = vmmov %vm11754_vm0 }
0x166e   :  { %5689 = vmatprep.mubr.f32.mxu1 %v11484_v48  ;;  %8659 = vmatpush3.bf16.msra.mxu1 %v10451_v54 }
0x166f   :  { %v5554_v31 = vpop.f32.mrb[100].mxu0  ;;  %8661 = vmatprep.subr.bf16.mxu1 %v10481_v8 }
0x1670   :  { %v5556_v35 = vpop.f32.mrb[101].mxu0 }
0x1671   :  { %7170 = vmatmul.mubr.msk.f32.gmra.mrb[72].mxu1 %vm11736_vm10, %v8056_v21  ;;  %v8680_v21 = vpack.c.bf16 %v5947_v1, %v5946_v61  ;;  %vm11762_vm10 = vmmov %vm11754_vm0 }
0x1672   :  { %5695 = vmatprep.mubr.f32.mxu1 %v11484_v48  ;;  %8663 = vmatpush3.bf16.msra.mxu1 %v10476_v42  ;;  %v11742_v42 = vld [vmem:[#allocation69_spill] sm:$0xff] }
0x1673   :  { %v5560_v32 = vpop.f32.mrb[102].mxu0  ;;  %8665 = vmatprep.subr.bf16.mxu1 %v10500_v13  ;;  %v11743_v13 = vld [vmem:[#allocation71_spill] sm:$0xff] }
0x1674   :  { %v5562_v29 = vpop.f32.mrb[103].mxu0 }
0x1675   :  { %7171 = vmatmul.mubr.msk.f32.gmra.mrb[74].mxu1 %vm11737_vm13, %v5479_v7  ;;  %v5949_v7 = vld [vmem:[#allocation17 + $0x58] sm:$0xff]  ;;  %vm11763_vm13 = vcmask 261120  }
0x1676   :  { %5701 = vmatprep.mubr.f32.mxu1 %v11484_v48  ;;  %8667 = vmatpush3.bf16.msra.mxu1 %v11738_v30  ;;  %v5951_v30 = vld [vmem:[#allocation17 + $0x68] sm:$0xff] }
0x1677   :  { %v5566_v26 = vpop.f32.mrb[104].mxu0  ;;  %8669 = vmatprep.subr.bf16.mxu1 %v11739_v60 }
0x1678   :  { %v5568_v54 = vpop.f32.mrb[105].mxu0 }
0x1679   :  { %7172 = vmatmul.mubr.msk.f32.gmra.mrb[76].mxu1 %vm11740_vm11, %v8059_v27  ;;  %v5948_v27 = vld [vmem:[#allocation17 + $0x50] sm:$0xff]  ;;  %vm11764_vm11 = vmmov %vm11763_vm13 }
0x167a   :  { %8671 = vmatpush3.bf16.msra.mxu1 %v11741_v3  ;;  %v5952_v3 = vld [vmem:[#allocation17 + $0x70] sm:$0xff] }
0x167b   :  { %v5572_v8 = vpop.f32.mrb[106].mxu0  ;;  %8673 = vmatprep.subr.bf16.mxu1 %v11742_v42 }
0x167c   :  { %v5574_v12 = vpop.f32.mrb[107].mxu0 }
0x167e   :  { %8675 = vmatpush3.bf16.msra.mxu1 %v11743_v13  ;;  %v5906_v13 = vld [vmem:[#allocation5] sm:$0xff] }
0x167f   :  { %v5578_v4 = vpop.f32.mrb[108].mxu0  ;;  %8677 = vmatprep.subr.bf16.mxu1 %v11744_v37  ;;  %v5937_v37 = vld [vmem:[#allocation17] sm:$0xff] }
0x1680   :  { %v5580_v46 = vpop.f32.mrb[109].mxu0 }
0x1682   :  { %8679 = vmatpush3.bf16.msra.mxu1 %v11745_v0  ;;  %v5938_v0 = vld [vmem:[#allocation17 + $0x8] sm:$0xff] }
0x1683   :  { %v5584_v62 = vpop.f32.mrb[110].mxu0 }
0x1684   :  { %v5586_v5 = vpop.f32.mrb[111].mxu0 }
0x1738   :  { %v5673_v51 = vpop.f32.mrb[66].mxu1 }
0x1739   :  { %v5708_v25 = vmul.f32 %v5673_v51, %v5554_v31  ;;  %v5675_v9 = vpop.f32.mrb[67].mxu1  ;;  %v7176_v31 = vld [vmem:[#allocation13] ss:$0 sm:$0xff]  ;;  %v8696_v51 = vpack.c.bf16 %v5938_v0, %v5937_v37  ;;  %v7185_v0 = vld [vmem:[#allocation19] ss:$0 sm:$0xff] }
0x173a   :  { %v5709_v15 = vmul.f32 %v5675_v9, %v5556_v35  ;;  %v8684_v35 = vpack.c.bf16 %v5949_v7, %v5948_v27  ;;  %v6317_v37 = vld [vmem:[%s11756_s15] sm:$0xff] }
0x173c   :  { %v5679_v19 = vpop.f32.mrb[68].mxu1 }
0x173d   :  { %v5710_v44 = vmul.f32 %v5679_v19, %v5560_v32  ;;  %v5681_v18 = vpop.f32.mrb[69].mxu1  ;;  %v5902_v32 = vadd.f32 %v7176_v31, %v5893_v28 }
0x173e   :  { %v5711_v53 = vmul.f32 %v5681_v18, %v5562_v29  ;;  %v5950_v29 = vld [vmem:[#allocation17 + $0x60] sm:$0xff] }
0x173f   :  { %v8638_v45 = vpack.c.bf16 %v5710_v44, %v5708_v25  ;;  %v5904_v60 = vmax.f32 %v5902_v32, 0.0  ;;  %v5941_v18 = vld [vmem:[#allocation17 + $0x20] sm:$0xff] }
0x1740   :  { %v8636_v43 = vpack.c.bf16 %v5711_v53, %v5709_v15  ;;  %v5685_v10 = vpop.f32.mrb[70].mxu1  ;;  %v5942_v53 = vld [vmem:[#allocation17 + $0x28] sm:$0xff] }
0x1741   :  { %v5712_v34 = vmul.f32 %v5685_v10, %v5566_v26  ;;  %v5687_v22 = vpop.f32.mrb[71].mxu1  ;;  %v8688_v26 = vpack.c.bf16 %v5951_v30, %v5950_v29  ;;  %v5944_v10 = vld [vmem:[#allocation17 + $0x38] sm:$0xff] }
0x1742   :  { %v5713_v58 = vmul.f32 %v5687_v22, %v5568_v54  ;;  %8637 = vmatprep.subr.bf16.mxu0 %v8636_v43  ;;  %v5885_v54 = vpop.permute.xlu0 %5884  ;;  %v5943_v43 = vld [vmem:[#allocation17 + $0x30] sm:$0xff]  ;;  %v6117_v22 = vld [vmem:[#allocation17 + $0x80] sm:$0xff] }
0x1743   :  { %8639 = vmatpush1.bf16.msra.mxu0 %v8638_v45  ;;  %v5894_v42 = vmul.f32 %v7175_v11, %v5885_v54  ;;  %v8704_v45 = vpack.c.bf16 %v5942_v53, %v5941_v18  ;;  %v6121_v54 = vld [vmem:[#allocation17 + $0xa0] sm:$0xff]  ;;  %v6321_v53 = vld [vmem:[%s11756_s15 + $0x20] sm:$0xff] }
0x1744   :  { %v5691_v59 = vpop.f32.mrb[72].mxu1 }
0x1745   :  { %v5714_v56 = vmul.f32 %v5691_v59, %v5572_v8  ;;  %v5693_v50 = vpop.f32.mrb[73].mxu1  ;;  %v5953_v8 = vld [vmem:[#allocation17 + $0x78] sm:$0xff] }
0x1746   :  { %v5715_v23 = vmul.f32 %v5693_v50, %v5574_v12  ;;  %v8692_v12 = vpack.c.bf16 %v5953_v8, %v5952_v3  ;;  %v6220_v50 = vld [vmem:[%s11752_s14 + $0x8] sm:$0xff]  ;;  %v6122_v3 = vld [vmem:[#allocation17 + $0xa8] sm:$0xff] }
0x1747   :  { %v8642_v41 = vpack.c.bf16 %v5714_v56, %v5712_v34  ;;  %v8708_v34 = vpack.c.bf16 %v5944_v10, %v5943_v43  ;;  %v6219_v56 = vld [vmem:[%s11752_s14] sm:$0xff]  ;;  %v6323_v10 = vld [vmem:[%s11756_s15 + $0x30] sm:$0xff] }
0x1748   :  { %v8640_v20 = vpack.c.bf16 %v5715_v23, %v5713_v58  ;;  %v5697_v57 = vpop.f32.mrb[74].mxu1  ;;  %v6118_v58 = vld [vmem:[#allocation17 + $0x88] sm:$0xff] }
0x1749   :  { %v5716_v14 = vmul.f32 %v5697_v57, %v5578_v4  ;;  %v5699_v16 = vpop.f32.mrb[75].mxu1  ;;  %v5907_v4 = vld [vmem:[#allocation5 + $0x8] sm:$0xff]  ;;  %v8712_v59 = vpack.c.bf16 %v6118_v58, %v6117_v22  ;;  %v6221_v23 = vld [vmem:[%s11752_s14 + $0x10] sm:$0xff] }
0x174a   :  { %v5717_v38 = vmul.f32 %v5699_v16, %v5580_v46  ;;  %8641 = vmatprep.subr.bf16.mxu0 %v8640_v20  ;;  %v5908_v46 = vsel %vm11750_vm14, %v5906_v13, 0.0  ;;  %v6222_v20 = vld [vmem:[%s11752_s14 + $0x18] sm:$0xff]  ;;  %v6224_v16 = vld [vmem:[%s11752_s14 + $0x28] sm:$0xff]  ;;  %v6415_v58 = vld [vmem:[%s11759_s23] sm:$0xff] }
0x174b   :  { %8643 = vmatpush1.bf16.msra.mxu0 %v8642_v41  ;;  %5909 = vadd.xlane.f32.xlu0 %v5908_v46  ;;  %v8728_v41 = vpack.c.bf16 %v6220_v50, %v6219_v56  ;;  %v8732_v57 = vpack.c.bf16 %v6222_v20, %v6221_v23  ;;  %v6226_v13 = vld [vmem:[%s11752_s14 + $0x38] sm:$0xff]  ;;  %v6318_v46 = vld [vmem:[%s11756_s15 + $0x8] sm:$0xff] }
0x174c   :  { %v5703_v39 = vpop.f32.mrb[76].mxu1  ;;  %v7186_v50 = vld [vmem:[#allocation20] ss:$0 sm:$0xff] }
0x174d   :  { %v5718_v33 = vmul.f32 %v5703_v39, %v5584_v62  ;;  %v5705_v63 = vpop.f32.mrb[77].mxu1  ;;  %v5939_v62 = vld [vmem:[#allocation17 + $0x10] sm:$0xff]  ;;  %8729 = vmatprep.subr.bf16.mxu1 %v8728_v41 }
0x174e   :  { %v5719_v49 = vmul.f32 %v5705_v63, %v5586_v5  ;;  %v5940_v5 = vld [vmem:[#allocation17 + $0x18] sm:$0xff] }
0x174f   :  { %v8646_v2 = vpack.c.bf16 %v5718_v33, %v5716_v14  ;;  %v8700_v25 = vpack.c.bf16 %v5940_v5, %v5939_v62  ;;  %v6223_v14 = vld [vmem:[%s11752_s14 + $0x20] sm:$0xff] }
0x1750   :  { %v8644_v6 = vpack.c.bf16 %v5719_v49, %v5717_v38  ;;  %v8736_v38 = vpack.c.bf16 %v6224_v16, %v6223_v14  ;;  %v7177_v63 = vld [vmem:[#allocation14] ss:$0 sm:$0xff]  ;;  %v7178_v49 = vld [vmem:[#allocation16] ss:$0 sm:$0xff] }
0x1752   :  { %8645 = vmatprep.subr.bf16.mxu0 %v8644_v6 }
0x1753   :  { %8647 = vmatpush1.bf16.msra.mxu0 %v8646_v2 }
0x1754   :  { %8681 = vmatprep.subr.bf16.mxu0 %v8680_v21 }
0x1756   :  { %7173 = vmatmul.mubr.msk.f32.vlgmr.msra.gmra.mrb[112].mxu0 %vm11746_vm1, %v11546_v24  ;;  %v5903_v24 = vadd.f32 %v7176_v31, %v5894_v42  ;;  %v6119_v31 = vld [vmem:[#allocation17 + $0x90] sm:$0xff]  ;;  %vm6519_vm1 = vcmask 7168  }
0x1757   :  { %8683 = vmatpush3.bf16.msra.mxu0 %v8680_v21  ;;  %5790 = vmatprep.mubr.f32.mxu0 %v11484_v48 }
0x1758   :  { %8685 = vmatprep.subr.bf16.mxu0 %v8684_v35  ;;  %v5905_v48 = vmax.f32 %v5903_v24, 0.0 }
0x175a   :  { %7174 = vmatmul.mubr.msk.f32.gmra.mrb[114].mxu0 %vm11747_vm3, %v11548_v55  ;;  %v5911_v55 = vsel %vm11751_vm4, %v5907_v4, 0.0 }
0x175b   :  { %8687 = vmatpush3.bf16.msra.mxu0 %v8684_v35  ;;  %8076 = vmatprep.mubr.msk.f32.mxu0 %vm11748_vm12, %v5904_v60  ;;  %v6120_v35 = vld [vmem:[#allocation17 + $0x98] sm:$0xff] }
0x175c   :  { %8689 = vmatprep.subr.bf16.mxu0 %v8688_v26  ;;  %5912 = vadd.xlane.f32.xlu1 %v5911_v55  ;;  %v8716_v60 = vpack.c.bf16 %v6120_v35, %v6119_v31  ;;  %v8744_v55 = vpack.c.bf16 %v6318_v46, %v6317_v37 }
0x175f   :  { %8691 = vmatpush3.bf16.msra.mxu0 %v8688_v26 }
0x1760   :  { %8693 = vmatprep.subr.bf16.mxu0 %v8692_v12 }
0x1763   :  { %8695 = vmatpush3.bf16.msra.mxu0 %v8692_v12 }
0x1764   :  { %8697 = vmatprep.subr.bf16.mxu0 %v8696_v51 }
0x1766   :  { %8077 = vmatmul.mubr.msk.f32.vlgmr.msra.gmra.mrb[116].mxu0 %vm11749_vm7, %v5905_v48  ;;  %v6225_v48 = vld [vmem:[%s11752_s14 + $0x30] sm:$0xff] }
0x1767   :  { %8699 = vmatpush3.bf16.msra.mxu0 %v8696_v51  ;;  %v8740_v4 = vpack.c.bf16 %v6226_v13, %v6225_v48 }
0x1768   :  { %8701 = vmatprep.subr.bf16.mxu0 %v8700_v25 }
0x176b   :  { %8703 = vmatpush3.bf16.msra.mxu0 %v8700_v25 }
0x176c   :  { %8705 = vmatprep.subr.bf16.mxu0 %v8704_v45 }
0x176f   :  { %8707 = vmatpush3.bf16.msra.mxu0 %v8704_v45  ;;  %v6322_v45 = vld [vmem:[%s11756_s15 + $0x28] sm:$0xff] }
0x1770   :  { %8709 = vmatprep.subr.bf16.mxu0 %v8708_v34  ;;  %v8752_v43 = vpack.c.bf16 %v6322_v45, %v6321_v53 }
0x1773   :  { %8711 = vmatpush3.bf16.msra.mxu0 %v8708_v34  ;;  %v6324_v34 = vld [vmem:[%s11756_s15 + $0x38] sm:$0xff] }
0x1774   :  { %8713 = vmatprep.subr.bf16.mxu0 %v8712_v59  ;;  %v8756_v22 = vpack.c.bf16 %v6324_v34, %v6323_v10 }
0x17d8   :  { %v5910_v39 = vpop.xlane.xlu0 %5909 }
0x17d9   :  { %v5915_v33 = vmul.f32 0.0625, %v5910_v39  ;;  %v6418_v39 = vld [vmem:[%s11759_s23 + $0x18] sm:$0xff] }
0x17db   :  { %v5924_v11 = vmul.f32 %v7177_v63, %v5915_v33 }
0x17dd   :  { %v5933_v28 = vadd.f32 %v7178_v49, %v5924_v11 }
0x17df   :  { %v5935_v29 = vmax.f32 %v5933_v28, 0.0 }
0x17e9   :  { %v5913_v30 = vpop.xlane.xlu1 %5912 }
0x17ea   :  { %v5916_v36 = vmul.f32 0.0625, %v5913_v30 }
0x17ec   :  { %v5925_v8 = vmul.f32 %v7177_v63, %v5916_v36  ;;  %v7189_v63 = vld [vmem:[#allocation22] ss:$0 sm:$0xff] }
0x17ee   :  { %v5934_v12 = vadd.f32 %v7178_v49, %v5925_v8 }
0x17f0   :  { %v5936_v24 = vmax.f32 %v5934_v12, 0.0 }
0x1829   :  { %v5786_v9 = vpop.f32.mrb[112].mxu0 }
0x182a   :  { %v5788_v15 = vpop.f32.mrb[113].mxu0 }
0x182b   :  { %5861 = vmatprep.mubr.f32.mxu1 %v5788_v15  ;;  %v6320_v15 = vld [vmem:[%s11756_s15 + $0x18] sm:$0xff] }
0x182c   :  { %5862 = vmatmul.mubr.f32.vlgmr.msra.gmra.mrb[78].mxu1 %v5786_v9  ;;  %v6319_v9 = vld [vmem:[%s11756_s15 + $0x10] sm:$0xff] }
0x182d   :  { %v5792_v19 = vpop.f32.mrb[114].mxu0  ;;  %8731 = vmatpush3.bf16.msra.mxu1 %v8728_v41  ;;  %v8748_v18 = vpack.c.bf16 %v6320_v15, %v6319_v9 }
0x182e   :  { %v5794_v44 = vpop.f32.mrb[115].mxu0  ;;  %8733 = vmatprep.subr.bf16.mxu1 %v8732_v57 }
0x182f   :  { %5866 = vmatprep.mubr.f32.mxu1 %v5794_v44 }
0x1830   :  { %5867 = vmatmul.mubr.f32.gmra.mrb[80].mxu1 %v5792_v19 }
0x1831   :  { %8735 = vmatpush3.bf16.msra.mxu1 %v8732_v57 }
0x1832   :  { %8737 = vmatprep.subr.bf16.mxu1 %v8736_v38 }
0x1835   :  { %8739 = vmatpush3.bf16.msra.mxu1 %v8736_v38  ;;  %v6417_v38 = vld [vmem:[%s11759_s23 + $0x10] sm:$0xff] }
0x1836   :  { %8741 = vmatprep.subr.bf16.mxu1 %v8740_v4  ;;  %v8764_v33 = vpack.c.bf16 %v6418_v39, %v6417_v38 }
0x1839   :  { %8743 = vmatpush3.bf16.msra.mxu1 %v8740_v4 }
0x183a   :  { %8745 = vmatprep.subr.bf16.mxu1 %v8744_v55 }
0x18ff   :  { %v7704_v61 = vpop.f32.mrb[78].mxu1 }
0x1900   :  { %v7705_v1 = vpop.f32.mrb[79].mxu1 }
0x1901   :  { %v7706_v40 = vadd.f32 %v7705_v1, %v7704_v61 }
0x1903   :  { %v5864_v2 = vadd.f32 %v7706_v40, %v4532_v47  ;;  %v7707_v6 = vpop.f32.mrb[80].mxu1  ;;  %v8720_v47 = vpack.c.bf16 %v6122_v3, %v6121_v54 }
0x1904   :  { %v7708_v21 = vpop.f32.mrb[81].mxu1 }
0x1905   :  { %v5872_v27 = vmax.f32 %v5864_v2, 0.0  ;;  %v7709_v7 = vadd.f32 %v7708_v21, %v7707_v6  ;;  %v7192_v6 = vld [vmem:[#allocation2] ss:$0 sm:$0xff] }
0x1907   :  { %v5869_v32 = vadd.f32 %v7709_v7, %v4533_v52  ;;  %8095 = vmatprep.mubr.msk.f32.mxu0 %vm11753_vm6, %v5872_v27  ;;  %v6124_v52 = vld [vmem:[#allocation17 + $0xb8] sm:$0xff] }
0x1908   :  { %v8724_v42 = vpack.c.bf16 %v6124_v52, %v6123_v17 }
0x1909   :  { %v5873_v26 = vmax.f32 %v5869_v32, 0.0 }
0x190b   :  { %8096 = vmatmul.mubr.msk.f32.vlgmr.msra.gmra.mrb[116].mxu0 %vm11754_vm0, %v5873_v26 }
0x190c   :  { %8715 = vmatpush3.bf16.msra.mxu0 %v8712_v59  ;;  %8114 = vmatprep.mubr.msk.f32.mxu0 %vm11755_vm15, %v5935_v29  ;;  %v6416_v59 = vld [vmem:[%s11759_s23 + $0x8] sm:$0xff] }
0x190d   :  { %8717 = vmatprep.subr.bf16.mxu0 %v8716_v60  ;;  %v8760_v56 = vpack.c.bf16 %v6416_v59, %v6415_v58 }
0x1910   :  { %8719 = vmatpush3.bf16.msra.mxu0 %v8716_v60 }
0x1911   :  { %8721 = vmatprep.subr.bf16.mxu0 %v8720_v47 }
0x1914   :  { %8723 = vmatpush3.bf16.msra.mxu0 %v8720_v47 }
0x1915   :  { %8725 = vmatprep.subr.bf16.mxu0 %v8724_v42 }
0x1918   :  { %8727 = vmatpush3.bf16.msra.mxu0 %v8724_v42 }
0x191b   :  { %8115 = vmatmul.mubr.msk.f32.vlgmr.msra.gmra.mrb[116].mxu0 %vm11757_vm2, %v5936_v24 }
0x19ee   :  { %v8116_v62 = vpop.f32.mrb[116].mxu0 }
0x19ef   :  { %v6216_v5 = vadd.f32 %v8116_v62, %v7185_v0  ;;  %v6197_v51 = vpop.f32.mrb[117].mxu0 }
0x19f0   :  { %v6215_v25 = vadd.f32 %v7185_v0, %v6197_v51 }
0x19f1   :  { %v6218_v44 = vmax.f32 %v6216_v5, 0.0 }
0x19f2   :  { %v6217_v19 = vmax.f32 %v6215_v25, 0.0 }
0x19f4   :  { %8133 = vmatprep.mubr.msk.f32.mxu1 %vm11758_vm8, %v6217_v19 }
0x19f5   :  { %8134 = vmatmul.mubr.msk.f32.vlgmr.msra.gmra.mrb[82].mxu1 %vm11760_vm5, %v6218_v44 }
0x19f6   :  { %8747 = vmatpush3.bf16.msra.mxu1 %v8744_v55 }
0x19f7   :  { %8749 = vmatprep.subr.bf16.mxu1 %v8748_v18 }
0x19fa   :  { %8751 = vmatpush3.bf16.msra.mxu1 %v8748_v18 }
0x19fb   :  { %8753 = vmatprep.subr.bf16.mxu1 %v8752_v43 }
0x19fe   :  { %8755 = vmatpush3.bf16.msra.mxu1 %v8752_v43 }
0x19ff   :  { %8757 = vmatprep.subr.bf16.mxu1 %v8756_v22 }
0x1a02   :  { %8759 = vmatpush3.bf16.msra.mxu1 %v8756_v22 }
0x1a03   :  { %8761 = vmatprep.subr.bf16.mxu1 %v8760_v56 }
0x1ac8   :  { %v8135_v23 = vpop.f32.mrb[82].mxu1 }
0x1ac9   :  { %v6312_v41 = vadd.f32 %v8135_v23, %v7186_v50  ;;  %v6306_v20 = vpop.f32.mrb[83].mxu1 }
0x1aca   :  { %v6307_v57 = vadd.f32 %v7186_v50, %v6306_v20 }
0x1acb   :  { %v6316_v16 = vmax.f32 %v6312_v41, 0.0 }
0x1acc   :  { %v6315_v14 = vmax.f32 %v6307_v57, 0.0 }
0x1ace   :  { %8152 = vmatprep.mubr.msk.f32.mxu1 %vm11761_vm9, %v6315_v14 }
0x1acf   :  { %8153 = vmatmul.mubr.msk.f32.vlgmr.msra.gmra.mrb[84].mxu1 %vm11762_vm10, %v6316_v16 }
0x1ad0   :  { %8763 = vmatpush3.bf16.msra.mxu1 %v8760_v56 }
0x1ad1   :  { %8765 = vmatprep.subr.bf16.mxu1 %v8764_v33 }
0x1ad4   :  { %8767 = vmatpush3.bf16.msra.mxu1 %v8764_v33 }
0x1ba2   :  { %v8154_v61 = vpop.f32.mrb[84].mxu1 }
0x1ba3   :  { %v6410_v1 = vadd.f32 %v8154_v61, %v7189_v63  ;;  %v6404_v11 = vpop.f32.mrb[85].mxu1 }
0x1ba4   :  { %v6405_v40 = vadd.f32 %v7189_v63, %v6404_v11 }
0x1ba5   :  { %v6414_v2 = vmax.f32 %v6410_v1, 0.0 }
0x1ba6   :  { %v6413_v49 = vmax.f32 %v6405_v40, 0.0 }
0x1ba8   :  { %8163 = vmatprep.mubr.msk.f32.mxu1 %vm11763_vm13, %v6413_v49 }
0x1ba9   :  { %8164 = vmatmul.mubr.msk.f32.vlgmr.msra.gmra.mrb[86].mxu1 %vm11764_vm11, %v6414_v2 }
0x1c7c   :  { %v8165_v21 = vpop.f32.mrb[86].mxu1 }
0x1c7d   :  { %v6504_v28 = vadd.f32 %v8165_v21, %v7192_v6  ;;  %v6498_v27 = vpop.f32.mrb[87].mxu1 }
0x1c7e   :  { %v6499_v7 = vadd.f32 %v7192_v6, %v6498_v27 }
0x1c7f   :  { %v6508_v31 = vsub.f32 0.0, %v6504_v28 }
0x1c80   :  { %v6507_v35 = vsub.f32 0.0, %v6499_v7 }
0x1c81   :  { %v6511_v32 = vmul.f32 1.442695, %v6508_v31 }
0x1c82   :  { %v6509_v29 = vmul.f32 1.442695, %v6507_v35 }
0x1c83   :  { %8889 = vpow2.f32 %v6511_v32 }
0x1c84   :  { %8891 = vpow2.f32 %v6509_v29 }
0x1c8d   :  { %v8890_v30 = vpop.eup %8889 }
0x1c8e   :  { %v8892_v26 = vpop.eup %8891  ;;  %v6514_v60 = vadd.f32 1.0, %v8890_v30 }
0x1c8f   :  { %v6513_v54 = vadd.f32 1.0, %v8892_v26 }
0x1c90   :  { %8893 = vrcp.f32 %v6514_v60 }
0x1c91   :  { %8895 = vrcp.f32 %v6513_v54 }
0x1c9a   :  { %v8894_v3 = vpop.eup %8893 }
0x1c9b   :  { %v8896_v36 = vpop.eup %8895  ;;  %6521 = vst.msk [vmem:[%s9496_s1 + $0x8] sm:$0xff] %vm6519_vm1, %v8894_v3 }
0x1c9c   :  { %6520 = vst.msk [vmem:[%s9496_s1] sm:$0xff] %vm6519_vm1, %v8896_v36 }
0x1c9d   :  { %6526 = vsyncpa [#allocation4], 1 }
0x1c9e   :  { %6527 = vsyncpa [#allocation6], 1 }
0x1c9f   :  { %6528 = vsyncpa [#allocation9], 1 }
0x1ca0   :  { %6529 = vsyncpa [#allocation12], 1 }
0x1ca1   :  { %6530 = vsyncpa [#allocation15], 1 }
0x1ca2   :  { %6531 = vsyncpa [#allocation18], 1 }
0x1ca3   :  { %6532 = vsyncpa [#allocation21], 1 }
0x1ca4   :  { %6533 = vsyncpa [#allocation24], 1 }
0x1ca5   :  { %6534 = vsyncpa [#allocation27], 1 }

</bundles_post_ra>
